<compile_context>
chip_gen: v7x
topology: tpu7x:2x2x1
jax: 0.10.0
libtpu: 0.0.40
codegen_flags: <defaults>
</compile_context>

<pallas_src>
import functools

import jax
import jax.numpy as jnp
import numpy as np
from jax.experimental import pallas as pl
from jax.experimental.pallas import tpu as pltpu

LN_EPS = 1e-5
LANE = 128
_ACT_VMEM_BUDGET = 8 * 2 ** 20      # rough per-step f32 activation budget (bytes)


def _round_up(v, m):
    return (v + m - 1) // m * m


def _gelu_exact(x):
    """Exact (erf-based) GELU matching torch.nn.functional.gelu's default.

    erf via the Abramowitz–Stegun 7.1.26 polynomial (|error| < 1.5e-7). The
    divide is sent to the EUP with pl.reciprocal(approx=True) (frees the VALU
    slot); exp is already an EUP op.
    """
    z = x * 0.7071067811865476          # x / sqrt(2)
    s = jnp.where(z < 0.0, -1.0, 1.0)
    a = jnp.abs(z)
    t = pl.reciprocal(1.0 + 0.3275911 * a, approx=True)
    poly = t * (0.254829592
                + t * (-0.284496736
                       + t * (1.421413741
                              + t * (-1.453152027 + t * 1.061405429))))
    erf = s * (1.0 - poly * jnp.exp(-a * a))
    return 0.5 * x * (1.0 + erf)


# ----------------------------- Pallas kernel ------------------------------ #
def _ffn_kernel(x_ref, gamma_ref, beta_ref, w1_ref, b1_ref, w2_ref, b2_ref,
                o_ref, *, d_real, hidden_p):
    x = x_ref[...]                               # (Mt, Dp) f32
    dp = x.shape[-1]
    inv_d = 1.0 / d_real

    # LayerNorm over the real feature dim (f32 VPU math, rsqrt on EUP).
    mu = jnp.sum(x, axis=-1, keepdims=True) * inv_d
    xc = x - mu
    if dp != d_real:                             # compile-time branch
        col = jax.lax.broadcasted_iota(jnp.int32, (1, dp), 1)
        xc = jnp.where(col < d_real, xc, 0.0)    # zero padded lanes for the stats
    var = jnp.sum(xc * xc, axis=-1, keepdims=True) * inv_d
    xn = xc * jax.lax.rsqrt(var + LN_EPS) * gamma_ref[...] + beta_ref[...]

    # Fused first projection: single bf16 (Dp, 2*Hp) MXU dot, f32 accumulation,
    # then free 128-lane-aligned slices into the value / gate halves (GEGLU chunk).
    h = jnp.dot(xn.astype(jnp.bfloat16), w1_ref[...],
                preferred_element_type=jnp.float32) + b1_ref[...]
    a = h[:, :hidden_p]
    g = h[:, hidden_p:]
    act = a * _gelu_exact(g)                     # f32 elementwise (VPU + EUP)
    # TODO(synk): nn.Dropout(p=0.0) is an identity at inference and is omitted.

    out = jnp.dot(act.astype(jnp.bfloat16), w2_ref[...],
                  preferred_element_type=jnp.float32) + b2_ref[...]
    o_ref[...] = out.astype(o_ref.dtype)


# ------------------------------- wrapper ----------------------------------- #
def _pick_row_tile(m, dp, hp):
    """Row tile: as large as the activation budget allows (256..2048, mult of 8),
    but always leaving >=2 row blocks so v7x's second TensorCore has work."""
    per_row = 4 * (2 * dp + 4 * hp)              # rough f32 intermediates per row
    mt = int(min(2048, max(256, _ACT_VMEM_BUDGET // per_row)))
    mt = (mt // 8) * 8
    m8 = _round_up(m, 8)
    if m8 <= mt:
        mt = max(8, _round_up((m8 + 1) // 2, 8))
    return mt


def feed_forward_pallas(x, prep):
    """x: (..., dim) f32. prep: dict from prepare_ffn_params (padded bf16 weights)."""
    d, h = prep["dim"], prep["hidden"]
    dp, hp = prep["dim_p"], prep["hidden_p"]
    orig_shape = x.shape
    assert orig_shape[-1] == d

    x2 = x.reshape(-1, d)
    m = x2.shape[0]
    mt = _pick_row_tile(m, dp, hp)
    mp = _round_up(m, mt)
    if mp != m or dp != d:
        # Single pad to a lane/row-aligned shape; skipped entirely when the input
        # is already aligned (production dims), avoiding the extra HBM copy.
        x2 = jnp.pad(x2, ((0, mp - m), (0, dp - d)))
    grid = (mp // mt,)

    # Explicit scoped-VMEM limit from actual buffer sizes (+2x headroom), clamped
    # so it is also valid on v7x (64 MiB physical).
    weight_bytes = (dp * 2 * hp + hp * dp) * 2 + (2 * hp + 3 * dp) * 4
    io_bytes = 2 * mt * dp * 4
    act_bytes = mt * (2 * dp + 4 * hp) * 4
    est = 2 * (weight_bytes + io_bytes) + act_bytes
    vmem_limit = int(min(max(2 * est, 32 * 2 ** 20), 64 * 2 ** 20))

    kernel = functools.partial(_ffn_kernel, d_real=d, hidden_p=hp)
    out = pl.pallas_call(
        kernel,
        out_shape=jax.ShapeDtypeStruct((mp, dp), jnp.float32),
        grid=grid,
        in_specs=[
            pl.BlockSpec((mt, dp), lambda i: (i, 0)),       # x rows
            pl.BlockSpec((1, dp), lambda i: (0, 0)),        # LN gamma
            pl.BlockSpec((1, dp), lambda i: (0, 0)),        # LN beta
            pl.BlockSpec((dp, 2 * hp), lambda i: (0, 0)),   # fused W1 (bf16)
            pl.BlockSpec((1, 2 * hp), lambda i: (0, 0)),    # fused b1
            pl.BlockSpec((hp, dp), lambda i: (0, 0)),       # W2 (bf16)
            pl.BlockSpec((1, dp), lambda i: (0, 0)),        # b2
        ],
        out_specs=pl.BlockSpec((mt, dp), lambda i: (i, 0)),
        compiler_params=pltpu.CompilerParams(
            dimension_semantics=("parallel",),
            vmem_limit_bytes=vmem_limit),
    )(x2, prep["gamma"], prep["beta"], prep["w1"], prep["b1"],
      prep["w2"], prep["b2"])

    return out[:m, :d].reshape(orig_shape)


# ------------------------------ param handling ------------------------------ #
def init_feed_forward_params(key, dim, mult):
    """f32 params in the PyTorch module's logical layout."""
    hidden = dim * mult
    ks = jax.random.split(key, 4)
    gamma = jnp.ones((dim,), jnp.float32)       # LayerNorm default init
    beta = jnp.zeros((dim,), jnp.float32)
    w1 = jax.random.normal(ks[0], (dim, 2 * hidden), jnp.float32) * 0.05
    b1 = jax.random.normal(ks[1], (2 * hidden,), jnp.float32) * 0.05
    w2 = jax.random.normal(ks[2], (hidden, dim), jnp.float32) * 0.05
    b2 = jax.random.normal(ks[3], (dim,), jnp.float32) * 0.05
    return (gamma, beta, w1, b1, w2, b2)


def prepare_ffn_params(params):
    """One-time layout prep (outside the hot path): pad dim/hidden up to lane
    multiples, fuse the GEGLU weight halves into one (Dp, 2*Hp) matrix, and cast
    weights to bf16. Zero padding keeps the math exact (padded columns of the
    GEGLU output are 0 and padded W2 rows are 0)."""
    gamma, beta, w1, b1, w2, b2 = params
    d = gamma.shape[0]
    h = w1.shape[1] // 2
    dp = _round_up(max(d, LANE), LANE)
    hp = _round_up(max(h, LANE), LANE)

    def pad2(a, rows, cols):
        return jnp.pad(a, ((0, rows - a.shape[0]), (0, cols - a.shape[1])))

    w1a, w1g = w1[:, :h], w1[:, h:]              # value half / gate half
    b1a, b1g = b1[:h], b1[h:]
    w1_f = jnp.concatenate([pad2(w1a, dp, hp), pad2(w1g, dp, hp)],
                           axis=1).astype(jnp.bfloat16)              # (Dp, 2Hp)
    b1_f = jnp.concatenate([jnp.pad(b1a, (0, hp - h)),
                            jnp.pad(b1g, (0, hp - h))]).reshape(1, 2 * hp)
    w2_p = pad2(w2, hp, dp).astype(jnp.bfloat16)                     # (Hp, Dp)
    b2_p = jnp.pad(b2, (0, dp - d)).reshape(1, dp)
    gamma_p = jnp.pad(gamma, (0, dp - d)).reshape(1, dp)
    beta_p = jnp.pad(beta, (0, dp - d)).reshape(1, dp)
    return dict(gamma=gamma_p, beta=beta_p, w1=w1_f, b1=b1_f, w2=w2_p, b2=b2_p,
                dim=d, hidden=h, dim_p=dp, hidden_p=hp)


# --------------------------- pure-JAX reference ---------------------------- #
def feed_forward_ref(x, params):
    gamma, beta, w1, b1, w2, b2 = params
    mu = jnp.mean(x, -1, keepdims=True)
    var = jnp.mean((x - mu) ** 2, -1, keepdims=True)
    xn = (x - mu) * jax.lax.rsqrt(var + LN_EPS) * gamma + beta
    hdim = w1.shape[1] // 2
    hh = xn @ w1 + b1
    a, g = hh[..., :hdim], hh[..., hdim:]
    act = a * jax.nn.gelu(g, approximate=False)   # exact GELU, like F.gelu default
    return act @ w2 + b2


if __name__ == "__main__":
    dim, mult = 32, 4
    b, rows, seq = 2, 16, 16            # x: (batch, msa_rows, seq_len, dim)

    key = jax.random.PRNGKey(0)
    kx, kp = jax.random.split(key, 2)
    x = jax.random.normal(kx, (b, rows, seq, dim), jnp.float32)
    params = init_feed_forward_params(kp, dim, mult)
    prep = prepare_ffn_params(params)   # one-time pad + bf16 cast (not per call)

    out = feed_forward_pallas(x, prep)
    out = jax.block_until_ready(out)

    ref = feed_forward_ref(x, params)
    np.testing.assert_allclose(np.asarray(out), np.asarray(ref),
                               rtol=2e-3, atol=2e-3)
    print("KERNEL_OK")
</pallas_src>

<mosaic_0001>
module attributes {stable_mosaic.version = 11 : i64} {
  func.func @_ffn_kernel(%arg0: i32, %arg1: memref<256x128xf32, #tpu.memory_space<vmem>>, %arg2: memref<1x128xf32, #tpu.memory_space<vmem>>, %arg3: memref<1x128xf32, #tpu.memory_space<vmem>>, %arg4: memref<128x256xbf16, #tpu.memory_space<vmem>>, %arg5: memref<1x256xf32, #tpu.memory_space<vmem>>, %arg6: memref<128x128xbf16, #tpu.memory_space<vmem>>, %arg7: memref<1x128xf32, #tpu.memory_space<vmem>>, %arg8: memref<256x128xf32, #tpu.memory_space<vmem>>) attributes {dimension_semantics = [#tpu.dimension_semantics<parallel>], iteration_bounds = array<i64: 2>, scalar_prefetch = 0 : i64, scratch_operands = 0 : i64, tpu.core_type = #tpu.core_type<tc>, window_params = [{transform_indices = @transform_0, window_bounds = array<i64: 256, 128>}, {pipeline_mode = #tpu.pipeline_mode<synchronous>, transform_indices = @transform_1, window_bounds = array<i64: 1, 128>}, {pipeline_mode = #tpu.pipeline_mode<synchronous>, transform_indices = @transform_2, window_bounds = array<i64: 1, 128>}, {pipeline_mode = #tpu.pipeline_mode<synchronous>, transform_indices = @transform_3, window_bounds = array<i64: 128, 256>}, {pipeline_mode = #tpu.pipeline_mode<synchronous>, transform_indices = @transform_4, window_bounds = array<i64: 1, 256>}, {pipeline_mode = #tpu.pipeline_mode<synchronous>, transform_indices = @transform_5, window_bounds = array<i64: 128, 128>}, {pipeline_mode = #tpu.pipeline_mode<synchronous>, transform_indices = @transform_6, window_bounds = array<i64: 1, 128>}, {transform_indices = @transform_7, window_bounds = array<i64: 256, 128>}]} {
    %c0 = arith.constant 0 : index
    %c0_0 = arith.constant 0 : index
    %0 = vector.load %arg1[%c0, %c0_0] : memref<256x128xf32, #tpu.memory_space<vmem>>, vector<256x128xf32>
    %cst = arith.constant dense<0.000000e+00> : vector<256xf32>
    %1 = vector.multi_reduction <add>, %0, %cst [1] : vector<256x128xf32> to vector<256xf32>
    %2 = vector.shape_cast %1 : vector<256xf32> to vector<256x1xf32>
    %cst_1 = arith.constant 3.125000e-02 : f32
    %3 = vector.broadcast %cst_1 : f32 to vector<256x1xf32>
    %4 = arith.mulf %2, %3 : vector<256x1xf32>
    %5 = vector.broadcast %4 : vector<256x1xf32> to vector<256x128xf32>
    %6 = arith.subf %0, %5 : vector<256x128xf32>
    %7 = tpu.iota {dimensions = array<i32: 1>} : vector<1x128xi32>
    %c32_i32 = arith.constant 32 : i32
    %8 = vector.broadcast %c32_i32 : i32 to vector<1x128xi32>
    %9 = arith.cmpi slt, %7, %8 : vector<1x128xi32>
    %cst_2 = arith.constant 0.000000e+00 : f32
    %10 = vector.shape_cast %9 : vector<1x128xi1> to vector<1x128xi1>
    %11 = vector.broadcast %10 : vector<1x128xi1> to vector<256x128xi1>
    %12 = vector.broadcast %cst_2 : f32 to vector<256x128xf32>
    %13 = arith.select %11, %6, %12 : vector<256x128xi1>, vector<256x128xf32>
    %14 = arith.mulf %13, %13 : vector<256x128xf32>
    %cst_3 = arith.constant dense<0.000000e+00> : vector<256xf32>
    %15 = vector.multi_reduction <add>, %14, %cst_3 [1] : vector<256x128xf32> to vector<256xf32>
    %16 = vector.shape_cast %15 : vector<256xf32> to vector<256x1xf32>
    %cst_4 = arith.constant 3.125000e-02 : f32
    %17 = vector.broadcast %cst_4 : f32 to vector<256x1xf32>
    %18 = arith.mulf %16, %17 : vector<256x1xf32>
    %cst_5 = arith.constant 9.99999974E-6 : f32
    %19 = vector.broadcast %cst_5 : f32 to vector<256x1xf32>
    %20 = arith.addf %18, %19 : vector<256x1xf32>
    %21 = math.rsqrt %20 : vector<256x1xf32>
    %22 = vector.broadcast %21 : vector<256x1xf32> to vector<256x128xf32>
    %23 = arith.mulf %13, %22 : vector<256x128xf32>
    %c0_6 = arith.constant 0 : index
    %c0_7 = arith.constant 0 : index
    %24 = vector.load %arg2[%c0_6, %c0_7] : memref<1x128xf32, #tpu.memory_space<vmem>>, vector<1x128xf32>
    %25 = vector.broadcast %24 : vector<1x128xf32> to vector<256x128xf32>
    %26 = arith.mulf %23, %25 : vector<256x128xf32>
    %c0_8 = arith.constant 0 : index
    %c0_9 = arith.constant 0 : index
    %27 = vector.load %arg3[%c0_8, %c0_9] : memref<1x128xf32, #tpu.memory_space<vmem>>, vector<1x128xf32>
    %28 = vector.broadcast %27 : vector<1x128xf32> to vector<256x128xf32>
    %29 = arith.addf %26, %28 : vector<256x128xf32>
    %30 = arith.truncf %29 : vector<256x128xf32> to vector<256x128xbf16>
    %c0_10 = arith.constant 0 : index
    %c0_11 = arith.constant 0 : index
    %31 = vector.load %arg4[%c0_10, %c0_11] : memref<128x256xbf16, #tpu.memory_space<vmem>>, vector<128x256xbf16>
    %cst_12 = arith.constant dense<0.000000e+00> : vector<256x256xf32>
    %32 = tpu.matmul %30, %31, %cst_12 {dimension_numbers = #tpu.dot_dimension_numbers<[1], [0], [0], [1], [0, 0, 1, 1], [], []>} : vector<256x128xbf16>, vector<128x256xbf16>, vector<256x256xf32> -> vector<256x256xf32>
    %c0_13 = arith.constant 0 : index
    %c0_14 = arith.constant 0 : index
    %33 = vector.load %arg5[%c0_13, %c0_14] : memref<1x256xf32, #tpu.memory_space<vmem>>, vector<1x256xf32>
    %34 = vector.broadcast %33 : vector<1x256xf32> to vector<256x256xf32>
    %35 = arith.addf %32, %34 : vector<256x256xf32>
    %36 = vector.extract_strided_slice %35 {offsets = [0, 0], sizes = [256, 128], strides = [1, 1]} : vector<256x256xf32> to vector<256x128xf32>
    %37 = vector.extract_strided_slice %35 {offsets = [0, 128], sizes = [256, 128], strides = [1, 1]} : vector<256x256xf32> to vector<256x128xf32>
    %cst_15 = arith.constant 0.707106769 : f32
    %38 = vector.broadcast %cst_15 : f32 to vector<256x128xf32>
    %39 = arith.mulf %37, %38 : vector<256x128xf32>
    %cst_16 = arith.constant 0.000000e+00 : f32
    %40 = vector.broadcast %cst_16 : f32 to vector<256x128xf32>
    %41 = arith.cmpf olt, %39, %40 : vector<256x128xf32>
    %cst_17 = arith.constant -1.000000e+00 : f32
    %cst_18 = arith.constant 1.000000e+00 : f32
    %42 = vector.broadcast %cst_17 : f32 to vector<256x128xf32>
    %43 = vector.broadcast %cst_18 : f32 to vector<256x128xf32>
    %44 = arith.select %41, %42, %43 : vector<256x128xi1>, vector<256x128xf32>
    %45 = math.absf %39 : vector<256x128xf32>
    %cst_19 = arith.constant 0.327591091 : f32
    %46 = vector.broadcast %cst_19 : f32 to vector<256x128xf32>
    %47 = arith.mulf %46, %45 : vector<256x128xf32>
    %cst_20 = arith.constant 1.000000e+00 : f32
    %48 = vector.broadcast %cst_20 : f32 to vector<256x128xf32>
    %49 = arith.addf %48, %47 : vector<256x128xf32>
    %50 = tpu.reciprocal %49 {approx = true} : vector<256x128xf32> -> vector<256x128xf32>
    %cst_21 = arith.constant 1.06140542 : f32
    %51 = vector.broadcast %cst_21 : f32 to vector<256x128xf32>
    %52 = arith.mulf %50, %51 : vector<256x128xf32>
    %cst_22 = arith.constant -1.45315206 : f32
    %53 = vector.broadcast %cst_22 : f32 to vector<256x128xf32>
    %54 = arith.addf %53, %52 : vector<256x128xf32>
    %55 = arith.mulf %50, %54 : vector<256x128xf32>
    %cst_23 = arith.constant 1.42141378 : f32
    %56 = vector.broadcast %cst_23 : f32 to vector<256x128xf32>
    %57 = arith.addf %56, %55 : vector<256x128xf32>
    %58 = arith.mulf %50, %57 : vector<256x128xf32>
    %cst_24 = arith.constant -0.284496725 : f32
    %59 = vector.broadcast %cst_24 : f32 to vector<256x128xf32>
    %60 = arith.addf %59, %58 : vector<256x128xf32>
    %61 = arith.mulf %50, %60 : vector<256x128xf32>
    %cst_25 = arith.constant 0.254829586 : f32
    %62 = vector.broadcast %cst_25 : f32 to vector<256x128xf32>
    %63 = arith.addf %62, %61 : vector<256x128xf32>
    %64 = arith.mulf %50, %63 : vector<256x128xf32>
    %cst_26 = arith.constant 0.000000e+00 : f32
    %65 = vector.broadcast %cst_26 : f32 to vector<256x128xf32>
    %66 = arith.subf %65, %45 : vector<256x128xf32>
    %67 = arith.mulf %66, %45 : vector<256x128xf32>
    %68 = math.exp %67 : vector<256x128xf32>
    %69 = arith.mulf %64, %68 : vector<256x128xf32>
    %cst_27 = arith.constant 1.000000e+00 : f32
    %70 = vector.broadcast %cst_27 : f32 to vector<256x128xf32>
    %71 = arith.subf %70, %69 : vector<256x128xf32>
    %72 = arith.mulf %44, %71 : vector<256x128xf32>
    %cst_28 = arith.constant 5.000000e-01 : f32
    %73 = vector.broadcast %cst_28 : f32 to vector<256x128xf32>
    %74 = arith.mulf %73, %37 : vector<256x128xf32>
    %cst_29 = arith.constant 1.000000e+00 : f32
    %75 = vector.broadcast %cst_29 : f32 to vector<256x128xf32>
    %76 = arith.addf %75, %72 : vector<256x128xf32>
    %77 = arith.mulf %74, %76 : vector<256x128xf32>
    %78 = arith.mulf %36, %77 : vector<256x128xf32>
    %79 = arith.truncf %78 : vector<256x128xf32> to vector<256x128xbf16>
    %c0_30 = arith.constant 0 : index
    %c0_31 = arith.constant 0 : index
    %80 = vector.load %arg6[%c0_30, %c0_31] : memref<128x128xbf16, #tpu.memory_space<vmem>>, vector<128x128xbf16>
    %cst_32 = arith.constant dense<0.000000e+00> : vector<256x128xf32>
    %81 = tpu.matmul %79, %80, %cst_32 {dimension_numbers = #tpu.dot_dimension_numbers<[1], [0], [0], [1], [0, 0, 1, 1], [], []>} : vector<256x128xbf16>, vector<128x128xbf16>, vector<256x128xf32> -> vector<256x128xf32>
    %c0_33 = arith.constant 0 : index
    %c0_34 = arith.constant 0 : index
    %82 = vector.load %arg7[%c0_33, %c0_34] : memref<1x128xf32, #tpu.memory_space<vmem>>, vector<1x128xf32>
    %83 = vector.broadcast %82 : vector<1x128xf32> to vector<256x128xf32>
    %84 = arith.addf %81, %83 : vector<256x128xf32>
    %c0_35 = arith.constant 0 : index
    %c0_36 = arith.constant 0 : index
    %85 = vector.load %arg8[%c0_35, %c0_36] : memref<256x128xf32, #tpu.memory_space<vmem>>, vector<256x128xf32>
    tpu.vector_store %arg8[%c0_35, %c0_36], %84 {strides = array<i32>} : memref<256x128xf32, #tpu.memory_space<vmem>>, vector<256x128xf32>,
    return
  }
  func.func @transform_0(%arg0: i32) -> (i32, i32) {
    %c0_i32 = arith.constant 0 : i32
    %c0_i32_0 = arith.constant 0 : i32
    return %arg0, %c0_i32 : i32, i32
  }
  func.func @transform_1(%arg0: i32) -> (i32, i32) {
    %c0_i32 = arith.constant 0 : i32
    %c0_i32_0 = arith.constant 0 : i32
    %c0_i32_1 = arith.constant 0 : i32
    return %c0_i32, %c0_i32_0 : i32, i32
  }
  func.func @transform_2(%arg0: i32) -> (i32, i32) {
    %c0_i32 = arith.constant 0 : i32
    %c0_i32_0 = arith.constant 0 : i32
    %c0_i32_1 = arith.constant 0 : i32
    return %c0_i32, %c0_i32_0 : i32, i32
  }
  func.func @transform_3(%arg0: i32) -> (i32, i32) {
    %c0_i32 = arith.constant 0 : i32
    %c0_i32_0 = arith.constant 0 : i32
    %c0_i32_1 = arith.constant 0 : i32
    return %c0_i32, %c0_i32_0 : i32, i32
  }
  func.func @transform_4(%arg0: i32) -> (i32, i32) {
    %c0_i32 = arith.constant 0 : i32
    %c0_i32_0 = arith.constant 0 : i32
    %c0_i32_1 = arith.constant 0 : i32
    return %c0_i32, %c0_i32_0 : i32, i32
  }
  func.func @transform_5(%arg0: i32) -> (i32, i32) {
    %c0_i32 = arith.constant 0 : i32
    %c0_i32_0 = arith.constant 0 : i32
    %c0_i32_1 = arith.constant 0 : i32
    return %c0_i32, %c0_i32_0 : i32, i32
  }
  func.func @transform_6(%arg0: i32) -> (i32, i32) {
    %c0_i32 = arith.constant 0 : i32
    %c0_i32_0 = arith.constant 0 : i32
    %c0_i32_1 = arith.constant 0 : i32
    return %c0_i32, %c0_i32_0 : i32, i32
  }
  func.func @transform_7(%arg0: i32) -> (i32, i32) {
    %c0_i32 = arith.constant 0 : i32
    %c0_i32_0 = arith.constant 0 : i32
    return %arg0, %c0_i32 : i32, i32
  }
}

</mosaic_0001>

<bundles_post_ra>
// kernel: tpu_custom_call.1
= control target key start
LH: loop header
LB: loop body
LE: loop exit
PB: predicated region body
PF: predicated region fallthrough
CT: control target
= control target key end

     0   :  { %12 = vsyncpa [#allocation3], 0  ;;  %s4945_s0 = inlined_call_operand.hbm [shape: f32[512,128], index: 0, kind: input, shape index: {}]   ;;  %s4946_s1 = inlined_call_operand.vmem [shape: f32[1,128], index: 1, kind: input, shape index: {}]   ;;  %s4947_s2 = inlined_call_operand.vmem [shape: f32[1,128], index: 2, kind: input, shape index: {}]   ;;  %s4948_s3 = inlined_call_operand.hbm [shape: bf16[128,256], index: 3, kind: input, shape index: {}]   ;;  %s4949_s4 = inlined_call_operand.vmem [shape: f32[1,256], index: 4, kind: input, shape index: {}]   ;;  %s4950_s5 = inlined_call_operand.hbm [shape: bf16[128,128], index: 5, kind: input, shape index: {}]   ;;  %s4951_s6 = inlined_call_operand.vmem [shape: f32[1,128], index: 6, kind: input, shape index: {}]   ;;  %s4952_s7 = inlined_call_operand.hbm [shape: f32[512,128], index: 7, kind: output, shape index: {}]  }
   0x1   :  { %14 = vsyncpa [#allocation3 + $0x1], 0 }
   0x2   :  { %15 = vsyncpa [#allocation6], 0 }
   0x3   :  { %16 = vsyncpa [#allocation4], 0 }
   0x4   :  { %18 = vsyncpa [#allocation4 + $0x1], 0  ;;  %s3039_s24 = smov 0   ;;  %s3041_s25 = smov 0  }
   0x5   :  { %s3043_s26 = smov 0   ;;  %s3045_s27 = smov 0  }
   0x6 LB: > { %s3060_s28 = sadd.s32 4294967295, %s2985_s27   ;;  %s2395_s29 = sadd.s32 4294967294, %s2985_s27   ;;  %s2985_s27 = sphi %s3045_s27, %s5028_s27   ;;  %s2981_s26 = sphi %s3043_s26, %s5027_s26   ;;  %s2977_s25 = sphi %s3041_s25, %s5026_s25   ;;  %s2973_s24 = sphi %s3039_s24, %s5025_s24  }
   0x7   : > { %p44_p0 = scmp.ne.s32.totalorder %s2977_s25, %s2973_s24  ;;  %p4953_p1 = scmp.eq.s32.totalorder %s3060_s28, 0 }
   0x8   : > { %p200_p3 = scmp.eq.s32.totalorder %s2395_s29, 1  ;;  %p2396_p5 = scmp.ge.s32.totalorder %s2985_s27, 1 }
   0x9   : > { %p3069_p4 = por %p4953_p1, %p44_p0  ;;  %p207_p7 = scmp.lt.s32.totalorder %s2985_s27, 3 }
   0xa   : > { %p3074_p6 = por %p200_p3, %p44_p0  ;;  %s2987_s10 = smov [#allocation5]  }
   0xb   : > { %s4959_s30 = scalar_select %p3069_p4, 1, 0 }
   0xc   : > { %s4960_s8 = scalar_select %p3074_p6, 1, 0 }
   0xd   : > { %p3079_p8 = pnand %p2396_p5, %p207_p7  ;;  %s225_s11 = sshll.u32 %s2987_s10, 4  ;;  %s3083_s11 = int_to_ptr.vmem [resolvable:$true] %s225_s11 }
   0xe   : > { %s2988_s13 = smov [#allocation7]   ;;  %s2829_s17 = scalar_lea.hbm %s4948_s3, 2048 }
   0xf   : > { %p2542_p9 = pneg %p3079_p8  ;;  %s241_s14 = sshll.u32 %s2988_s13, 4  ;;  %s3094_s14 = int_to_ptr.vmem [resolvable:$true] %s241_s14 }
  0x10   : > { %p2830_p12 = scmp.ne.s32.totalorder %s4948_s3, %s2829_s17  ;;  %p2836_p5 = scmp.lt.u32.totalorder %s2829_s17, %s4948_s3 }
  0x11   : > { %p3090_p11 = pnand %p2542_p9, %p4953_p1 }
  0x13   : > { %p2831_p13 = pneg %p3090_p11 }
  0x15   : > { %p2832_p0 = pnand %p2831_p13, %p2830_p12 }
  0x17   : > { %p2833_p3 = pneg %p2832_p0 }
  0x19   : > { %p2838_p7 = pnand %p2836_p5, %p2833_p3 }
  0x1b   : > { %2841 = shalt.err (!%p2838_p7)
}
  0x1c   : > { %s2842_s22 = scalar_lea.vmem %s3083_s11, 2048  ;;  %p2850_p2 = scmp.lt.s32.totalorder %s3083_s11, %s3083_s11 }
  0x1d   : > { %p2843_p9 = scmp.ne.s32.totalorder %s3083_s11, %s2842_s22  ;;  %p2851_p12 = scmp.lt.s32.totalorder %s2842_s22, %s2842_s22 }
  0x1f   : > { %p2845_p10 = pnand %p2843_p9, %p2831_p13  ;;  %p2852_p0 = por %p2851_p12, %p2850_p2 }
  0x21   : > { %p2846_p1 = pneg %p2845_p10 }
  0x23   : > { %p2853_p6 = pnand %p2852_p0, %p2846_p1 }
  0x25   : > { %2856 = shalt.err (!%p2853_p6)
}
  0x26   : > { %s4954_s23 = smov 128   ;;  %s2990_s29 = smov 8  }
  0x27   : > { %2545 = dma.hbm_to_vmem [thread:$0]  (!%p3090_p11), %s4948_s3, 2048, %s3083_s11, [#allocation6], %s4954_s23, %s4954_s23, %s2990_s29  }
  0x28   : > { %s2857_s17 = scalar_lea.hbm %s4950_s5, 1024 }
  0x29   : > { %p2858_p1 = scmp.ne.s32.totalorder %s4950_s5, %s2857_s17  ;;  %p2864_p10 = scmp.lt.u32.totalorder %s2857_s17, %s4950_s5 }
  0x2b   : > { %p2860_p2 = pnand %p2858_p1, %p2831_p13 }
  0x2d   : > { %p2861_p6 = pneg %p2860_p2 }
  0x2f   : > { %p2866_p3 = pnand %p2864_p10, %p2861_p6 }
  0x31   : > { %2869 = shalt.err (!%p2866_p3)
}
  0x32   : > { %s2870_s11 = scalar_lea.vmem %s3094_s14, 1024  ;;  %p2878_p12 = scmp.lt.s32.totalorder %s3094_s14, %s3094_s14 }
  0x33   : > { %p2871_p5 = scmp.ne.s32.totalorder %s3094_s14, %s2870_s11  ;;  %p2879_p0 = scmp.lt.s32.totalorder %s2870_s11, %s2870_s11 }
  0x35   : > { %p2873_p7 = pnand %p2871_p5, %p2831_p13  ;;  %p2880_p1 = por %p2879_p0, %p2878_p12 }
  0x37   : > { %p2874_p9 = pneg %p2873_p7 }
  0x39   : > { %p2881_p2 = pnand %p2880_p1, %p2874_p9 }
  0x3b   : > { %2884 = shalt.err (!%p2881_p2)
}
  0x3c   : > { %s2991_s22 = smov 64   ;;  %s2992_s10 = smov 4  }
  0x3d   : > { %2548 = dma.hbm_to_vmem [thread:$0]  (!%p3090_p11), %s4950_s5, 1024, %s3094_s14, [#allocation6], %s2991_s22, %s2991_s22, %s2992_s10  }
  0x3e   : > { %s3152_s16 = sadd.s32 1, %s2985_s27   ;;  %s31_s18 = sadd.s32 1, %s2981_s26 }
  0x3f   : > { %s28_s17 = ssub.s32 %s2985_s27, %s3152_s16  ;;  %p38_p6 = scmp.ne.s32.totalorder %s2981_s26, %s2977_s25 }
  0x40   : > { %p29_p13 = scmp.eq.s32.totalorder %s28_s17, 0  ;;  %p39_p10 = scmp.eq.s32.totalorder %s2985_s27, 0 }
  0x41   : > { %p4963_p5 = scmp.eq.s32.totalorder %s3060_s28, 1  ;;  %p2559_p9 = scmp.lt.s32.totalorder %s2985_s27, 2 }
  0x42   : > { %s3161_s19 = scalar_select %p29_p13, %s2981_s26, %s31_s18  }
  0x43   : > { %p40_p3 = por %p39_p10, %p38_p6  ;;  %p3165_p7 = por %p4963_p5, %p38_p6 }
  0x44   : > { %s258_s12 = sand.u32 1, %s2981_s26   ;;  %s2440_s14 = sshll.u32 %s2985_s27, 12 }
  0x45   : > { %s4964_s20 = scalar_select %p3165_p7, 1, 0 }
  0x46   : > { %s2400_s21 = sshll.u32 %s258_s12, 8  ;;  %s3175_s10 = scalar_lea.hbm %s4945_s0, %s2440_s14 }
  0x47   : > { %s262_s13 = scalar_lea.vmem [#allocation2], %s2400_s21  ;;  %p3179_p11 = pnand %p2559_p9, %p40_p3 }
  0x48   : > { %s269_s15 = sshll.u32 %s262_s13, 4  ;;  %s3183_s18 = scalar_lea.sflag [#allocation3], %s258_s12  ;;  %s3177_s15 = int_to_ptr.vmem [resolvable:$true] %s269_s15 }
  0x49   : > { %s2885_s23 = scalar_lea.hbm %s3175_s10, 4096  ;;  %p2887_p0 = pneg %p3179_p11 }
  0x4a   : > { %p2886_p12 = scmp.ne.s32.totalorder %s3175_s10, %s2885_s23  ;;  %s2890_s11 = scalar_lea.hbm %s4945_s0, 8192 }
  0x4b   : > { %p2891_p13 = scmp.lt.u32.totalorder %s3175_s10, %s4945_s0  ;;  %p2892_p6 = scmp.lt.u32.totalorder %s2890_s11, %s2885_s23 }
  0x4c   : > { %p2888_p1 = pnand %p2887_p0, %p2886_p12  ;;  %p2894_p3 = scmp.lt.u32.totalorder %s2885_s23, %s3175_s10 }
  0x4d   : > { %p2893_p10 = por %p2892_p6, %p2891_p13 }
  0x4e   : > { %p2889_p2 = pneg %p2888_p1 }
  0x4f   : > { %p2895_p5 = por %p2894_p3, %p2893_p10 }
  0x51   : > { %p2896_p9 = pnand %p2895_p5, %p2889_p2 }
  0x53   : > { %2899 = shalt.err (!%p2896_p9)
}
  0x54   : > { %s2900_s12 = scalar_lea.vmem %s3177_s15, 4096  ;;  %s2993_s21 = smov [#allocation2]  }
  0x55   : > { %p2901_p12 = scmp.ne.s32.totalorder %s3177_s15, %s2900_s12  ;;  %s2905_s14 = sshll.u32 %s2993_s21, 4  ;;  %s2906_s14 = int_to_ptr.vmem [resolvable:$false] %s2905_s14 }
  0x56   : > { %s2907_s22 = scalar_lea.vmem %s2906_s14, 8192  ;;  %p2908_p4 = scmp.lt.s32.totalorder %s3177_s15, %s2906_s14 }
  0x57   : > { %p2903_p1 = pnand %p2901_p12, %p2887_p0  ;;  %p2909_p13 = scmp.lt.s32.totalorder %s2907_s22, %s2900_s12 }
  0x59   : > { %p2904_p7 = pneg %p2903_p1  ;;  %p2910_p6 = por %p2909_p13, %p2908_p4 }
  0x5b   : > { %p2911_p10 = pnand %p2910_p6, %p2904_p7 }
  0x5d   : > { %2914 = shalt.err (!%p2911_p10)
}
  0x5e   : > { %s4966_s23 = smov 128   ;;  %281 = sbr.rel (%p3079_p8) target bundleno = 1137 (0x471), region = 48 }
  0x5f   : > { %2552 = dma.hbm_to_vmem [thread:$0]  (!%p3179_p11), %s3175_s10, 4096, %s3177_s15, %s3183_s18, %s4966_s23, %s4966_s23, %s2990_s29  }
  0x65   : > { %s3217_s11 = sand.u32 1, %s2977_s25   ;;  %p4967_p4 = scmp.ne.s32.totalorder %s4959_s30, 0 }
  0x66   : > { %s2404_s13 = sshll.u32 %s3217_s11, 8  ;;  %s284_s12 = scalar_lea.sflag [#allocation3], %s3217_s11 }
  0x67   : > { %s3223_s17 = scalar_lea.vmem [#allocation2], %s2404_s13 }
  0x68   : > { %2960 = dma.done.wait (%p4967_p4), %s284_s12, 4096  }
  0x69   : > { %2962 = vsyncadd (%p4967_p4), %s284_s12, 4294963200  ;;  %p4968_p7 = scmp.eq.s32.totalorder %s3060_s28, 0 }
  0x6b   : > { %2964 = dma.done.wait (%p4968_p7), [#allocation6], 3072   ;;  %p4969_p8 = pmov %p4968_p7 }
  0x6c   : > { %v3234_v0 = vld [vmem:[%s3223_s17] sm:$0xff]  ;;  %v3237_v1 = vld [vmem:[%s3223_s17 + $0x10] sm:$0xff]  ;;  %v3242_v2 = vld [vmem:[%s3223_s17 + $0x8] sm:$0xff]  ;;  %v489_v27 = vlaneseq  ;;  %s4830_s22 = scalar_lea.vmem [#allocation8], %s2404_s13  ;;  %s2441_s23 = sshll.u32 %s3060_s28, 12 }
  0x6d   : > { %2966 = vsyncadd (%p4969_p8), [#allocation6], 4294964224  ;;  %361 = vadd.xlane.f32.xlu0 %v3234_v0  ;;  %365 = vadd.xlane.f32.xlu1 %v3237_v1  ;;  %v3245_v3 = vld [vmem:[%s3223_s17 + $0x18] sm:$0xff]  ;;  %v3250_v4 = vld [vmem:[%s3223_s17 + $0x20] sm:$0xff]  ;;  %s2303_s13 = sshll.u32 %s4830_s22, 4  ;;  %s4895_s30 = scalar_lea.hbm %s4952_s7, %s2441_s23  ;;  %s4897_s13 = int_to_ptr.vmem [resolvable:$true] %s2303_s13 }
  0x6e   : > { %v3253_v5 = vld [vmem:[%s3223_s17 + $0x28] sm:$0xff]  ;;  %v3256_v6 = vld [vmem:[%s3223_s17 + $0x30] sm:$0xff]  ;;  %v3259_v7 = vld [vmem:[%s3223_s17 + $0x38] sm:$0xff]  ;;  %v3330_v28 = vand.u32 127, %v489_v27  ;;  %s2290_s28 = scalar_lea.sflag [#allocation4], %s3217_s11  ;;  %s2915_s9 = scalar_lea.vmem %s4897_s13, 4096 }
  0x6f   : > { %v3264_v8 = vld [vmem:[%s3223_s17 + $0x40] sm:$0xff]  ;;  %v3267_v9 = vld [vmem:[%s3223_s17 + $0x48] sm:$0xff]  ;;  %v3272_v10 = vld [vmem:[%s3223_s17 + $0x50] sm:$0xff]  ;;  %p2916_p11 = scmp.ne.s32.totalorder %s4897_s13, %s2915_s9  ;;  %p5022_p0 = scmp.ne.s32.totalorder %s4964_s20, 0 }
  0x70   : > { %v3277_v11 = vld [vmem:[%s3223_s17 + $0x58] sm:$0xff]  ;;  %v3282_v12 = vld [vmem:[%s3223_s17 + $0x60] sm:$0xff]  ;;  %v3285_v13 = vld [vmem:[%s3223_s17 + $0x68] sm:$0xff]  ;;  %vm491_vm0 = vcmp.lt.s32.totalorder %v3330_v28, 32  ;;  %s2996_s29 = smov [#allocation8]  }
  0x71   : > { %363 = vadd.xlane.f32.xlu0 %v3242_v2  ;;  %367 = vadd.xlane.f32.xlu1 %v3245_v3  ;;  %v3290_v14 = vld [vmem:[%s3223_s17 + $0x70] sm:$0xff]  ;;  %v3293_v15 = vld [vmem:[%s3223_s17 + $0x78] sm:$0xff]  ;;  %v3298_v16 = vld [vmem:[%s3223_s17 + $0x80] sm:$0xff]  ;;  %p2917_p2 = pnand %p2916_p11, %p5022_p0  ;;  %s2919_s10 = sshll.u32 %s2996_s29, 4  ;;  %s2920_s10 = int_to_ptr.vmem [resolvable:$false] %s2919_s10 }
  0x72   : > { %v3301_v17 = vld [vmem:[%s3223_s17 + $0x88] sm:$0xff]  ;;  %v3306_v18 = vld [vmem:[%s3223_s17 + $0x90] sm:$0xff]  ;;  %v3309_v19 = vld [vmem:[%s3223_s17 + $0x98] sm:$0xff]  ;;  %s2921_s15 = scalar_lea.vmem %s2920_s10, 8192  ;;  %p2922_p5 = scmp.lt.s32.totalorder %s4897_s13, %s2920_s10 }
  0x73   : > { %v3314_v20 = vld [vmem:[%s3223_s17 + $0xa0] sm:$0xff]  ;;  %v3317_v21 = vld [vmem:[%s3223_s17 + $0xa8] sm:$0xff]  ;;  %v2608_v26 = vld [vmem:[#allocation5 + $0x14] ss:$8 sps:$4 sm:$0xff]   ;;  %p2918_p3 = pneg %p2917_p2  ;;  %p2923_p9 = scmp.lt.s32.totalorder %s2921_s15, %s2915_s9 }
  0x74   : > { %v3322_v22 = vld [vmem:[%s3223_s17 + $0xc0] sm:$0xff]  ;;  %v3325_v23 = vld [vmem:[%s3223_s17 + $0xc8] sm:$0xff]  ;;  %v3344_v45 = vld [vmem:[%s3223_s17 + $0xb0] sm:$0xff] }
  0x75   : > { %369 = vadd.xlane.f32.xlu0 %v3250_v4  ;;  %371 = vadd.xlane.f32.xlu1 %v3253_v5  ;;  %v2605_v24 = vld [vmem:[#allocation5 + $0x4] ss:$8 sps:$4 sm:$0xff]   ;;  %v2607_v25 = vld [vmem:[#allocation5] ss:$8 sps:$4 sm:$0xff]   ;;  %v3360_v53 = vld [vmem:[%s3223_s17 + $0xb8] sm:$0xff]  ;;  %p2924_p12 = por %p2923_p9, %p2922_p5 }
  0x76   : > { %952 = vmatprep.subr.bf16.mxu0 %v2605_v24  ;;  %2514 = vmatprep.subr.bf16.mxu1 %v2605_v24  ;;  %v3372_v61 = vld [vmem:[%s3223_s17 + $0xd0] sm:$0xff] }
  0x77   : > { %953 = vmatpush1.bf16.msra.mxu0 %v2607_v25  ;;  %2522 = vmatpush1.bf16.msra.mxu1 %v2607_v25  ;;  %p2925_p1 = pnand %p2924_p12, %p2918_p3 }
  0x78   : > { %954 = vmatprep.subr.bf16.mxu0 %v2608_v26  ;;  %2515 = vmatprep.subr.bf16.mxu1 %v2608_v26  ;;  %v2611_v26 = vld [vmem:[#allocation5 + $0x24] ss:$8 sps:$4 sm:$0xff]  }
  0x79   : > { %373 = vadd.xlane.f32.xlu0 %v3256_v6  ;;  %375 = vadd.xlane.f32.xlu1 %v3259_v7 }
  0x7d   : > { %377 = vadd.xlane.f32.xlu0 %v3264_v8  ;;  %379 = vadd.xlane.f32.xlu1 %v3267_v9 }
  0x81   : > { %381 = vadd.xlane.f32.xlu0 %v3272_v10  ;;  %383 = vadd.xlane.f32.xlu1 %v3277_v11 }
  0x85   : > { %385 = vadd.xlane.f32.xlu0 %v3282_v12  ;;  %387 = vadd.xlane.f32.xlu1 %v3285_v13 }
  0x89   : > { %389 = vadd.xlane.f32.xlu0 %v3290_v14  ;;  %391 = vadd.xlane.f32.xlu1 %v3293_v15 }
  0x8d   : > { %393 = vadd.xlane.f32.xlu0 %v3298_v16  ;;  %395 = vadd.xlane.f32.xlu1 %v3301_v17 }
  0x91   : > { %397 = vadd.xlane.f32.xlu0 %v3306_v18  ;;  %399 = vadd.xlane.f32.xlu1 %v3309_v19 }
  0x95   : > { %401 = vadd.xlane.f32.xlu0 %v3314_v20  ;;  %403 = vadd.xlane.f32.xlu1 %v3317_v21 }
  0x99   : > { %409 = vadd.xlane.f32.xlu0 %v3322_v22  ;;  %411 = vadd.xlane.f32.xlu1 %v3325_v23 }
  0xfa   : > { %v362_v29 = vpop.xlane.xlu0 %361  ;;  %v366_v30 = vpop.xlane.xlu1 %365 }
  0xfb   : > { %v425_v31 = vmul.f32 0.03125, %v362_v29  ;;  %v427_v32 = vmul.f32 0.03125, %v366_v30 }
  0xfd   : > { %v457_v33 = vsub.f32 %v3234_v0, %v425_v31  ;;  %v459_v37 = vsub.f32 %v3237_v1, %v427_v32  ;;  %v2613_v32 = vld [vmem:[#allocation5 + $0x20] ss:$8 sps:$4 sm:$0xff]  }
  0xfe   : > { %v364_v34 = vpop.xlane.xlu0 %363  ;;  %v368_v35 = vpop.xlane.xlu1 %367 }
  0xff   : > { %v426_v36 = vmul.f32 0.03125, %v364_v34  ;;  %v3337_v38 = vsel %vm491_vm0, %v457_v33, 0.0  ;;  %v428_v39 = vmul.f32 0.03125, %v368_v35  ;;  %v3352_v47 = vsel %vm491_vm0, %v459_v37, 0.0  ;;  %v3394_v33 = vld [vmem:[%s3223_s17 + $0xe0] sm:$0xff] }
 0x100   : > { %v526_v40 = vmul.f32 %v3337_v38, %v3337_v38  ;;  %v528_v50 = vmul.f32 %v3352_v47, %v3352_v47 }
 0x101   : > { %v458_v41 = vsub.f32 %v3242_v2, %v426_v36  ;;  %v460_v44 = vsub.f32 %v3245_v3, %v428_v39  ;;  %v2610_v3 = vld [vmem:[#allocation5 + $0x10] ss:$8 sps:$4 sm:$0xff]   ;;  %v2614_v36 = vld [vmem:[#allocation5 + $0x34] ss:$8 sps:$4 sm:$0xff]  }
 0x102   : > { %558 = vadd.xlane.f32.xlu0 %v526_v40  ;;  %v370_v42 = vpop.xlane.xlu0 %369  ;;  %v372_v43 = vpop.xlane.xlu1 %371  ;;  %955 = vmatpush1.bf16.msra.mxu0 %v2610_v3  ;;  %v3404_v40 = vld [vmem:[%s3223_s17 + $0xe8] sm:$0xff] }
 0x103   : > { %v3348_v46 = vsel %vm491_vm0, %v458_v41, 0.0  ;;  %v429_v48 = vmul.f32 0.03125, %v370_v42  ;;  %v430_v55 = vmul.f32 0.03125, %v372_v43  ;;  %v3365_v56 = vsel %vm491_vm0, %v460_v44, 0.0  ;;  %2523 = vmatpush1.bf16.msra.mxu1 %v2610_v3  ;;  %956 = vmatprep.subr.bf16.mxu0 %v2611_v26 }
 0x104   : > { %v527_v49 = vmul.f32 %v3348_v46, %v3348_v46  ;;  %v529_v57 = vmul.f32 %v3365_v56, %v3365_v56  ;;  %2516 = vmatprep.subr.bf16.mxu1 %v2611_v26 }
 0x105   : > { %v461_v54 = vsub.f32 %v3250_v4, %v429_v48  ;;  %v462_v60 = vsub.f32 %v3253_v5, %v430_v55  ;;  %v3382_v4 = vld [vmem:[%s3223_s17 + $0xd8] sm:$0xff]  ;;  %v3416_v55 = vld [vmem:[%s3223_s17 + $0xf0] sm:$0xff] }
 0x106   : > { %405 = vadd.xlane.f32.xlu0 %v3344_v45  ;;  %560 = vadd.xlane.f32.xlu1 %v527_v49  ;;  %v374_v51 = vpop.xlane.xlu0 %373  ;;  %v376_v52 = vpop.xlane.xlu1 %375  ;;  %v2617_v49 = vld [vmem:[#allocation5 + $0x44] ss:$8 sps:$4 sm:$0xff]  }
 0x107   : > { %v3376_v62 = vsel %vm491_vm0, %v461_v54, 0.0  ;;  %v431_v63 = vmul.f32 0.03125, %v374_v51  ;;  %v432_v24 = vmul.f32 0.03125, %v376_v52  ;;  %v3387_v25 = vsel %vm491_vm0, %v462_v60, 0.0  ;;  %957 = vmatpush1.bf16.msra.mxu0 %v2613_v32  ;;  %2524 = vmatpush1.bf16.msra.mxu1 %v2613_v32  ;;  %v2619_v52 = vld [vmem:[#allocation5 + $0x40] ss:$8 sps:$4 sm:$0xff]  }
 0x108   : > { %v530_v0 = vmul.f32 %v3376_v62, %v3376_v62  ;;  %v531_v29 = vmul.f32 %v3387_v25, %v3387_v25  ;;  %958 = vmatprep.subr.bf16.mxu0 %v2614_v36  ;;  %2517 = vmatprep.subr.bf16.mxu1 %v2614_v36  ;;  %v2620_v60 = vld [vmem:[#allocation5 + $0x54] ss:$8 sps:$4 sm:$0xff]  }
 0x109   : > { %v463_v5 = vsub.f32 %v3256_v6, %v431_v63  ;;  %v464_v6 = vsub.f32 %v3259_v7, %v432_v24  ;;  %v2616_v7 = vld [vmem:[#allocation5 + $0x30] ss:$8 sps:$4 sm:$0xff]  }
 0x10a   : > { %562 = vadd.xlane.f32.xlu0 %v528_v50  ;;  %407 = vadd.xlane.f32.xlu1 %v3360_v53  ;;  %v378_v58 = vpop.xlane.xlu0 %377  ;;  %v380_v59 = vpop.xlane.xlu1 %379 }
 0x10b   : > { %v3398_v34 = vsel %vm491_vm0, %v463_v5, 0.0  ;;  %v433_v35 = vmul.f32 0.03125, %v378_v58  ;;  %v434_v42 = vmul.f32 0.03125, %v380_v59  ;;  %v3409_v43 = vsel %vm491_vm0, %v464_v6, 0.0  ;;  %959 = vmatpush1.bf16.msra.mxu0 %v2616_v7  ;;  %2525 = vmatpush1.bf16.msra.mxu1 %v2616_v7  ;;  %v2625_v6 = vld [vmem:[#allocation5 + $0x60] ss:$8 sps:$4 sm:$0xff]  }
 0x10c   : > { %v532_v37 = vmul.f32 %v3398_v34, %v3398_v34  ;;  %v533_v50 = vmul.f32 %v3409_v43, %v3409_v43  ;;  %960 = vmatprep.subr.bf16.mxu0 %v2617_v49  ;;  %2518 = vmatprep.subr.bf16.mxu1 %v2617_v49  ;;  %v2626_v7 = vld [vmem:[#allocation5 + $0x74] ss:$8 sps:$4 sm:$0xff]   ;;  %v2628_v49 = vld [vmem:[#allocation5 + $0x70] ss:$8 sps:$4 sm:$0xff]  }
 0x10d   : > { %v465_v41 = vsub.f32 %v3264_v8, %v433_v35  ;;  %v466_v54 = vsub.f32 %v3267_v9, %v434_v42 }
 0x10e   : > { %413 = vadd.xlane.f32.xlu0 %v3372_v61  ;;  %564 = vadd.xlane.f32.xlu1 %v529_v57  ;;  %v382_v1 = vpop.xlane.xlu0 %381  ;;  %v384_v2 = vpop.xlane.xlu1 %383 }
 0x10f   : > { %v435_v44 = vmul.f32 0.03125, %v382_v1  ;;  %v436_v8 = vmul.f32 0.03125, %v384_v2  ;;  %v3421_v58 = vsel %vm491_vm0, %v465_v41, 0.0  ;;  %961 = vmatpush1.bf16.msra.mxu0 %v2619_v52  ;;  %2526 = vmatpush1.bf16.msra.mxu1 %v2619_v52  ;;  %v2622_v1 = vld [vmem:[#allocation5 + $0x50] ss:$8 sps:$4 sm:$0xff]   ;;  %v3433_v5 = vsel %vm491_vm0, %v466_v54, 0.0 }
 0x110   : > { %v534_v63 = vmul.f32 %v3421_v58, %v3421_v58  ;;  %v3428_v2 = vld [vmem:[%s3223_s17 + $0xf8] sm:$0xff]  ;;  %962 = vmatprep.subr.bf16.mxu0 %v2620_v60  ;;  %2519 = vmatprep.subr.bf16.mxu1 %v2620_v60 }
 0x111   : > { %v467_v57 = vsub.f32 %v3272_v10, %v435_v44  ;;  %v468_v9 = vsub.f32 %v3277_v11, %v436_v8 }
 0x112   : > { %415 = vadd.xlane.f32.xlu1 %v3382_v4  ;;  %566 = vadd.xlane.f32.xlu0 %v530_v0  ;;  %v386_v30 = vpop.xlane.xlu0 %385  ;;  %v388_v31 = vpop.xlane.xlu1 %387 }
 0x113   : > { %v437_v59 = vmul.f32 0.03125, %v386_v30  ;;  %v438_v0 = vmul.f32 0.03125, %v388_v31  ;;  %v3437_v24 = vsel %vm491_vm0, %v467_v57, 0.0  ;;  %963 = vmatpush1.bf16.msra.mxu0 %v2622_v1  ;;  %2527 = vmatpush1.bf16.msra.mxu1 %v2622_v1  ;;  %v535_v30 = vmul.f32 %v3433_v5, %v3433_v5 }
 0x114   : > { %v536_v31 = vmul.f32 %v3437_v24, %v3437_v24  ;;  %v3447_v32 = vsel %vm491_vm0, %v468_v9, 0.0 }
 0x115   : > { %v469_v3 = vsub.f32 %v3282_v12, %v437_v59  ;;  %v470_v12 = vsub.f32 %v3285_v13, %v438_v0  ;;  %v537_v41 = vmul.f32 %v3447_v32, %v3447_v32 }
 0x116   : > { %568 = vadd.xlane.f32.xlu1 %v531_v29  ;;  %417 = vadd.xlane.f32.xlu0 %v3394_v33  ;;  %v390_v39 = vpop.xlane.xlu0 %389  ;;  %v392_v48 = vpop.xlane.xlu1 %391  ;;  %v2623_v29 = vld [vmem:[#allocation5 + $0x64] ss:$8 sps:$4 sm:$0xff]  }
 0x117   : > { %v439_v26 = vmul.f32 0.03125, %v390_v39  ;;  %v440_v36 = vmul.f32 0.03125, %v392_v48  ;;  %964 = vmatprep.subr.bf16.mxu0 %v2623_v29  ;;  %2520 = vmatprep.subr.bf16.mxu1 %v2623_v29  ;;  %v3460_v44 = vsel %vm491_vm0, %v470_v12, 0.0 }
 0x118   : > { %965 = vmatpush1.bf16.msra.mxu0 %v2625_v6  ;;  %2528 = vmatpush1.bf16.msra.mxu1 %v2625_v6  ;;  %v539_v57 = vmul.f32 %v3460_v44, %v3460_v44 }
 0x119   : > { %v471_v35 = vsub.f32 %v3290_v14, %v439_v26  ;;  %966 = vmatprep.subr.bf16.mxu0 %v2626_v7  ;;  %2521 = vmatprep.subr.bf16.mxu1 %v2626_v7 }
 0x11a   : > { %419 = vadd.xlane.f32.xlu1 %v3404_v40  ;;  %570 = vadd.xlane.f32.xlu0 %v532_v37  ;;  %v394_v51 = vpop.xlane.xlu0 %393  ;;  %v396_v10 = vpop.xlane.xlu1 %395  ;;  %v3452_v37 = vsel %vm491_vm0, %v469_v3, 0.0 }
 0x11b   : > { %v441_v39 = vmul.f32 0.03125, %v394_v51  ;;  %v538_v14 = vmul.f32 %v3452_v37, %v3452_v37  ;;  %v442_v42 = vmul.f32 0.03125, %v396_v10  ;;  %v3466_v51 = vsel %vm491_vm0, %v471_v35, 0.0 }
 0x11c   : > { %967 = vmatpush1.bf16.msra.mxu0 %v2628_v49  ;;  %2529 = vmatpush1.bf16.msra.mxu1 %v2628_v49 }
 0x11d   : > { %v473_v8 = vsub.f32 %v3298_v16, %v441_v39  ;;  %v474_v54 = vsub.f32 %v3301_v17, %v442_v42  ;;  %v2994_v17 = vmov 0  }
 0x11e   : > { %572 = vadd.xlane.f32.xlu1 %v533_v50  ;;  %421 = vadd.xlane.f32.xlu0 %v3416_v55  ;;  %v398_v11 = vpop.xlane.xlu0 %397  ;;  %v400_v13 = vpop.xlane.xlu1 %399  ;;  %v472_v50 = vsub.f32 %v3293_v15, %v440_v36  ;;  %v540_v15 = vmul.f32 %v3466_v51, %v3466_v51 }
 0x11f   : > { %v443_v52 = vmul.f32 0.03125, %v398_v11  ;;  %v444_v16 = vmul.f32 0.03125, %v400_v13  ;;  %984 = vmatprep.mubr.bf16.mxu0 %v2994_v17  ;;  %1104 = vmatprep.mubr.bf16.mxu1 %v2994_v17  ;;  %v3491_v26 = vsel %vm491_vm0, %v474_v54, 0.0 }
 0x120   : > { %v3476_v9 = vsel %vm491_vm0, %v472_v50, 0.0 }
 0x121   : > { %v475_v60 = vsub.f32 %v3306_v18, %v443_v52  ;;  %v476_v1 = vsub.f32 %v3309_v19, %v444_v16  ;;  %v541_v18 = vmul.f32 %v3476_v9, %v3476_v9  ;;  %v543_v19 = vmul.f32 %v3491_v26, %v3491_v26 }
 0x122   : > { %423 = vadd.xlane.f32.xlu1 %v3428_v2  ;;  %574 = vadd.xlane.f32.xlu0 %v534_v63  ;;  %v402_v48 = vpop.xlane.xlu0 %401  ;;  %v404_v59 = vpop.xlane.xlu1 %403  ;;  %v3480_v63 = vsel %vm491_vm0, %v473_v8, 0.0 }
 0x123   : > { %v445_v0 = vmul.f32 0.03125, %v402_v48  ;;  %v542_v3 = vmul.f32 %v3480_v63, %v3480_v63  ;;  %v446_v29 = vmul.f32 0.03125, %v404_v59  ;;  %v3496_v12 = vsel %vm491_vm0, %v475_v60, 0.0 }
 0x124   : > { %v544_v6 = vmul.f32 %v3496_v12, %v3496_v12  ;;  %v3504_v35 = vsel %vm491_vm0, %v476_v1, 0.0 }
 0x125   : > { %v477_v11 = vsub.f32 %v3314_v20, %v445_v0  ;;  %v478_v20 = vsub.f32 %v3317_v21, %v446_v29  ;;  %v545_v7 = vmul.f32 %v3504_v35, %v3504_v35 }
 0x126   : > { %576 = vadd.xlane.f32.xlu1 %v535_v30  ;;  %578 = vadd.xlane.f32.xlu0 %v536_v31  ;;  %v410_v10 = vpop.xlane.xlu0 %409  ;;  %v412_v31 = vpop.xlane.xlu1 %411 }
 0x127   : > { %v449_v30 = vmul.f32 0.03125, %v410_v10  ;;  %v450_v39 = vmul.f32 0.03125, %v412_v31  ;;  %v3510_v13 = vsel %vm491_vm0, %v477_v11, 0.0  ;;  %v3519_v21 = vsel %vm491_vm0, %v478_v20, 0.0 }
 0x128   : > { %v547_v42 = vmul.f32 %v3519_v21, %v3519_v21 }
 0x129   : > { %v481_v36 = vsub.f32 %v3322_v22, %v449_v30 }
 0x12a   : > { %580 = vadd.xlane.f32.xlu1 %v537_v41  ;;  %582 = vadd.xlane.f32.xlu0 %v538_v14  ;;  %v546_v41 = vmul.f32 %v3510_v13, %v3510_v13  ;;  %v482_v14 = vsub.f32 %v3325_v23, %v450_v39 }
 0x12b   : > { %v3523_v22 = vsel %vm491_vm0, %v481_v36, 0.0 }
 0x12c   : > { %v550_v48 = vmul.f32 %v3523_v22, %v3523_v22  ;;  %v3531_v49 = vsel %vm491_vm0, %v482_v14, 0.0 }
 0x12d   : > { %v551_v23 = vmul.f32 %v3531_v49, %v3531_v49 }
 0x12e   : > { %584 = vadd.xlane.f32.xlu1 %v539_v57  ;;  %586 = vadd.xlane.f32.xlu0 %v540_v15 }
 0x132   : > { %588 = vadd.xlane.f32.xlu1 %v541_v18  ;;  %590 = vadd.xlane.f32.xlu0 %v542_v3 }
 0x136   : > { %592 = vadd.xlane.f32.xlu1 %v543_v19  ;;  %594 = vadd.xlane.f32.xlu0 %v544_v6 }
 0x13a   : > { %596 = vadd.xlane.f32.xlu1 %v545_v7  ;;  %598 = vadd.xlane.f32.xlu0 %v546_v41 }
 0x13e   : > { %600 = vadd.xlane.f32.xlu1 %v547_v42  ;;  %606 = vadd.xlane.f32.xlu0 %v550_v48 }
 0x142   : > { %608 = vadd.xlane.f32.xlu1 %v551_v23 }
 0x18f   : > { %v559_v50 = vpop.xlane.xlu0 %558 }
 0x190   : > { %v622_v8 = vmul.f32 0.03125, %v559_v50 }
 0x192   : > { %v654_v52 = vadd.f32 1e-05, %v622_v8  ;;  %v3558_v8 = vld [vmem:[%s4946_s1] ss:$0 sm:$0xff] }
 0x193   : > { %v561_v54 = vpop.xlane.xlu1 %560  ;;  %v406_v57 = vpop.xlane.xlu0 %405 }
 0x194   : > { %2637 = vrsqrt.f32 %v654_v52  ;;  %v623_v15 = vmul.f32 0.03125, %v561_v54  ;;  %v447_v16 = vmul.f32 0.03125, %v406_v57 }
 0x196   : > { %v655_v59 = vadd.f32 1e-05, %v623_v15  ;;  %v479_v60 = vsub.f32 %v3344_v45, %v447_v16 }
 0x197   : > { %v408_v0 = vpop.xlane.xlu1 %407  ;;  %v563_v10 = vpop.xlane.xlu0 %562 }
 0x198   : > { %2639 = vrsqrt.f32 %v655_v59  ;;  %v448_v1 = vmul.f32 0.03125, %v408_v0  ;;  %v624_v18 = vmul.f32 0.03125, %v563_v10  ;;  %v3538_v3 = vsel %vm491_vm0, %v479_v60, 0.0 }
 0x199   : > { %v548_v11 = vmul.f32 %v3538_v3, %v3538_v3 }
 0x19a   : > { %v480_v29 = vsub.f32 %v3360_v53, %v448_v1  ;;  %v656_v30 = vadd.f32 1e-05, %v624_v18  ;;  %v3572_v1 = vld [vmem:[%s4947_s2] ss:$0 sm:$0xff] }
 0x19b   : > { %v565_v31 = vpop.xlane.xlu1 %564  ;;  %602 = vadd.xlane.f32.xlu0 %v548_v11  ;;  %v414_v19 = vpop.xlane.xlu0 %413 }
 0x19c   : > { %2641 = vrsqrt.f32 %v656_v30  ;;  %v625_v45 = vmul.f32 0.03125, %v565_v31  ;;  %v451_v6 = vmul.f32 0.03125, %v414_v19  ;;  %v3545_v20 = vsel %vm491_vm0, %v480_v29, 0.0 }
 0x19d   : > { %v549_v36 = vmul.f32 %v3545_v20, %v3545_v20 }
 0x19e   : > { %v2638_v39 = vpop.eup %2637  ;;  %v657_v7 = vadd.f32 1e-05, %v625_v45  ;;  %v483_v41 = vsub.f32 %v3372_v61, %v451_v6 }
 0x19f   : > { %604 = vadd.xlane.f32.xlu1 %v549_v36  ;;  %v416_v53 = vpop.xlane.xlu1 %415  ;;  %v567_v14 = vpop.xlane.xlu0 %566  ;;  %v718_v42 = vmul.f32 %v2638_v39, %v3337_v38 }
 0x1a0   : > { %2643 = vrsqrt.f32 %v657_v7  ;;  %v452_v48 = vmul.f32 0.03125, %v416_v53  ;;  %v626_v23 = vmul.f32 0.03125, %v567_v14  ;;  %v3553_v50 = vsel %vm491_vm0, %v483_v41, 0.0 }
 0x1a1   : > { %v552_v61 = vmul.f32 %v3553_v50, %v3553_v50  ;;  %v757_v59 = vmul.f32 %v3558_v8, %v718_v42 }
 0x1a2   : > { %v2640_v52 = vpop.eup %2639  ;;  %v484_v54 = vsub.f32 %v3382_v4, %v452_v48  ;;  %v658_v57 = vadd.f32 1e-05, %v626_v23 }
 0x1a3   : > { %v569_v38 = vpop.xlane.xlu1 %568  ;;  %610 = vadd.xlane.f32.xlu0 %v552_v61  ;;  %v418_v15 = vpop.xlane.xlu0 %417  ;;  %v719_v16 = vmul.f32 %v2640_v52, %v3348_v46  ;;  %v796_v19 = vadd.f32 %v3572_v1, %v757_v59 }
 0x1a4   : > { %2645 = vrsqrt.f32 %v658_v57  ;;  %v627_v60 = vmul.f32 0.03125, %v569_v38  ;;  %v453_v0 = vmul.f32 0.03125, %v418_v15  ;;  %v3567_v10 = vsel %vm491_vm0, %v484_v54, 0.0 }
 0x1a5   : > { %v553_v4 = vmul.f32 %v3567_v10, %v3567_v10  ;;  %v758_v18 = vmul.f32 %v3558_v8, %v719_v16 }
 0x1a6   : > { %v2642_v46 = vpop.eup %2641  ;;  %v659_v11 = vadd.f32 1e-05, %v627_v60  ;;  %v485_v29 = vsub.f32 %v3394_v33, %v453_v0 }
 0x1a7   : > { %612 = vadd.xlane.f32.xlu1 %v553_v4  ;;  %v420_v30 = vpop.xlane.xlu1 %419  ;;  %v571_v31 = vpop.xlane.xlu0 %570  ;;  %v797_v45 = vadd.f32 %v3572_v1, %v758_v18  ;;  %v720_v6 = vmul.f32 %v2642_v46, %v3352_v47 }
 0x1a8   : > { %2647 = vrsqrt.f32 %v659_v11  ;;  %v454_v36 = vmul.f32 0.03125, %v420_v30  ;;  %v628_v39 = vmul.f32 0.03125, %v571_v31  ;;  %v3583_v7 = vsel %vm491_vm0, %v485_v29, 0.0 }
 0x1a9   : > { %v828_v41 = vpack.c.bf16 %v797_v45, %v796_v19  ;;  %v554_v33 = vmul.f32 %v3583_v7, %v3583_v7  ;;  %v759_v61 = vmul.f32 %v3558_v8, %v720_v6 }
 0x1aa   : > { %v2644_v53 = vpop.eup %2643  ;;  %v486_v14 = vsub.f32 %v3404_v40, %v454_v36  ;;  %v660_v42 = vadd.f32 1e-05, %v628_v39 }
 0x1ab   : > { %v573_v48 = vpop.xlane.xlu1 %572  ;;  %985 = vmatmul.mubr.bf16.vlgmr.msra.gmra.mrb[0].mxu0 %v828_v41  ;;  %614 = vadd.xlane.f32.xlu0 %v554_v33  ;;  %v422_v23 = vpop.xlane.xlu0 %421  ;;  %v721_v47 = vmul.f32 %v2644_v53, %v3365_v56  ;;  %v798_v0 = vadd.f32 %v3572_v1, %v759_v61 }
 0x1ac   : > { %2649 = vrsqrt.f32 %v660_v42  ;;  %v629_v52 = vmul.f32 0.03125, %v573_v48  ;;  %v455_v54 = vmul.f32 0.03125, %v422_v23  ;;  %v3592_v57 = vsel %vm491_vm0, %v486_v14, 0.0  ;;  %994 = vmatprep.mubr.bf16.mxu0 %v2994_v17 }
 0x1ad   : > { %v555_v40 = vmul.f32 %v3592_v57, %v3592_v57  ;;  %v760_v38 = vmul.f32 %v3558_v8, %v721_v47 }
 0x1ae   : > { %v2646_v15 = vpop.eup %2645  ;;  %v661_v16 = vadd.f32 1e-05, %v629_v52  ;;  %v487_v56 = vsub.f32 %v3416_v55, %v455_v54 }
 0x1af   : > { %616 = vadd.xlane.f32.xlu1 %v555_v40  ;;  %v424_v59 = vpop.xlane.xlu1 %423  ;;  %v575_v60 = vpop.xlane.xlu0 %574  ;;  %v799_v4 = vadd.f32 %v3572_v1, %v760_v38  ;;  %v722_v18 = vmul.f32 %v2646_v15, %v3376_v62 }
 0x1b0   : > { %2651 = vrsqrt.f32 %v661_v16  ;;  %v456_v46 = vmul.f32 0.03125, %v424_v59  ;;  %v630_v11 = vmul.f32 0.03125, %v575_v60  ;;  %v3604_v29 = vsel %vm491_vm0, %v487_v56, 0.0 }
 0x1b1   : > { %v829_v30 = vpack.c.bf16 %v799_v4, %v798_v0  ;;  %v556_v55 = vmul.f32 %v3604_v29, %v3604_v29  ;;  %v761_v39 = vmul.f32 %v3558_v8, %v722_v18 }
 0x1b2   : > { %v2648_v31 = vpop.eup %2647  ;;  %v488_v19 = vsub.f32 %v3428_v2, %v456_v46  ;;  %v662_v45 = vadd.f32 1e-05, %v630_v11 }
 0x1b3   : > { %v577_v6 = vpop.xlane.xlu1 %576  ;;  %995 = vmatmul.mubr.bf16.gmra.mrb[4].mxu0 %v829_v30  ;;  %618 = vadd.xlane.f32.xlu0 %v556_v55  ;;  %v579_v36 = vpop.xlane.xlu0 %578  ;;  %v723_v62 = vmul.f32 %v2648_v31, %v3387_v25  ;;  %v800_v61 = vadd.f32 %v3572_v1, %v761_v39 }
 0x1b4   : > { %2653 = vrsqrt.f32 %v662_v45  ;;  %v631_v41 = vmul.f32 0.03125, %v577_v6  ;;  %v632_v33 = vmul.f32 0.03125, %v579_v36  ;;  %v3613_v53 = vsel %vm491_vm0, %v488_v19, 0.0  ;;  %1004 = vmatprep.mubr.bf16.mxu0 %v2994_v17 }
 0x1b5   : > { %v557_v2 = vmul.f32 %v3613_v53, %v3613_v53  ;;  %v762_v14 = vmul.f32 %v3558_v8, %v723_v62 }
 0x1b6   : > { %v2650_v42 = vpop.eup %2649  ;;  %v663_v48 = vadd.f32 1e-05, %v631_v41  ;;  %v664_v23 = vadd.f32 1e-05, %v632_v33 }
 0x1b7   : > { %620 = vadd.xlane.f32.xlu1 %v557_v2  ;;  %v581_v25 = vpop.xlane.xlu1 %580  ;;  %v583_v47 = vpop.xlane.xlu0 %582  ;;  %v801_v52 = vadd.f32 %v3572_v1, %v762_v14  ;;  %v724_v28 = vmul.f32 %v2650_v42, %v3398_v34 }
 0x1b8   : > { %2655 = vrsqrt.f32 %v663_v48  ;;  %v633_v54 = vmul.f32 0.03125, %v581_v25  ;;  %v634_v16 = vmul.f32 0.03125, %v583_v47 }
 0x1b9   : > { %v830_v40 = vpack.c.bf16 %v801_v52, %v800_v61  ;;  %2657 = vrsqrt.f32 %v664_v23  ;;  %v763_v0 = vmul.f32 %v3558_v8, %v724_v28 }
 0x1ba   : > { %v2652_v38 = vpop.eup %2651  ;;  %v665_v15 = vadd.f32 1e-05, %v633_v54  ;;  %v666_v46 = vadd.f32 1e-05, %v634_v16 }
 0x1bb   : > { %v585_v56 = vpop.xlane.xlu1 %584  ;;  %1005 = vmatmul.mubr.bf16.gmra.mrb[8].mxu0 %v830_v40  ;;  %v587_v59 = vpop.xlane.xlu0 %586  ;;  %v725_v60 = vmul.f32 %v2652_v38, %v3409_v43  ;;  %v802_v31 = vadd.f32 %v3572_v1, %v763_v0 }
 0x1bc   : > { %2659 = vrsqrt.f32 %v665_v15  ;;  %v635_v4 = vmul.f32 0.03125, %v585_v56  ;;  %1014 = vmatprep.mubr.bf16.mxu0 %v2994_v17  ;;  %v636_v62 = vmul.f32 0.03125, %v587_v59 }
 0x1bd   : > { %v764_v34 = vmul.f32 %v3558_v8, %v725_v60 }
 0x1be   : > { %v2654_v18 = vpop.eup %2653  ;;  %v667_v11 = vadd.f32 1e-05, %v635_v4  ;;  %v668_v23 = vadd.f32 1e-05, %v636_v62 }
 0x1bf   : > { %v589_v30 = vpop.xlane.xlu1 %588  ;;  %v591_v55 = vpop.xlane.xlu0 %590  ;;  %v803_v19 = vadd.f32 %v3572_v1, %v764_v34  ;;  %v726_v45 = vmul.f32 %v2654_v18, %v3421_v58 }
 0x1c0   : > { %2661 = vrsqrt.f32 %v667_v11  ;;  %v637_v43 = vmul.f32 0.03125, %v589_v30  ;;  %v638_v16 = vmul.f32 0.03125, %v591_v55 }
 0x1c1   : > { %v831_v6 = vpack.c.bf16 %v803_v19, %v802_v31  ;;  %2663 = vrsqrt.f32 %v666_v46  ;;  %v765_v2 = vmul.f32 %v3558_v8, %v726_v45 }
 0x1c2   : > { %v2656_v36 = vpop.eup %2655  ;;  %v669_v42 = vadd.f32 1e-05, %v637_v43  ;;  %v670_v18 = vadd.f32 1e-05, %v638_v16 }
 0x1c3   : > { %v593_v39 = vpop.xlane.xlu1 %592  ;;  %1015 = vmatmul.mubr.bf16.gmra.mrb[12].mxu0 %v831_v6  ;;  %v595_v41 = vpop.xlane.xlu0 %594  ;;  %v727_v33 = vmul.f32 %v2656_v36, %v3433_v5  ;;  %v804_v61 = vadd.f32 %v3572_v1, %v765_v2 }
 0x1c4   : > { %v2658_v14 = vpop.eup %2657  ;;  %1024 = vmatprep.mubr.bf16.mxu0 %v2994_v17  ;;  %2665 = vrsqrt.f32 %v669_v42  ;;  %v639_v54 = vmul.f32 0.03125, %v593_v39  ;;  %v640_v36 = vmul.f32 0.03125, %v595_v41 }
 0x1c5   : > { %v766_v48 = vmul.f32 %v3558_v8, %v727_v33  ;;  %v728_v28 = vmul.f32 %v2658_v14, %v3437_v24  ;;  %2667 = vrsqrt.f32 %v668_v23 }
 0x1c6   : > { %v2660_v58 = vpop.eup %2659  ;;  %v671_v4 = vadd.f32 1e-05, %v639_v54  ;;  %v672_v14 = vadd.f32 1e-05, %v640_v36 }
 0x1c7   : > { %v597_v25 = vpop.xlane.xlu1 %596  ;;  %v599_v47 = vpop.xlane.xlu0 %598  ;;  %v805_v52 = vadd.f32 %v3572_v1, %v766_v48  ;;  %v729_v5 = vmul.f32 %v2660_v58, %v3447_v32  ;;  %v767_v60 = vmul.f32 %v3558_v8, %v728_v28 }
 0x1c8   : > { %2669 = vrsqrt.f32 %v671_v4  ;;  %v641_v31 = vmul.f32 0.03125, %v597_v25 }
 0x1c9   : > { %v832_v40 = vpack.c.bf16 %v805_v52, %v804_v61  ;;  %v768_v38 = vmul.f32 %v3558_v8, %v729_v5  ;;  %v806_v30 = vadd.f32 %v3572_v1, %v767_v60  ;;  %v642_v61 = vmul.f32 0.03125, %v599_v47 }
 0x1ca   : > { %v2662_v15 = vpop.eup %2661  ;;  %v673_v33 = vadd.f32 1e-05, %v641_v31 }
 0x1cb   : > { %v601_v56 = vpop.xlane.xlu1 %600  ;;  %1025 = vmatmul.mubr.bf16.gmra.mrb[16].mxu0 %v832_v40  ;;  %v607_v59 = vpop.xlane.xlu0 %606  ;;  %v807_v24 = vadd.f32 %v3572_v1, %v768_v38  ;;  %v731_v32 = vmul.f32 %v2662_v15, %v3460_v44  ;;  %v674_v15 = vadd.f32 1e-05, %v642_v61 }
 0x1cc   : > { %v2664_v0 = vpop.eup %2663  ;;  %v646_v34 = vmul.f32 0.03125, %v607_v59  ;;  %1034 = vmatprep.mubr.bf16.mxu0 %v2994_v17  ;;  %v643_v41 = vmul.f32 0.03125, %v601_v56 }
 0x1cd   : > { %v730_v55 = vmul.f32 %v2664_v0, %v3452_v37  ;;  %v833_v45 = vpack.c.bf16 %v807_v24, %v806_v30  ;;  %v770_v43 = vmul.f32 %v3558_v8, %v731_v32 }
 0x1ce   : > { %v678_v46 = vadd.f32 1e-05, %v646_v34  ;;  %v2666_v6 = vpop.eup %2665  ;;  %v675_v54 = vadd.f32 1e-05, %v643_v41  ;;  %v2629_v41 = vld [vmem:[#allocation7] sm:$0xff]  }
 0x1cf   : > { %v609_v11 = vpop.xlane.xlu1 %608  ;;  %v769_v44 = vmul.f32 %v3558_v8, %v730_v55  ;;  %v2668_v39 = vpop.eup %2667  ;;  %v809_v37 = vadd.f32 %v3572_v1, %v770_v43  ;;  %v733_v2 = vmul.f32 %v2666_v6, %v3476_v9  ;;  %2466 = vmatprep.subr.bf16.mxu1 %v2629_v41 }
 0x1d0   : > { %v647_v19 = vmul.f32 0.03125, %v609_v11  ;;  %2671 = vrsqrt.f32 %v678_v46  ;;  %v732_v48 = vmul.f32 %v2668_v39, %v3466_v51 }
 0x1d1   : > { %2673 = vrsqrt.f32 %v670_v18  ;;  %v808_v42 = vadd.f32 %v3572_v1, %v769_v44  ;;  %v772_v23 = vmul.f32 %v3558_v8, %v733_v2 }
 0x1d2   : > { %v679_v62 = vadd.f32 1e-05, %v647_v19  ;;  %v2670_v25 = vpop.eup %2669  ;;  %v771_v28 = vmul.f32 %v3558_v8, %v732_v48 }
 0x1d3   : > { %1035 = vmatmul.mubr.bf16.gmra.mrb[20].mxu0 %v833_v45  ;;  %v834_v58 = vpack.c.bf16 %v809_v37, %v808_v42  ;;  %v811_v51 = vadd.f32 %v3572_v1, %v772_v23  ;;  %v735_v40 = vmul.f32 %v2670_v25, %v3491_v26 }
 0x1d4   : > { %2675 = vrsqrt.f32 %v679_v62  ;;  %1044 = vmatprep.mubr.bf16.mxu0 %v2994_v17  ;;  %v810_v16 = vadd.f32 %v3572_v1, %v771_v28 }
 0x1d5   : > { %2677 = vrsqrt.f32 %v673_v33 }
 0x1d6   : > { %2679 = vrsqrt.f32 %v672_v14  ;;  %v835_v60 = vpack.c.bf16 %v811_v51, %v810_v16 }
 0x1d7   : > { %2681 = vrsqrt.f32 %v675_v54 }
 0x1d8   : > { %2683 = vrsqrt.f32 %v674_v15 }
 0x1da   : > { %v2672_v52 = vpop.eup %2671 }
 0x1db   : > { %1045 = vmatmul.mubr.bf16.gmra.mrb[24].mxu0 %v834_v58  ;;  %v2674_v5 = vpop.eup %2673  ;;  %v742_v9 = vmul.f32 %v2672_v52, %v3523_v22  ;;  %v774_v22 = vmul.f32 %v3558_v8, %v735_v40  ;;  %v2630_v40 = vld [vmem:[#allocation7 + $0x8] sm:$0xff]  }
 0x1dc   : > { %1054 = vmatprep.mubr.bf16.mxu0 %v2994_v17  ;;  %v734_v59 = vmul.f32 %v2674_v5, %v3480_v63 }
 0x1dd   : > { %v781_v56 = vmul.f32 %v3558_v8, %v742_v9  ;;  %v813_v63 = vadd.f32 %v3572_v1, %v774_v22 }
 0x1de   : > { %v2676_v38 = vpop.eup %2675  ;;  %v773_v24 = vmul.f32 %v3558_v8, %v734_v59 }
 0x1df   : > { %v743_v47 = vmul.f32 %v2676_v38, %v3531_v49  ;;  %v2678_v4 = vpop.eup %2677  ;;  %v820_v26 = vadd.f32 %v3572_v1, %v781_v56 }
 0x1e0   : > { %v2680_v49 = vpop.eup %2679  ;;  %v737_v18 = vmul.f32 %v2678_v4, %v3504_v35  ;;  %v812_v46 = vadd.f32 %v3572_v1, %v773_v24  ;;  %v2631_v4 = vld [vmem:[#allocation7 + $0x10] sm:$0xff]  }
 0x1e1   : > { %v782_v0 = vmul.f32 %v3558_v8, %v743_v47  ;;  %v736_v11 = vmul.f32 %v2680_v49, %v3496_v12  ;;  %v2682_v31 = vpop.eup %2681 }
 0x1e2   : > { %v836_v30 = vpack.c.bf16 %v813_v63, %v812_v46  ;;  %v776_v55 = vmul.f32 %v3558_v8, %v737_v18  ;;  %v2684_v45 = vpop.eup %2683  ;;  %v739_v35 = vmul.f32 %v2682_v31, %v3519_v21 }
 0x1e3   : > { %1055 = vmatmul.mubr.bf16.gmra.mrb[28].mxu0 %v835_v60  ;;  %v821_v34 = vadd.f32 %v3572_v1, %v782_v0  ;;  %v775_v19 = vmul.f32 %v3558_v8, %v736_v11  ;;  %v738_v12 = vmul.f32 %v2684_v45, %v3510_v13 }
 0x1e4   : > { %1064 = vmatprep.mubr.bf16.mxu0 %v2994_v17  ;;  %v815_v43 = vadd.f32 %v3572_v1, %v776_v55  ;;  %v778_v62 = vmul.f32 %v3558_v8, %v739_v35 }
 0x1e5   : > { %v840_v32 = vpack.c.bf16 %v821_v34, %v820_v26  ;;  %v814_v6 = vadd.f32 %v3572_v1, %v775_v19  ;;  %v777_v44 = vmul.f32 %v3558_v8, %v738_v12  ;;  %v2633_v12 = vld [vmem:[#allocation7 + $0x20] sm:$0xff]  }
 0x1e6   : > { %v817_v39 = vadd.f32 %v3572_v1, %v778_v62 }
 0x1e7   : > { %1105 = vmatmul.mubr.bf16.vlgmr.msra.gmra.mrb[0].mxu1 %v840_v32  ;;  %v837_v36 = vpack.c.bf16 %v815_v43, %v814_v6  ;;  %v816_v33 = vadd.f32 %v3572_v1, %v777_v44 }
 0x1e8   : > { %1114 = vmatprep.mubr.bf16.mxu1 %v2994_v17  ;;  %2467 = vmatpush3.bf16.msra.mxu1 %v2629_v41 }
 0x1e9   : > { %v838_v37 = vpack.c.bf16 %v817_v39, %v816_v33  ;;  %2468 = vmatprep.subr.bf16.mxu1 %v2630_v40  ;;  %v2634_v33 = vld [vmem:[#allocation7 + $0x28] sm:$0xff]  }
 0x1eb   : > { %1065 = vmatmul.mubr.bf16.gmra.mrb[32].mxu0 %v836_v30  ;;  %v2632_v30 = vld [vmem:[#allocation7 + $0x18] sm:$0xff]  }
 0x1ec   : > { %1074 = vmatprep.mubr.bf16.mxu0 %v2994_v17  ;;  %2469 = vmatpush3.bf16.msra.mxu1 %v2630_v40 }
 0x1ed   : > { %2470 = vmatprep.subr.bf16.mxu1 %v2631_v4 }
 0x1f0   : > { %2471 = vmatpush3.bf16.msra.mxu1 %v2631_v4 }
 0x1f1   : > { %2472 = vmatprep.subr.bf16.mxu1 %v2632_v30 }
 0x1f3   : > { %1075 = vmatmul.mubr.bf16.gmra.mrb[36].mxu0 %v837_v36 }
 0x1f4   : > { %1084 = vmatprep.mubr.bf16.mxu0 %v2994_v17  ;;  %2473 = vmatpush3.bf16.msra.mxu1 %v2632_v30 }
 0x1f5   : > { %2474 = vmatprep.subr.bf16.mxu1 %v2633_v12 }
 0x1f8   : > { %2475 = vmatpush3.bf16.msra.mxu1 %v2633_v12 }
 0x1f9   : > { %2476 = vmatprep.subr.bf16.mxu1 %v2634_v33 }
 0x1fb   : > { %1085 = vmatmul.mubr.bf16.gmra.mrb[40].mxu0 %v838_v37 }
 0x1fc   : > { %1094 = vmatprep.mubr.bf16.mxu0 %v2994_v17  ;;  %2477 = vmatpush3.bf16.msra.mxu1 %v2634_v33 }
 0x228   : > { %v603_v21 = vpop.xlane.xlu0 %602 }
 0x229   : > { %v644_v2 = vmul.f32 0.03125, %v603_v21 }
 0x22b   : > { %v676_v14 = vadd.f32 1e-05, %v644_v2 }
 0x22c   : > { %v605_v13 = vpop.xlane.xlu1 %604 }
 0x22d   : > { %2685 = vrsqrt.f32 %v676_v14  ;;  %v645_v42 = vmul.f32 0.03125, %v605_v13 }
 0x22f   : > { %v677_v48 = vadd.f32 1e-05, %v645_v42  ;;  %v2635_v42 = vld [vmem:[#allocation7 + $0x30] sm:$0xff]  }
 0x230   : > { %v611_v58 = vpop.xlane.xlu0 %610  ;;  %2478 = vmatprep.subr.bf16.mxu1 %v2635_v42 }
 0x231   : > { %2687 = vrsqrt.f32 %v677_v48  ;;  %v648_v23 = vmul.f32 0.03125, %v611_v58  ;;  %2479 = vmatpush3.bf16.msra.mxu1 %v2635_v42 }
 0x233   : > { %v680_v25 = vadd.f32 1e-05, %v648_v23  ;;  %v2636_v23 = vld [vmem:[#allocation7 + $0x38] sm:$0xff]  }
 0x234   : > { %v613_v61 = vpop.xlane.xlu1 %612  ;;  %2480 = vmatprep.subr.bf16.mxu1 %v2636_v23 }
 0x235   : > { %2689 = vrsqrt.f32 %v680_v25  ;;  %v649_v52 = vmul.f32 0.03125, %v613_v61  ;;  %2481 = vmatpush3.bf16.msra.mxu1 %v2636_v23 }
 0x237   : > { %v2686_v28 = vpop.eup %2685  ;;  %v681_v5 = vadd.f32 1e-05, %v649_v52 }
 0x238   : > { %v615_v54 = vpop.xlane.xlu0 %614  ;;  %v740_v9 = vmul.f32 %v2686_v28, %v3538_v3 }
 0x239   : > { %2691 = vrsqrt.f32 %v681_v5  ;;  %v650_v51 = vmul.f32 0.03125, %v615_v54 }
 0x23a   : > { %v779_v56 = vmul.f32 %v3558_v8, %v740_v9 }
 0x23b   : > { %v2688_v38 = vpop.eup %2687  ;;  %v682_v15 = vadd.f32 1e-05, %v650_v51 }
 0x23c   : > { %v617_v16 = vpop.xlane.xlu1 %616  ;;  %v741_v47 = vmul.f32 %v2688_v38, %v3545_v20  ;;  %v818_v26 = vadd.f32 %v3572_v1, %v779_v56 }
 0x23d   : > { %2693 = vrsqrt.f32 %v682_v15  ;;  %v651_v59 = vmul.f32 0.03125, %v617_v16 }
 0x23e   : > { %v780_v60 = vmul.f32 %v3558_v8, %v741_v47 }
 0x23f   : > { %v2690_v0 = vpop.eup %2689  ;;  %v683_v22 = vadd.f32 1e-05, %v651_v59 }
 0x240   : > { %v619_v3 = vpop.xlane.xlu0 %618  ;;  %v819_v34 = vadd.f32 %v3572_v1, %v780_v60  ;;  %v744_v24 = vmul.f32 %v2690_v0, %v3553_v50 }
 0x241   : > { %2695 = vrsqrt.f32 %v683_v22  ;;  %v652_v20 = vmul.f32 0.03125, %v619_v3 }
 0x242   : > { %v839_v49 = vpack.c.bf16 %v819_v34, %v818_v26  ;;  %v783_v11 = vmul.f32 %v3558_v8, %v744_v24 }
 0x243   : > { %v2692_v32 = vpop.eup %2691  ;;  %v684_v63 = vadd.f32 1e-05, %v652_v20 }
 0x244   : > { %v621_v18 = vpop.xlane.xlu1 %620  ;;  %1095 = vmatmul.mubr.bf16.gmra.mrb[44].mxu0 %v839_v49  ;;  %v745_v46 = vmul.f32 %v2692_v32, %v3567_v10  ;;  %v822_v45 = vadd.f32 %v3572_v1, %v783_v11 }
 0x245   : > { %2697 = vrsqrt.f32 %v684_v63  ;;  %v653_v55 = vmul.f32 0.03125, %v621_v18 }
 0x246   : > { %v784_v31 = vmul.f32 %v3558_v8, %v745_v46 }
 0x247   : > { %v2694_v50 = vpop.eup %2693  ;;  %v685_v19 = vadd.f32 1e-05, %v653_v55 }
 0x248   : > { %v823_v43 = vadd.f32 %v3572_v1, %v784_v31  ;;  %v746_v35 = vmul.f32 %v2694_v50, %v3583_v7 }
 0x249   : > { %2699 = vrsqrt.f32 %v685_v19 }
 0x24a   : > { %v841_v6 = vpack.c.bf16 %v823_v43, %v822_v45  ;;  %v785_v62 = vmul.f32 %v3558_v8, %v746_v35 }
 0x24b   : > { %v2696_v10 = vpop.eup %2695 }
 0x24c   : > { %1115 = vmatmul.mubr.bf16.gmra.mrb[4].mxu1 %v841_v6  ;;  %v747_v36 = vmul.f32 %v2696_v10, %v3592_v57  ;;  %v824_v37 = vadd.f32 %v3572_v1, %v785_v62 }
 0x24d   : > { %1124 = vmatprep.mubr.bf16.mxu1 %v2994_v17 }
 0x24e   : > { %v786_v44 = vmul.f32 %v3558_v8, %v747_v36 }
 0x24f   : > { %v2698_v39 = vpop.eup %2697 }
 0x250   : > { %v825_v7 = vadd.f32 %v3572_v1, %v786_v44  ;;  %v748_v21 = vmul.f32 %v2698_v39, %v3604_v29 }
 0x252   : > { %v842_v2 = vpack.c.bf16 %v825_v7, %v824_v37  ;;  %v787_v13 = vmul.f32 %v3558_v8, %v748_v21 }
 0x253   : > { %v2700_v57 = vpop.eup %2699 }
 0x254   : > { %1125 = vmatmul.mubr.bf16.gmra.mrb[8].mxu1 %v842_v2  ;;  %v749_v14 = vmul.f32 %v2700_v57, %v3613_v53  ;;  %v826_v41 = vadd.f32 %v3572_v1, %v787_v13  ;;  %v863_v53 = vshrl.u32 %v489_v27, 7  ;;  %v4957_v2 = vmov 1.0  }
 0x255   : > { %1134 = vmatprep.mubr.bf16.mxu1 %v2994_v17  ;;  %v860_v17 = vld [vmem:[%s4949_s4] sm:$0x3] }
 0x256   : > { %v788_v48 = vmul.f32 %v3558_v8, %v749_v14  ;;  %v868_v25 = vsub.s32 1, %v863_v53  ;;  %v864_v26 = vsub.s32 0, %v863_v53 }
 0x258   : > { %v827_v29 = vadd.f32 %v3572_v1, %v788_v48  ;;  %v3715_v61 = vrot.slane %v860_v17, %v868_v25  ;;  %v3736_v46 = vrot.slane %v860_v17, %v864_v26 }
 0x25a   : > { %v843_v58 = vpack.c.bf16 %v827_v29, %v826_v41 }
 0x25c   : > { %1135 = vmatmul.mubr.bf16.gmra.mrb[12].mxu1 %v843_v58 }
 0x27e   : > { %v986_v8 = vpop.f32.mrb[0].mxu0 }
 0x27f   : > { %v988_v52 = vpop.f32.mrb[1].mxu0  ;;  %v3753_v12 = vadd.f32 %v986_v8, %v3736_v46 }
 0x280   : > { %v989_v28 = vadd.f32 %v988_v52, %v3715_v61  ;;  %v990_v5 = vpop.f32.mrb[2].mxu0 }
 0x281   : > { %v992_v1 = vpop.f32.mrb[3].mxu0  ;;  %v3759_v44 = vadd.f32 %v990_v5, %v3736_v46 }
 0x282   : > { %v1145_v54 = vmul.f32 0.70710677, %v989_v28  ;;  %v993_v9 = vadd.f32 %v992_v1, %v3715_v61  ;;  %v3756_v62 = vmul.f32 0.5, %v989_v28 }
 0x283   : > { %4970 = vst [vmem:[#allocation12_spill] sm:$0xff] %v3759_v44 }
 0x284   : > { %v1241_v51 = vand.u32 2147483647, %v1145_v54  ;;  %v1146_v40 = vmul.f32 0.70710677, %v993_v9  ;;  %vm1177_vm1 = vcmp.lt.f32.partialorder %v1145_v54, 0.0  ;;  %v3779_v42 = vmul.f32 0.5, %v993_v9 }
 0x285   : > { %v3773_v57 = vsel %vm1177_vm1, -1.0, %v4957_v2 }
 0x286   : > { %v1273_v38 = vmul.f32 0.3275911, %v1241_v51  ;;  %v1242_v27 = vand.u32 2147483647, %v1146_v40  ;;  %v996_v15 = vpop.f32.mrb[4].mxu0  ;;  %v1657_v63 = vsub.f32 0.0, %v1241_v51 }
 0x287   : > { %v998_v56 = vpop.f32.mrb[5].mxu0  ;;  %vm1178_vm2 = vcmp.lt.f32.partialorder %v1146_v40, 0.0  ;;  %v3783_v58 = vadd.f32 %v996_v15, %v3736_v46 }
 0x288   : > { %v1305_v16 = vadd.f32 1.0, %v1273_v38  ;;  %v1274_v47 = vmul.f32 0.3275911, %v1242_v27  ;;  %v999_v59 = vadd.f32 %v998_v56, %v3715_v61  ;;  %v3720_v60 = vpop.f32.mrb[6].mxu0  ;;  %v1658_v31 = vsub.f32 0.0, %v1242_v27 }
 0x289   : > { %v1002_v22 = vpop.f32.mrb[7].mxu0  ;;  %v1689_v35 = vmul.f32 %v1657_v63, %v1241_v51  ;;  %v3777_v13 = vsel %vm1178_vm2, -1.0, %v4957_v2  ;;  %v3809_v56 = vadd.f32 %v3720_v60, %v3736_v46 }
 0x28a   : > { %2701 = vrcp.f32 %v1305_v16  ;;  %v1306_v0 = vadd.f32 1.0, %v1274_v47  ;;  %v3722_v4 = vmul.f32 0.70710677, %v999_v59  ;;  %v3725_v3 = vadd.f32 %v1002_v22, %v3715_v61 }
 0x28b   : > { %v1690_v39 = vmul.f32 %v1658_v31, %v1242_v27  ;;  %v1721_v41 = vmul.f32 1.442695, %v1689_v35  ;;  %v3787_v17 = vmul.f32 0.5, %v999_v59 }
 0x28c   : > { %2703 = vrcp.f32 %v1306_v0  ;;  %v1243_v34 = vand.u32 2147483647, %v3722_v4  ;;  %v3729_v24 = vmul.f32 0.70710677, %v3725_v3  ;;  %vm1179_vm3 = vcmp.lt.f32.partialorder %v3722_v4, 0.0 }
 0x28d   : > { %v1723_v5 = vmul.f32 1.442695, %v1690_v39  ;;  %v3818_v63 = vsel %vm1179_vm3, -1.0, %v4957_v2  ;;  %v3826_v60 = vmul.f32 0.5, %v3725_v3 }
 0x28e   : > { %v3731_v20 = vpop.f32.mrb[8].mxu0  ;;  %v1275_v49 = vmul.f32 0.3275911, %v1243_v34  ;;  %v3734_v32 = vand.u32 2147483647, %v3729_v24  ;;  %v1659_v25 = vsub.f32 0.0, %v1243_v34 }
 0x28f   : > { %v1008_v18 = vpop.f32.mrb[9].mxu0  ;;  %vm1180_vm4 = vcmp.lt.f32.partialorder %v3729_v24, 0.0  ;;  %v3844_v35 = vadd.f32 %v3731_v20, %v3736_v46 }
 0x290   : > { %v1307_v11 = vadd.f32 1.0, %v1275_v49  ;;  %v1276_v30 = vmul.f32 0.3275911, %v3734_v32  ;;  %v3739_v55 = vpop.f32.mrb[10].mxu0  ;;  %v3742_v50 = vadd.f32 %v1008_v18, %v3715_v61  ;;  %v1660_v27 = vsub.f32 0.0, %v3734_v32 }
 0x291   : > { %v1012_v19 = vpop.f32.mrb[11].mxu0  ;;  %v1691_v47 = vmul.f32 %v1659_v25, %v1243_v34  ;;  %v3823_v34 = vsel %vm1180_vm4, -1.0, %v4957_v2  ;;  %4971 = vst [vmem:[#allocation13_spill] sm:$0xff] %v3844_v35 }
 0x292   : > { %2705 = vrcp.f32 %v1307_v11  ;;  %v1308_v45 = vadd.f32 1.0, %v1276_v30  ;;  %v3747_v6 = vmul.f32 0.70710677, %v3742_v50  ;;  %v3750_v10 = vadd.f32 %v1012_v19, %v3715_v61 }
 0x293   : > { %v1692_v31 = vmul.f32 %v1660_v27, %v3734_v32 }
 0x294   : > { %v3744_v43 = vpop.eup %2701  ;;  %2707 = vrcp.f32 %v1308_v45  ;;  %v3762_v33 = vand.u32 2147483647, %v3747_v6  ;;  %v3765_v37 = vmul.f32 0.70710677, %v3750_v10  ;;  %v1725_v45 = vmul.f32 1.442695, %v1691_v47 }
 0x295   : > { %v1369_v36 = vmul.f32 1.0614054, %v3744_v43  ;;  %v1727_v25 = vmul.f32 1.442695, %v1692_v31  ;;  %vm1181_vm5 = vcmp.lt.f32.partialorder %v3747_v6, 0.0 }
 0x296   : > { %v3767_v7 = vpop.f32.mrb[12].mxu0  ;;  %v3769_v21 = vpop.eup %2703  ;;  %v1277_v23 = vmul.f32 0.3275911, %v3762_v33  ;;  %v3790_v8 = vand.u32 2147483647, %v3765_v37  ;;  %vm1182_vm6 = vcmp.lt.f32.partialorder %v3765_v37, 0.0 }
 0x297   : > { %v1401_v14 = vadd.f32 -1.4531521, %v1369_v36  ;;  %v1018_v48 = vpop.f32.mrb[13].mxu0  ;;  %v1370_v29 = vmul.f32 1.0614054, %v3769_v21  ;;  %v3848_v36 = vadd.f32 %v3739_v55, %v3736_v46  ;;  %v3919_v37 = vadd.f32 %v3767_v7, %v3736_v46 }
 0x298   : > { %v3792_v52 = vpop.f32.mrb[14].mxu0  ;;  %v1309_v1 = vadd.f32 1.0, %v1277_v23  ;;  %v3795_v54 = vadd.f32 %v1018_v48, %v3715_v61  ;;  %v1278_v40 = vmul.f32 0.3275911, %v3790_v8  ;;  %v1661_v23 = vsub.f32 0.0, %v3762_v33 }
 0x299   : > { %v1433_v53 = vmul.f32 %v3744_v43, %v1401_v14  ;;  %v1402_v28 = vadd.f32 -1.4531521, %v1370_v29  ;;  %v1022_v9 = vpop.f32.mrb[15].mxu0  ;;  %4972 = vst [vmem:[#allocation14_spill] sm:$0xff] %v3848_v36  ;;  %4974 = vst [vmem:[#allocation15_spill] sm:$0xff] %v3919_v37 }
 0x29a   : > { %2709 = vrcp.f32 %v1309_v1  ;;  %v3803_v15 = vmul.f32 0.70710677, %v3795_v54  ;;  %v1310_v59 = vadd.f32 1.0, %v1278_v40  ;;  %v3837_v19 = vadd.f32 %v1022_v9, %v3715_v61 }
 0x29b   : > { %v1465_v51 = vadd.f32 1.4214138, %v1433_v53  ;;  %v1434_v38 = vmul.f32 %v3769_v21, %v1402_v28  ;;  %2711 = vpow2.f32 %v1721_v41  ;;  %v3857_v53 = vmul.f32 0.5, %v3742_v50 }
 0x29c   : > { %v3805_v16 = vpop.eup %2705  ;;  %2713 = vpow2.f32 %v1723_v5  ;;  %v3834_v4 = vand.u32 2147483647, %v3803_v15  ;;  %v3860_v20 = vmul.f32 0.70710677, %v3837_v19  ;;  %v1662_v1 = vsub.f32 0.0, %v3790_v8 }
 0x29d   : > { %v1497_v0 = vmul.f32 %v3744_v43, %v1465_v51  ;;  %v1466_v22 = vadd.f32 1.4214138, %v1434_v38  ;;  %v1371_v26 = vmul.f32 1.0614054, %v3805_v16  ;;  %2715 = vrcp.f32 %v1310_v59 }
 0x29e   : > { %v3813_v49 = vpop.f32.mrb[16].mxu0  ;;  %v3830_v11 = vpop.eup %2707  ;;  %v1279_v41 = vmul.f32 0.3275911, %v3834_v4  ;;  %2717 = vpow2.f32 %v1725_v45  ;;  %v3866_v9 = vand.u32 2147483647, %v3860_v20  ;;  %v3875_v59 = vsel %vm1181_vm5, -1.0, %v4957_v2 }
 0x29f   : > { %v3828_v18 = vpop.f32.mrb[17].mxu0  ;;  %v1403_v30 = vadd.f32 -1.4531521, %v1371_v26  ;;  %v1372_v3 = vmul.f32 1.0614054, %v3830_v11  ;;  %v1498_v14 = vmul.f32 %v3769_v21, %v1466_v22  ;;  %v1693_v22 = vmul.f32 %v1661_v23, %v3762_v33 }
 0x2a0   : > { %v3839_v24 = vpop.f32.mrb[18].mxu0  ;;  %v1529_v39 = vadd.f32 -0.28449672, %v1497_v0  ;;  %v1311_v28 = vadd.f32 1.0, %v1279_v41  ;;  %v3884_v45 = vmul.f32 0.5, %v3750_v10  ;;  %v1694_v33 = vmul.f32 %v1662_v1, %v3790_v8 }
 0x2a1   : > { %v3850_v32 = vpop.f32.mrb[19].mxu0  ;;  %v1435_v48 = vmul.f32 %v3805_v16, %v1403_v30  ;;  %v1404_v29 = vadd.f32 -1.4531521, %v1372_v3  ;;  %v1530_v40 = vadd.f32 -0.28449672, %v1498_v14  ;;  %v3902_v8 = vadd.f32 %v3828_v18, %v3715_v61 }
 0x2a2   : > { %v1561_v50 = vmul.f32 %v3744_v43, %v1529_v39  ;;  %2719 = vrcp.f32 %v1311_v28  ;;  %v1280_v3 = vmul.f32 0.3275911, %v3866_v9  ;;  %v1729_v2 = vmul.f32 1.442695, %v1693_v22 }
 0x2a3   : > { %v1467_v55 = vadd.f32 1.4214138, %v1435_v48  ;;  %v1436_v5 = vmul.f32 %v3830_v11, %v1404_v29  ;;  %2721 = vpow2.f32 %v1727_v25  ;;  %v1562_v28 = vmul.f32 %v3769_v21, %v1530_v40 }
 0x2a4   : > { %v3868_v51 = vpop.eup %2709  ;;  %v1593_v23 = vadd.f32 0.2548296, %v1561_v50  ;;  %v1312_v25 = vadd.f32 1.0, %v1280_v3  ;;  %v1663_v40 = vsub.f32 0.0, %v3834_v4  ;;  %vm1183_vm7 = vcmp.lt.f32.partialorder %v3803_v15, 0.0 }
 0x2a5   : > { %v1499_v38 = vmul.f32 %v3805_v16, %v1467_v55  ;;  %v2712_v6 = vpop.eup %2711  ;;  %v1468_v47 = vadd.f32 1.4214138, %v1436_v5  ;;  %v1373_v0 = vmul.f32 1.0614054, %v3868_v51  ;;  %vm1184_vm8 = vcmp.lt.f32.partialorder %v3860_v20, 0.0 }
 0x2a6   : > { %v3872_v27 = vpop.f32.mrb[20].mxu0  ;;  %v3881_v30 = vpop.eup %2713  ;;  %2723 = vrcp.f32 %v1312_v25  ;;  %v1594_v25 = vadd.f32 0.2548296, %v1562_v28  ;;  %v1695_v7 = vmul.f32 %v1663_v40, %v3834_v4 }
 0x2a7   : > { %v3879_v26 = vpop.f32.mrb[21].mxu0  ;;  %v1531_v31 = vadd.f32 -0.28449672, %v1499_v38  ;;  %v3889_v14 = vpop.eup %2715  ;;  %v1500_v48 = vmul.f32 %v3830_v11, %v1468_v47  ;;  %v1405_v41 = vadd.f32 -1.4531521, %v1373_v0  ;;  %2725 = vpow2.f32 %v1729_v2 }
 0x2a8   : > { %v3887_v39 = vpop.f32.mrb[22].mxu0  ;;  %v1374_v10 = vmul.f32 1.0614054, %v3889_v14  ;;  %v2718_v18 = vpop.eup %2717 }
 0x2a9   : > { %v3894_v29 = vpop.f32.mrb[23].mxu0  ;;  %v1563_v55 = vmul.f32 %v3805_v16, %v1531_v31  ;;  %v1532_v5 = vadd.f32 -0.28449672, %v1500_v48  ;;  %v1437_v38 = vmul.f32 %v3868_v51, %v1405_v41  ;;  %v4973_v31 = vmov 1.0  }
 0x2aa   : > { %v1406_v0 = vadd.f32 -1.4531521, %v1374_v10  ;;  %v3908_v3 = vsel %vm1182_vm6, -1.0, %v4973_v31  ;;  %v1625_v48 = vmul.f32 %v3744_v43, %v1593_v23  ;;  %v4028_v15 = vsel %vm1184_vm8, -1.0, %v4973_v31 }
 0x2ab   : > { %v1595_v47 = vadd.f32 0.2548296, %v1563_v55  ;;  %v1564_v1 = vmul.f32 %v3830_v11, %v1532_v5  ;;  %v1469_v50 = vadd.f32 1.4214138, %v1437_v38  ;;  %v1731_v55 = vmul.f32 1.442695, %v1694_v33 }
 0x2ac   : > { %v1438_v41 = vmul.f32 %v3889_v14, %v1406_v0  ;;  %v3923_v35 = vpop.eup %2719  ;;  %v3926_v33 = vmul.f32 0.70710677, %v3902_v8  ;;  %v1785_v37 = vmul.f32 %v2712_v6, %v1625_v48 }
 0x2ad   : > { %v1627_v22 = vmul.f32 %v3805_v16, %v1595_v47  ;;  %v1596_v5 = vadd.f32 0.2548296, %v1564_v1  ;;  %v1501_v38 = vmul.f32 %v3868_v51, %v1469_v50  ;;  %v1375_v0 = vmul.f32 1.0614054, %v3923_v35  ;;  %v2722_v50 = vpop.eup %2721 }
 0x2ae   : > { %v3914_v10 = vpop.f32.mrb[24].mxu0  ;;  %v1470_v16 = vadd.f32 1.4214138, %v1438_v41  ;;  %v1626_v41 = vmul.f32 %v3769_v21, %v1594_v25  ;;  %2727 = vpow2.f32 %v1731_v55  ;;  %v3944_v40 = vand.u32 2147483647, %v3926_v33 }
 0x2af   : > { %v3921_v36 = vpop.f32.mrb[25].mxu0  ;;  %v1787_v43 = vmul.f32 %v2718_v18, %v1627_v22  ;;  %v1628_v28 = vmul.f32 %v3830_v11, %v1596_v5  ;;  %v1533_v47 = vadd.f32 -0.28449672, %v1501_v38  ;;  %v3938_v22 = vadd.f32 %v3792_v52, %v3736_v46 }
 0x2b0   : > { %v3928_v23 = vpop.f32.mrb[26].mxu0  ;;  %v1502_v2 = vmul.f32 %v3889_v14, %v1470_v16  ;;  %v1407_v5 = vadd.f32 -1.4531521, %v1375_v0  ;;  %v1733_v16 = vmul.f32 1.442695, %v1695_v7  ;;  %v3947_v52 = vpop.eup %2723  ;;  %vm1185_vm9 = vcmp.lt.f32.partialorder %v3926_v33, 0.0 }
 0x2b1   : > { %v3933_v1 = vpop.f32.mrb[27].mxu0  ;;  %v1819_v44 = vsub.f32 1.0, %v1787_v43  ;;  %4975 = vst [vmem:[#allocation16_spill] sm:$0xff] %v3938_v22  ;;  %v1788_v18 = vmul.f32 %v2722_v50, %v1628_v28  ;;  %v1565_v11 = vmul.f32 %v3868_v51, %v1533_v47  ;;  %v1817_v22 = vsub.f32 1.0, %v1785_v37 }
 0x2b2   : > { %v1534_v4 = vadd.f32 -0.28449672, %v1502_v2  ;;  %v1439_v43 = vmul.f32 %v3923_v35, %v1407_v5  ;;  %v1281_v28 = vmul.f32 0.3275911, %v3944_v40  ;;  %v1376_v0 = vmul.f32 1.0614054, %v3947_v52 }
 0x2b3   : > { %v1851_v38 = vmul.f32 %v1819_v44, %v3818_v63  ;;  %v1820_v6 = vsub.f32 1.0, %v1788_v18  ;;  %v1597_v48 = vadd.f32 0.2548296, %v1565_v11  ;;  %v1786_v44 = vmul.f32 %v3881_v30, %v1626_v41 }
 0x2b4   : > { %v1566_v25 = vmul.f32 %v3889_v14, %v1534_v4  ;;  %v1471_v55 = vadd.f32 1.4214138, %v1439_v43  ;;  %v1313_v2 = vadd.f32 1.0, %v1281_v28  ;;  %v3962_v18 = vadd.f32 %v3850_v32, %v3715_v61  ;;  %v2726_v4 = vpop.eup %2725 }
 0x2b5   : > { %v1915_v21 = vadd.f32 1.0, %v1851_v38  ;;  %v1852_v63 = vmul.f32 %v1820_v6, %v3823_v34  ;;  %v1629_v37 = vmul.f32 %v3868_v51, %v1597_v48  ;;  %v1408_v41 = vadd.f32 -1.4531521, %v1376_v0 }
 0x2b6   : > { %v3951_v47 = vpop.f32.mrb[28].mxu0  ;;  %v1598_v30 = vadd.f32 0.2548296, %v1566_v25  ;;  %v1503_v34 = vmul.f32 %v3923_v35, %v1471_v55  ;;  %2729 = vrcp.f32 %v1313_v2  ;;  %v1849_v51 = vmul.f32 %v1817_v22, %v3773_v57 }
 0x2b7   : > { %v3956_v50 = vpop.f32.mrb[29].mxu0  ;;  %v1947_v7 = vmul.f32 %v1915_v21, %v3787_v17  ;;  %v1916_v5 = vadd.f32 1.0, %v1852_v63  ;;  %v1664_v17 = vsub.f32 0.0, %v3866_v9  ;;  %v1440_v21 = vmul.f32 %v3947_v52, %v1408_v41 }
 0x2b8   : > { %v3964_v11 = vpop.f32.mrb[30].mxu0  ;;  %v1535_v43 = vadd.f32 -0.28449672, %v1503_v34  ;;  %v1818_v28 = vsub.f32 1.0, %v1786_v44  ;;  %v1789_v63 = vmul.f32 %v2726_v4, %v1629_v37  ;;  %2731 = vpow2.f32 %v1733_v16  ;;  %v2728_v2 = vpop.eup %2727 }
 0x2b9   : > { %v3967_v38 = vpop.f32.mrb[31].mxu0  ;;  %v3970_v6 = vmul.f32 %v1947_v7, %v3783_v58  ;;  %v1948_v48 = vmul.f32 %v1916_v5, %v3826_v60  ;;  %v3982_v58 = vmul.f32 0.70710677, %v3962_v18  ;;  %v1630_v57 = vmul.f32 %v3889_v14, %v1598_v30 }
 0x2ba   : > { %v3974_v32 = vpop.f32.mrb[0].mxu1  ;;  %v1567_v60 = vmul.f32 %v3923_v35, %v1535_v43  ;;  %v1472_v22 = vadd.f32 1.4214138, %v1440_v21  ;;  %v3994_v44 = vmul.f32 0.5, %v3795_v54  ;;  %v1696_v16 = vmul.f32 %v1664_v17, %v3866_v9 }
 0x2bb   : > { %v3979_v25 = vpop.f32.mrb[1].mxu1  ;;  %v3987_v0 = vmul.f32 %v1948_v48, %v3809_v56  ;;  %v1250_v37 = vand.u32 2147483647, %v3982_v58  ;;  %v1913_v56 = vadd.f32 1.0, %v1849_v51  ;;  %v1665_v34 = vsub.f32 0.0, %v3944_v40 }
 0x2bc   : > { %v3984_v55 = vpop.f32.mrb[2].mxu1  ;;  %v1504_v30 = vmul.f32 %v3947_v52, %v1472_v22  ;;  %v1850_v54 = vmul.f32 %v1818_v28, %v3777_v13  ;;  %v4011_v9 = vsel %vm1183_vm7, -1.0, %v4973_v31  ;;  %v1599_v4 = vadd.f32 0.2548296, %v1567_v60 }
 0x2bd   : > { %v3991_v7 = vpop.f32.mrb[3].mxu1  ;;  %v1282_v17 = vmul.f32 0.3275911, %v1250_v37  ;;  %v1821_v51 = vsub.f32 1.0, %v1789_v63  ;;  %v1790_v43 = vmul.f32 %v2728_v2, %v1630_v57  ;;  %v4017_v21 = vadd.f32 %v3813_v49, %v3736_v46 }
 0x2be   : > { %v3999_v5 = vpop.f32.mrb[32].mxu0  ;;  %v4021_v22 = vadd.f32 %v3879_v26, %v3715_v61  ;;  %v1536_v28 = vadd.f32 -0.28449672, %v1504_v30  ;;  %v1735_v60 = vmul.f32 1.442695, %v1696_v16  ;;  %v4031_v63 = vmul.f32 %v1913_v56, %v3756_v62 }
 0x2bf   : > { %v4005_v41 = vpop.f32.mrb[33].mxu0  ;;  %4977 = vst [vmem:[#allocation18_spill] sm:$0xff] %v4017_v21  ;;  %v1314_v14 = vadd.f32 1.0, %v1282_v17  ;;  %v4034_v49 = vmul.f32 0.5, %v3837_v19  ;;  %v1697_v57 = vmul.f32 %v1665_v34, %v3944_v40  ;;  %v1914_v21 = vadd.f32 1.0, %v1850_v54 }
 0x2c0   : > { %v4013_v48 = vpop.f32.mrb[34].mxu0  ;;  %v4038_v26 = vmul.f32 0.70710677, %v4021_v22  ;;  %v4040_v2 = vpop.eup %2729  ;;  %v1631_v20 = vmul.f32 %v3923_v35, %v1599_v4  ;;  %v4045_v16 = vadd.f32 %v3894_v29, %v3715_v61  ;;  %v1853_v62 = vmul.f32 %v1821_v51, %v3875_v59 }
 0x2c1   : > { %4976 = vst [vmem:[#allocation17_spill] sm:$0xff] %v4013_v48  ;;  %v4023_v13 = vpop.f32.mrb[35].mxu0  ;;  %2733 = vrcp.f32 %v1314_v14  ;;  %v1822_v56 = vsub.f32 1.0, %v1790_v43  ;;  %v1377_v19 = vmul.f32 1.0614054, %v4040_v2  ;;  %v4050_v40 = vmul.f32 0.5, %v3902_v8 }
 0x2c2   : > { %v2732_v30 = vpop.eup %2731  ;;  %v1568_v34 = vmul.f32 %v3947_v52, %v1536_v28  ;;  %v4055_v35 = vand.u32 2147483647, %v4038_v26  ;;  %v4058_v14 = vmul.f32 0.70710677, %v4045_v16  ;;  %2735 = vpow2.f32 %v1735_v60 }
 0x2c3   : > { %v1409_v59 = vadd.f32 -1.4531521, %v1377_v19  ;;  %v1737_v54 = vmul.f32 1.442695, %v1697_v57  ;;  %v1666_v4 = vsub.f32 0.0, %v1250_v37  ;;  %v4065_v8 = vmul.f32 %v1914_v21, %v3779_v42 }
 0x2c4   : > { %v1791_v51 = vmul.f32 %v2732_v30, %v1631_v20  ;;  %v1283_v33 = vmul.f32 0.3275911, %v4055_v35  ;;  %v4069_v43 = vand.u32 2147483647, %v4058_v14  ;;  %v1917_v28 = vadd.f32 1.0, %v1853_v62 }
 0x2c5   : > { %v1854_v48 = vmul.f32 %v1822_v56, %v3908_v3  ;;  %v1441_v60 = vmul.f32 %v4040_v2, %v1409_v59  ;;  %v1600_v19 = vadd.f32 0.2548296, %v1568_v34  ;;  %v4080_v42 = vadd.f32 %v3839_v24, %v3736_v46 }
 0x2c6   : > { %v4060_v29 = vpop.f32.mrb[36].mxu0  ;;  %v1315_v21 = vadd.f32 1.0, %v1283_v33  ;;  %v1284_v20 = vmul.f32 0.3275911, %v4069_v43  ;;  %2737 = vpow2.f32 %v1737_v54  ;;  %vm1186_vm10 = vcmp.lt.f32.partialorder %v3982_v58, 0.0 }
 0x2c7   : > { %4978 = vst [vmem:[#allocation19_spill] sm:$0xff] %v4060_v29  ;;  %v4062_v17 = vpop.f32.mrb[37].mxu0  ;;  %v4073_v29 = vsel %vm1185_vm9, -1.0, %v4973_v31  ;;  %4980 = vst [vmem:[#allocation21_spill] sm:$0xff] %v4080_v42  ;;  %v1473_v62 = vadd.f32 1.4214138, %v1441_v60  ;;  %v1698_v3 = vmul.f32 %v1666_v4, %v1250_v37  ;;  %v4092_v33 = vadd.f32 %v3872_v27, %v3736_v46 }
 0x2c8   : > { %v4076_v57 = vpop.f32.mrb[38].mxu0  ;;  %v1823_v56 = vsub.f32 1.0, %v1791_v51  ;;  %v4087_v59 = vmul.f32 0.5, %v3962_v18  ;;  %2739 = vrcp.f32 %v1315_v21  ;;  %v1316_v34 = vadd.f32 1.0, %v1284_v20 }
 0x2c9   : > { %4979 = vst [vmem:[#allocation20_spill] sm:$0xff] %v4076_v57  ;;  %v4083_v30 = vpop.f32.mrb[39].mxu0  ;;  %v1918_v57 = vadd.f32 1.0, %v1854_v48  ;;  %v1505_v24 = vmul.f32 %v4040_v2, %v1473_v62  ;;  %4982 = vst [vmem:[#allocation23_spill] sm:$0xff] %v4092_v33  ;;  %v4096_v60 = vadd.f32 %v3921_v36, %v3715_v61  ;;  %v4101_v58 = vmul.f32 %v1917_v28, %v3857_v53 }
 0x2ca   : > { %4981 = vst [vmem:[#allocation22_spill] sm:$0xff] %v4083_v30  ;;  %v1632_v18 = vmul.f32 %v3947_v52, %v1600_v19  ;;  %v4105_v37 = vsel %vm1186_vm10, -1.0, %v4973_v31  ;;  %v4109_v48 = vadd.f32 %v3933_v1, %v3715_v61  ;;  %v1739_v36 = vmul.f32 1.442695, %v1698_v3 }
 0x2cb   : > { %v4098_v54 = vpop.eup %2733  ;;  %v4116_v51 = vadd.f32 %v3887_v39, %v3736_v46  ;;  %2741 = vrcp.f32 %v1316_v34  ;;  %v1855_v52 = vmul.f32 %v1823_v56, %v4011_v9  ;;  %v1667_v28 = vsub.f32 0.0, %v4055_v35 }
 0x2cc   : > { %v1378_v4 = vmul.f32 1.0614054, %v4098_v54  ;;  %v4123_v19 = vmul.f32 0.70710677, %v4096_v60  ;;  %v4126_v1 = vmul.f32 0.70710677, %v4109_v48  ;;  %v2736_v20 = vpop.eup %2735  ;;  %v4131_v62 = vmul.f32 %v1918_v57, %v3884_v45 }
 0x2cd   : > { %4984 = vst [vmem:[#allocation25_spill] sm:$0xff] %v4116_v51  ;;  %v1537_v39 = vadd.f32 -0.28449672, %v1505_v24  ;;  %v4134_v34 = vmul.f32 0.5, %v4021_v22  ;;  %v1792_v56 = vmul.f32 %v2736_v20, %v1632_v18  ;;  %vm1187_vm11 = vcmp.lt.f32.partialorder %v4038_v26, 0.0 }
 0x2ce   : > { %v4111_v27 = vpop.f32.mrb[40].mxu0  ;;  %v1410_v3 = vadd.f32 -1.4531521, %v1378_v4  ;;  %v4141_v51 = vand.u32 2147483647, %v4126_v1  ;;  %2743 = vpow2.f32 %v1739_v36  ;;  %vm1188_vm12 = vcmp.lt.f32.partialorder %v4058_v14, 0.0 }
 0x2cf   : > { %4983 = vst [vmem:[#allocation24_spill] sm:$0xff] %v4111_v27  ;;  %v4118_v53 = vpop.f32.mrb[41].mxu0  ;;  %v1253_v27 = vand.u32 2147483647, %v4123_v19  ;;  %v1668_v45 = vsub.f32 0.0, %v4069_v43  ;;  %v1919_v57 = vadd.f32 1.0, %v1855_v52  ;;  %v1699_v22 = vmul.f32 %v1667_v28, %v4055_v35 }
 0x2d0   : > { %4985 = vst [vmem:[#allocation26_spill] sm:$0xff] %v4118_v53  ;;  %v4128_v21 = vpop.f32.mrb[42].mxu0  ;;  %v1286_v18 = vmul.f32 0.3275911, %v4141_v51  ;;  %v2738_v4 = vpop.eup %2737  ;;  %v1569_v20 = vmul.f32 %v4040_v2, %v1537_v39  ;;  %v4151_v42 = vadd.f32 %v3956_v50, %v3715_v61  ;;  %v1977_v36 = vmul.f32 %v4031_v63, %v3753_v12 }
 0x2d1   : > { %4986 = vst [vmem:[#allocation27_spill] sm:$0xff] %v4128_v21  ;;  %v4136_v9 = vpop.f32.mrb[43].mxu0  ;;  %v1442_v21 = vmul.f32 %v4098_v54, %v1410_v3  ;;  %v1285_v24 = vmul.f32 0.3275911, %v1253_v27  ;;  %v4160_v35 = vsel %vm1187_vm11, -1.0, %v4973_v31  ;;  %v4165_v50 = vmul.f32 0.5, %v4045_v16 }
 0x2d2   : > { %4987 = vst [vmem:[#allocation28_spill] sm:$0xff] %v4136_v9  ;;  %v4155_v3 = vpop.eup %2739  ;;  %v1824_v9 = vsub.f32 1.0, %v1792_v56  ;;  %v1318_v28 = vadd.f32 1.0, %v1286_v18  ;;  %v4168_v53 = vmul.f32 0.70710677, %v4151_v42  ;;  %v4174_v26 = vsel %vm1188_vm12, -1.0, %v4973_v31 }
 0x2d3   : > { %v1474_v33 = vadd.f32 1.4214138, %v1442_v21  ;;  %v1317_v52 = vadd.f32 1.0, %v1285_v24  ;;  %v1379_v39 = vmul.f32 1.0614054, %v4155_v3  ;;  %v1700_v21 = vmul.f32 %v1668_v45, %v4069_v43 }
 0x2d4   : > { %v1741_v63 = vmul.f32 1.442695, %v1699_v22  ;;  %v4179_v24 = vmul.f32 %v1919_v57, %v3994_v44  ;;  %v1601_v43 = vadd.f32 0.2548296, %v1569_v20  ;;  %v1856_v45 = vmul.f32 %v1824_v9, %v4028_v15 }
 0x2d5   : > { %v1506_v12 = vmul.f32 %v4098_v54, %v1474_v33  ;;  %2745 = vrcp.f32 %v1317_v52  ;;  %v4176_v56 = vpop.eup %2741  ;;  %v1411_v16 = vadd.f32 -1.4531521, %v1379_v39  ;;  %v4185_v33 = vadd.f32 %v3914_v10, %v3736_v46 }
 0x2d6   : > { %2747 = vrcp.f32 %v1318_v28  ;;  %v1380_v18 = vmul.f32 1.0614054, %v4176_v56  ;;  %v4188_v14 = vand.u32 2147483647, %v4168_v53  ;;  %v1743_v52 = vmul.f32 1.442695, %v1700_v21 }
 0x2d7   : > { %4988 = vst [vmem:[#allocation29_spill] sm:$0xff] %v4185_v33  ;;  %v1443_v22 = vmul.f32 %v4155_v3, %v1411_v16  ;;  %v1669_v30 = vsub.f32 0.0, %v1253_v27  ;;  %v4193_v44 = vadd.f32 %v3928_v23, %v3736_v46  ;;  %v1538_v57 = vadd.f32 -0.28449672, %v1506_v12  ;;  %v4991_v21 = vld [vmem:[#allocation12_spill] sm:$0xff] }
 0x2d8   : > { %2749 = vpow2.f32 %v1741_v63  ;;  %v1412_v15 = vadd.f32 -1.4531521, %v1380_v18  ;;  %v1287_v9 = vmul.f32 0.3275911, %v4188_v14  ;;  %v4196_v20 = vpop.eup %2743  ;;  %v1633_v10 = vmul.f32 %v4040_v2, %v1601_v43 }
 0x2d9   : > { %4989 = vst [vmem:[#allocation30_spill] sm:$0xff] %v4193_v44  ;;  %v1475_v28 = vadd.f32 1.4214138, %v1443_v22  ;;  %v4201_v39 = vadd.f32 %v3951_v47, %v3736_v46  ;;  %v1978_v16 = vmul.f32 %v4065_v8, %v4991_v21  ;;  %v1920_v33 = vadd.f32 1.0, %v1856_v45 }
 0x2da   : > { %v1444_v23 = vmul.f32 %v4176_v56, %v1412_v15  ;;  %v4207_v12 = vmul.f32 0.5, %v4096_v60  ;;  %v1319_v63 = vadd.f32 1.0, %v1287_v9  ;;  %v1701_v44 = vmul.f32 %v1669_v30, %v1253_v27 }
 0x2db   : > { %4990 = vst [vmem:[#allocation31_spill] sm:$0xff] %v4201_v39  ;;  %v1507_v18 = vmul.f32 %v4155_v3, %v1475_v28  ;;  %v1670_v2 = vsub.f32 0.0, %v4141_v51  ;;  %v2009_v43 = vpack.c.bf16 %v1978_v16, %v1977_v36  ;;  %v1570_v22 = vmul.f32 %v4098_v54, %v1538_v57 }
 0x2dc   : > { %v1476_v47 = vadd.f32 1.4214138, %v1444_v23  ;;  %2751 = vrcp.f32 %v1319_v63  ;;  %v4214_v8 = vadd.f32 %v3967_v38, %v3715_v61  ;;  %v1793_v45 = vmul.f32 %v2738_v4, %v1633_v10 }
 0x2dd   : > { %v1539_v15 = vadd.f32 -0.28449672, %v1507_v18  ;;  %v4217_v60 = vmul.f32 0.5, %v4109_v48  ;;  %2482 = vmatprep.mubr.bf16.mxu1 %v2009_v43  ;;  %v4221_v30 = vadd.f32 %v3979_v25, %v3715_v61  ;;  %vm1189_vm13 = vcmp.lt.f32.partialorder %v4123_v19, 0.0 }
 0x2de   : > { %v1508_v36 = vmul.f32 %v4176_v56, %v1476_v47  ;;  %vm1190_vm14 = vcmp.lt.f32.partialorder %v4126_v1, 0.0  ;;  %v4229_v38 = vmul.f32 0.70710677, %v4214_v8  ;;  %v4992_v48 = vpack.c.bf16 %v3987_v0, %v3970_v6 }
 0x2df   : > { %v4223_v27 = vpop.eup %2745  ;;  %v1571_v25 = vmul.f32 %v4155_v3, %v1539_v15  ;;  %v1745_v9 = vmul.f32 1.442695, %v1701_v44  ;;  %v1702_v10 = vmul.f32 %v1670_v2, %v4141_v51  ;;  %v1602_v28 = vadd.f32 0.2548296, %v1570_v22 }
 0x2e0   : > { %2483 = vmatmul.mubr.bf16.vlgmr.msra.gmra.mrb[16].mxu1 %v4992_v48  ;;  %v4234_v4 = vpop.eup %2747  ;;  %v1381_v57 = vmul.f32 1.0614054, %v4223_v27  ;;  %v1540_v19 = vadd.f32 -0.28449672, %v1508_v36  ;;  %2753 = vpow2.f32 %v1743_v52  ;;  %v1825_v16 = vsub.f32 1.0, %v1793_v45 }
 0x2e1   : > { %v1382_v21 = vmul.f32 1.0614054, %v4234_v4  ;;  %v4241_v23 = vsel %vm1189_vm13, -1.0, %v4973_v31  ;;  %v4244_v0 = vmul.f32 0.70710677, %v4221_v30  ;;  %v4247_v18 = vmul.f32 %v1920_v33, %v4034_v49 }
 0x2e2   : > { %v1413_v6 = vadd.f32 -1.4531521, %v1381_v57  ;;  %v2750_v63 = vpop.eup %2749  ;;  %v1603_v44 = vadd.f32 0.2548296, %v1571_v25  ;;  %v1256_v51 = vand.u32 2147483647, %v4229_v38  ;;  %v1572_v52 = vmul.f32 %v4176_v56, %v1540_v19 }
 0x2e3   : > { %v1414_v43 = vadd.f32 -1.4531521, %v1382_v21  ;;  %v4255_v22 = vsel %vm1190_vm14, -1.0, %v4973_v31  ;;  %v1747_v47 = vmul.f32 1.442695, %v1702_v10  ;;  %v1634_v45 = vmul.f32 %v4098_v54, %v1602_v28 }
 0x2e4   : > { %v1445_v2 = vmul.f32 %v4223_v27, %v1413_v6  ;;  %v1671_v49 = vsub.f32 0.0, %v4188_v14  ;;  %v1288_v33 = vmul.f32 0.3275911, %v1256_v51  ;;  %2755 = vpow2.f32 %v1745_v9 }
 0x2e5   : > { %v1446_v15 = vmul.f32 %v4234_v4, %v1414_v43  ;;  %v4261_v48 = vmul.f32 0.5, %v4151_v42  ;;  %v4264_v25 = vand.u32 2147483647, %v4244_v0  ;;  %v1857_v1 = vmul.f32 %v1825_v16, %v4073_v29 }
 0x2e6   : > { %v1477_v36 = vadd.f32 1.4214138, %v1445_v2  ;;  %v4266_v57 = vpop.eup %2751  ;;  %v1635_v10 = vmul.f32 %v4155_v3, %v1603_v44  ;;  %v1320_v28 = vadd.f32 1.0, %v1288_v33  ;;  %v1604_v19 = vadd.f32 0.2548296, %v1572_v52 }
 0x2e7   : > { %v1478_v54 = vadd.f32 1.4214138, %v1446_v15  ;;  %v1383_v6 = vmul.f32 1.0614054, %v4266_v57  ;;  %v1297_v9 = vmul.f32 0.3275911, %v4264_v25  ;;  %v1794_v42 = vmul.f32 %v4196_v20, %v1634_v45 }
 0x2e8   : > { %v1509_v21 = vmul.f32 %v4223_v27, %v1477_v36  ;;  %v1703_v2 = vmul.f32 %v1671_v49, %v4188_v14  ;;  %2757 = vrcp.f32 %v1320_v28  ;;  %vm1191_vm15 = vcmp.lt.f32.partialorder %v4168_v53, 0.0 }
 0x2e9   : > { %v1510_v43 = vmul.f32 %v4234_v4, %v1478_v54  ;;  %v1415_v29 = vadd.f32 -1.4531521, %v1383_v6  ;;  %v1329_v3 = vadd.f32 1.0, %v1297_v9  ;;  %v1921_v44 = vadd.f32 1.0, %v1857_v1 }
 0x2ea   : > { %v1541_v39 = vadd.f32 -0.28449672, %v1509_v21  ;;  %v2754_v16 = vpop.eup %2753  ;;  %v1795_v52 = vmul.f32 %v2750_v63, %v1635_v10  ;;  %2759 = vpow2.f32 %v1747_v47  ;;  %v1636_v33 = vmul.f32 %v4176_v56, %v1604_v19 }
 0x2eb   : > { %v1542_v15 = vadd.f32 -0.28449672, %v1510_v43  ;;  %v1447_v20 = vmul.f32 %v4266_v57, %v1415_v29  ;;  %2761 = vrcp.f32 %v1329_v3  ;;  %v1826_v45 = vsub.f32 1.0, %v1794_v42 }
 0x2ec   : > { %v1573_v36 = vmul.f32 %v4223_v27, %v1541_v39  ;;  %v1749_v49 = vmul.f32 1.442695, %v1703_v2  ;;  %v1672_v54 = vsub.f32 0.0, %v1256_v51  ;;  %v4284_v28 = vsel %vm1191_vm15, -1.0, %v4973_v31 }
 0x2ed   : > { %v1574_v14 = vmul.f32 %v4234_v4, %v1542_v15  ;;  %v1479_v63 = vadd.f32 1.4214138, %v1447_v20  ;;  %v4288_v47 = vadd.f32 %v3964_v11, %v3736_v46  ;;  %v4292_v56 = vadd.f32 %v3991_v7, %v3715_v61 }
 0x2ee   : > { %v4295_v39 = vmul.f32 %v1921_v44, %v4050_v40  ;;  %v1827_v1 = vsub.f32 1.0, %v1795_v52  ;;  %v1605_v10 = vadd.f32 0.2548296, %v1573_v36  ;;  %v2756_v21 = vpop.eup %2755  ;;  %v1796_v6 = vmul.f32 %v2754_v16, %v1636_v33 }
 0x2ef   : > { %v1606_v19 = vadd.f32 0.2548296, %v1574_v14  ;;  %v1511_v53 = vmul.f32 %v4266_v57, %v1479_v63  ;;  %v4300_v9 = vadd.f32 %v3974_v32, %v3736_v46  ;;  %v4303_v11 = vmul.f32 0.70710677, %v4292_v56 }
 0x2f0   : > { %v1858_v7 = vmul.f32 %v1826_v45, %v4105_v37  ;;  %2763 = vpow2.f32 %v1749_v49  ;;  %v1704_v42 = vmul.f32 %v1672_v54, %v1256_v51  ;;  %v4308_v40 = vadd.f32 %v4005_v41, %v3715_v61 }
 0x2f1   : > { %4993 = vst [vmem:[#allocation12_spill] sm:$0xff] %v4300_v9  ;;  %v1543_v43 = vadd.f32 -0.28449672, %v1511_v53  ;;  %vm1192_vm0 = vcmp.lt.f32.partialorder %v4229_v38, 0.0  ;;  %v4312_v2 = vmul.f32 0.5, %v4214_v8  ;;  %v1859_v3 = vmul.f32 %v1827_v1, %v4160_v35 }
 0x2f2   : > { %v1266_v32 = vand.u32 2147483647, %v4303_v11  ;;  %v4315_v29 = vpop.eup %2757  ;;  %v1637_v37 = vmul.f32 %v4223_v27, %v1605_v10  ;;  %v1638_v51 = vmul.f32 %v4234_v4, %v1606_v19  ;;  %v4321_v16 = vmul.f32 0.70710677, %v4308_v40 }
 0x2f3   : > { %v1828_v41 = vsub.f32 1.0, %v1796_v6  ;;  %v1384_v44 = vmul.f32 1.0614054, %v4315_v29  ;;  %v4325_v52 = vmul.f32 0.5, %v4221_v30  ;;  %v1922_v33 = vadd.f32 1.0, %v1858_v7 }
 0x2f4   : > { %v1298_v8 = vmul.f32 0.3275911, %v1266_v32  ;;  %v2760_v15 = vpop.eup %2759  ;;  %v1751_v36 = vmul.f32 1.442695, %v1704_v42  ;;  %vm1201_vm1 = vcmp.lt.f32.partialorder %v4244_v0, 0.0  ;;  %v1681_v35 = vsub.f32 0.0, %v4264_v25 }
 0x2f5   : > { %v4329_v27 = vpop.eup %2761  ;;  %v1575_v4 = vmul.f32 %v4266_v57, %v1543_v43  ;;  %v1416_v20 = vadd.f32 -1.4531521, %v1384_v44  ;;  %v1257_v14 = vand.u32 2147483647, %v4321_v16  ;;  %v1923_v49 = vadd.f32 1.0, %v1859_v3 }
 0x2f6   : > { %v1330_v45 = vadd.f32 1.0, %v1298_v8  ;;  %v1797_v54 = vmul.f32 %v2756_v21, %v1637_v37  ;;  %v1798_v30 = vmul.f32 %v2760_v15, %v1638_v51  ;;  %v1393_v63 = vmul.f32 1.0614054, %v4329_v27 }
 0x2f7   : > { %v1860_v1 = vmul.f32 %v1828_v41, %v4174_v26  ;;  %v4338_v10 = vsel %vm1192_vm0, -1.0, %v4973_v31  ;;  %v1448_v19 = vmul.f32 %v4315_v29, %v1416_v20  ;;  %v4342_v6 = vmul.f32 %v1922_v33, %v4087_v59 }
 0x2f8   : > { %2765 = vrcp.f32 %v1330_v45  ;;  %v4347_v21 = vsel %vm1201_vm1, -1.0, %v4973_v31  ;;  %v1425_v53 = vadd.f32 -1.4531521, %v1393_v63  ;;  %v1713_v7 = vmul.f32 %v1681_v35, %v4264_v25  ;;  %v4995_v63 = vld [vmem:[#allocation13_spill] sm:$0xff] }
 0x2f9   : > { %v1607_v26 = vadd.f32 0.2548296, %v1575_v4  ;;  %v1480_v42 = vadd.f32 1.4214138, %v1448_v19  ;;  %2767 = vpow2.f32 %v1751_v36  ;;  %v1289_v38 = vmul.f32 0.3275911, %v1257_v14 }
 0x2fa   : > { %v2764_v43 = vpop.eup %2763  ;;  %v4351_v3 = vmul.f32 %v1923_v49, %v4134_v34  ;;  %v1829_v37 = vsub.f32 1.0, %v1797_v54  ;;  %v1830_v51 = vsub.f32 1.0, %v1798_v30  ;;  %v4355_v59 = vadd.f32 %v3984_v55, %v3736_v46 }
 0x2fb   : > { %v1924_v0 = vadd.f32 1.0, %v1860_v1  ;;  %v1512_v41 = vmul.f32 %v4315_v29, %v1480_v42  ;;  %v1682_v44 = vsub.f32 0.0, %v1266_v32  ;;  %v1321_v8 = vadd.f32 1.0, %v1289_v38 }
 0x2fc   : > { %4994 = vst [vmem:[#allocation32_spill] sm:$0xff] %v4355_v59  ;;  %v1457_v25 = vmul.f32 %v4329_v27, %v1425_v53  ;;  %v1769_v15 = vmul.f32 1.442695, %v1713_v7  ;;  %v4361_v33 = vadd.f32 %v3999_v5, %v3736_v46  ;;  %v1073_v34 = vadd.f32 %v4023_v13, %v3715_v61  ;;  %v5004_v59 = vld [vmem:[#allocation28_spill] sm:$0xff] }
 0x2fd   : > { %v1639_v36 = vmul.f32 %v4266_v57, %v1607_v26  ;;  %v1544_v35 = vadd.f32 -0.28449672, %v1512_v41  ;;  %2769 = vrcp.f32 %v1321_v8  ;;  %v4368_v55 = vadd.f32 %v4062_v17, %v3715_v61 }
 0x2fe   : > { %v1861_v4 = vmul.f32 %v1829_v37, %v4241_v23  ;;  %v1862_v20 = vmul.f32 %v1830_v51, %v4255_v22  ;;  %v1673_v45 = vsub.f32 0.0, %v1257_v14  ;;  %v4372_v49 = vmul.f32 0.70710677, %v1073_v34  ;;  %v4996_v37 = vld [vmem:[#allocation14_spill] sm:$0xff] }
 0x2ff   : > { %v1576_v5 = vmul.f32 %v4315_v29, %v1544_v35  ;;  %v1714_v54 = vmul.f32 %v1682_v44, %v1266_v32  ;;  %v4376_v13 = vmul.f32 0.5, %v4292_v56  ;;  %v4379_v57 = vmul.f32 0.70710677, %v4368_v55 }
 0x300   : > { %v4382_v30 = vmul.f32 %v1924_v0, %v4165_v50  ;;  %v1489_v17 = vadd.f32 1.4214138, %v1457_v25  ;;  %v1258_v23 = vand.u32 2147483647, %v4372_v49  ;;  %v1981_v22 = vmul.f32 %v4101_v58, %v4995_v63 }
 0x301   : > { %v1799_v19 = vmul.f32 %v2764_v43, %v1639_v36  ;;  %2771 = vpow2.f32 %v1769_v15  ;;  %vm1202_vm2 = vcmp.lt.f32.partialorder %v4303_v11, 0.0  ;;  %vm1193_vm3 = vcmp.lt.f32.partialorder %v4321_v16, 0.0  ;;  %v4997_v16 = vld [vmem:[#allocation17_spill] sm:$0xff] }
 0x302   : > { %v4387_v1 = vpop.eup %2765  ;;  %v1925_v56 = vadd.f32 1.0, %v1861_v4  ;;  %v1926_v32 = vadd.f32 1.0, %v1862_v20  ;;  %v1705_v53 = vmul.f32 %v1673_v45, %v1257_v14  ;;  %v1290_v7 = vmul.f32 0.3275911, %v1258_v23 }
 0x303   : > { %v2768_v50 = vpop.eup %2767  ;;  %v1608_v26 = vadd.f32 0.2548296, %v1576_v5  ;;  %v1771_v42 = vmul.f32 1.442695, %v1714_v54  ;;  %v1259_v38 = vand.u32 2147483647, %v4379_v57  ;;  %v1982_v58 = vmul.f32 %v4131_v62, %v4996_v37 }
 0x304   : > { %v1521_v51 = vmul.f32 %v4329_v27, %v1489_v17  ;;  %v4396_v43 = vsel %vm1202_vm2, -1.0, %v4973_v31  ;;  %v1394_v11 = vmul.f32 1.0614054, %v4387_v1  ;;  %v1322_v0 = vadd.f32 1.0, %v1290_v7  ;;  %v4998_v17 = vld [vmem:[#allocation19_spill] sm:$0xff]  ;;  %v5000_v37 = vld [vmem:[#allocation26_spill] sm:$0xff] }
 0x305   : > { %v1831_v41 = vsub.f32 1.0, %v1799_v19  ;;  %v4400_v14 = vmul.f32 0.5, %v4308_v40  ;;  %v1291_v44 = vmul.f32 0.3275911, %v1259_v38  ;;  %v2011_v8 = vpack.c.bf16 %v1982_v58, %v1981_v22 }
 0x306   : > { %v4403_v25 = vmul.f32 %v1925_v56, %v4207_v12  ;;  %v4408_v62 = vsel %vm1193_vm3, -1.0, %v4973_v31  ;;  %v1753_v15 = vmul.f32 1.442695, %v1705_v53  ;;  %2773 = vrcp.f32 %v1322_v0 }
 0x307   : > { %v4410_v36 = vpop.eup %2769  ;;  %v4413_v35 = vmul.f32 %v1926_v32, %v4217_v60  ;;  %v1640_v40 = vmul.f32 %v4315_v29, %v1608_v26  ;;  %2775 = vpow2.f32 %v1771_v42  ;;  %v1323_v4 = vadd.f32 1.0, %v1291_v44  ;;  %2486 = vmatprep.mubr.bf16.mxu1 %v2011_v8  ;;  %v4999_v60 = vld [vmem:[#allocation22_spill] sm:$0xff] }
 0x308   : > { %v1553_v20 = vadd.f32 -0.28449672, %v1521_v51  ;;  %v1426_v12 = vadd.f32 -1.4531521, %v1394_v11  ;;  %v1385_v45 = vmul.f32 1.0614054, %v4410_v36  ;;  %v4419_v5 = vadd.f32 %v4997_v16, %v3736_v46 }
 0x309   : > { %v1863_v54 = vmul.f32 %v1831_v41, %v4284_v28  ;;  %v4424_v63 = vadd.f32 %v4998_v17, %v3736_v46  ;;  %2777 = vrcp.f32 %v1323_v4  ;;  %v4428_v29 = vadd.f32 %v4999_v60, %v3715_v61  ;;  %v5002_v16 = vld [vmem:[#allocation16_spill] sm:$0xff] }
 0x30a   : > { %v1417_v22 = vadd.f32 -1.4531521, %v1385_v45  ;;  %2779 = vpow2.f32 %v1753_v15  ;;  %v1674_v19 = vsub.f32 0.0, %v1258_v23  ;;  %v4430_v56 = vmul.f32 0.5, %v1073_v34 }
 0x30b   : > { %v4432_v32 = vpop.eup %2771  ;;  %v1800_v53 = vmul.f32 %v2768_v50, %v1640_v40  ;;  %vm1194_vm4 = vcmp.lt.f32.partialorder %v4372_v49, 0.0  ;;  %vm1195_vm5 = vcmp.lt.f32.partialorder %v4379_v57, 0.0  ;;  %v4437_v28 = vmul.f32 0.70710677, %v4428_v29  ;;  %v5001_v49 = vld [vmem:[#allocation15_spill] sm:$0xff] }
 0x30c   : > { %v1585_v7 = vmul.f32 %v4329_v27, %v1553_v20  ;;  %v1458_v26 = vmul.f32 %v4387_v1, %v1426_v12  ;;  %v1449_v42 = vmul.f32 %v4410_v36, %v1417_v22  ;;  %v4444_v34 = vadd.f32 %v5000_v37, %v3715_v61 }
 0x30d   : > { %v1927_v58 = vadd.f32 1.0, %v1863_v54  ;;  %v1675_v51 = vsub.f32 0.0, %v1259_v38  ;;  %v1260_v50 = vand.u32 2147483647, %v4437_v28  ;;  %v1983_v57 = vmul.f32 %v4179_v24, %v5001_v49 }
 0x30e   : > { %v1481_v11 = vadd.f32 1.4214138, %v1449_v42  ;;  %v4450_v0 = vsel %vm1194_vm4, -1.0, %v4973_v31  ;;  %v1706_v41 = vmul.f32 %v1674_v19, %v1258_v23  ;;  %v4453_v44 = vmul.f32 0.5, %v4368_v55 }
 0x30f   : > { %v1832_v8 = vsub.f32 1.0, %v1800_v53  ;;  %v4456_v15 = vsel %vm1195_vm5, -1.0, %v4973_v31  ;;  %v1292_v40 = vmul.f32 0.3275911, %v1260_v50  ;;  %v4459_v4 = vmul.f32 0.70710677, %v4444_v34 }
 0x310   : > { %v4461_v20 = vpop.eup %2773  ;;  %v1617_v12 = vadd.f32 0.2548296, %v1585_v7  ;;  %v1490_v24 = vadd.f32 1.4214138, %v1458_v26  ;;  %v1513_v45 = vmul.f32 %v4410_v36, %v1481_v11  ;;  %v1984_v23 = vmul.f32 %v4247_v18, %v5002_v16 }
 0x311   : > { %v4466_v54 = vpop.eup %2775  ;;  %v1386_v55 = vmul.f32 1.0614054, %v4461_v20  ;;  %v1707_v17 = vmul.f32 %v1675_v51, %v1259_v38  ;;  %v1324_v60 = vadd.f32 1.0, %v1292_v40  ;;  %v1676_v22 = vsub.f32 0.0, %v1260_v50 }
 0x312   : > { %v4470_v19 = vmul.f32 %v1927_v58, %v4261_v48  ;;  %v1545_v53 = vadd.f32 -0.28449672, %v1513_v45  ;;  %v1755_v42 = vmul.f32 1.442695, %v1706_v41  ;;  %v1261_v7 = vand.u32 2147483647, %v4459_v4 }
 0x313   : > { %v4473_v26 = vpop.eup %2777  ;;  %v1864_v37 = vmul.f32 %v1832_v8, %v4338_v10  ;;  %v1418_v49 = vadd.f32 -1.4531521, %v1386_v55  ;;  %2781 = vrcp.f32 %v1324_v60  ;;  %v2012_v18 = vpack.c.bf16 %v1984_v23, %v1983_v57 }
 0x314   : > { %v2780_v16 = vpop.eup %2779  ;;  %v1522_v38 = vmul.f32 %v4387_v1, %v1490_v24  ;;  %v1577_v51 = vmul.f32 %v4410_v36, %v1545_v53  ;;  %v1387_v48 = vmul.f32 1.0614054, %v4473_v26  ;;  %v1293_v58 = vmul.f32 0.3275911, %v1261_v7 }
 0x315   : > { %v1649_v40 = vmul.f32 %v4329_v27, %v1617_v12  ;;  %v1450_v45 = vmul.f32 %v4461_v20, %v1418_v49  ;;  %v1757_v10 = vmul.f32 1.442695, %v1707_v17  ;;  %v1708_v8 = vmul.f32 %v1676_v22, %v1260_v50  ;;  %2487 = vmatmul.mubr.bf16.gmra.mrb[20].mxu1 %v2012_v18 }
 0x316   : > { %v1609_v23 = vadd.f32 0.2548296, %v1577_v51  ;;  %2783 = vpow2.f32 %v1755_v42  ;;  %v1419_v55 = vadd.f32 -1.4531521, %v1387_v48  ;;  %v1325_v24 = vadd.f32 1.0, %v1293_v58  ;;  %v5007_v51 = vld [vmem:[#allocation21_spill] sm:$0xff] }
 0x317   : > { %v4476_v11 = vpop.f32.mrb[44].mxu0  ;;  %v1928_v60 = vadd.f32 1.0, %v1864_v37  ;;  %v1482_v53 = vadd.f32 1.4214138, %v1450_v45  ;;  %v4489_v9 = vadd.f32 %v5004_v59, %v3715_v61  ;;  %v1554_v17 = vadd.f32 -0.28449672, %v1522_v38 }
 0x318   : > { %5003 = vst [vmem:[#allocation13_spill] sm:$0xff] %v4476_v11  ;;  %v4481_v41 = vpop.f32.mrb[45].mxu0  ;;  %v5005_v11 = vld [vmem:[#allocation18_spill] sm:$0xff]  ;;  %v1641_v50 = vmul.f32 %v4410_v36, %v1609_v23  ;;  %v1451_v22 = vmul.f32 %v4473_v26, %v1419_v55  ;;  %2785 = vrcp.f32 %v1325_v24  ;;  %v5006_v37 = vld [vmem:[#allocation20_spill] sm:$0xff]  ;;  %v1759_v18 = vmul.f32 1.442695, %v1708_v8 }
 0x319   : > { %v4485_v57 = vpop.f32.mrb[46].mxu0  ;;  %v1985_v27 = vmul.f32 %v4295_v39, %v5005_v11  ;;  %v1514_v42 = vmul.f32 %v4461_v20, %v1482_v53  ;;  %v4500_v49 = vadd.f32 %v5006_v37, %v3736_v46  ;;  %v4503_v59 = vmul.f32 0.70710677, %v4489_v9 }
 0x31a   : > { %v4493_v12 = vpop.f32.mrb[47].mxu0  ;;  %v4506_v39 = vmul.f32 %v4432_v32, %v1649_v40  ;;  %v1801_v11 = vmul.f32 %v2780_v16, %v1641_v50  ;;  %v1483_v38 = vadd.f32 1.4214138, %v1451_v22  ;;  %v1986_v36 = vmul.f32 %v4342_v6, %v5007_v51 }
 0x31b   : > { %v1546_v48 = vadd.f32 -0.28449672, %v1514_v42  ;;  %2787 = vpow2.f32 %v1757_v10  ;;  %v1677_v58 = vsub.f32 0.0, %v1261_v7  ;;  %v4511_v45 = vand.u32 2147483647, %v4503_v59 }
 0x31c   : > { %v1960_v8 = vmul.f32 %v1928_v60, %v4312_v2  ;;  %v1586_v55 = vmul.f32 %v4387_v1, %v1554_v17  ;;  %v1833_v24 = vsub.f32 1.0, %v1801_v11  ;;  %v1515_v32 = vmul.f32 %v4473_v26, %v1483_v38  ;;  %v5010_v17 = vld [vmem:[#allocation23_spill] sm:$0xff] }
 0x31d   : > { %v4520_v40 = vpop.eup %2781  ;;  %v1578_v6 = vmul.f32 %v4461_v20, %v1546_v48  ;;  %2789 = vpow2.f32 %v1759_v18  ;;  %v1294_v10 = vmul.f32 0.3275911, %v4511_v45  ;;  %v2013_v53 = vpack.c.bf16 %v1986_v36, %v1985_v27  ;;  %v5011_v18 = vld [vmem:[#allocation25_spill] sm:$0xff] }
 0x31e   : > { %v1865_v22 = vmul.f32 %v1833_v24, %v4408_v62  ;;  %v1547_v2 = vadd.f32 -0.28449672, %v1515_v32  ;;  %v1388_v60 = vmul.f32 1.0614054, %v4520_v40  ;;  %v1987_v42 = vmul.f32 %v4351_v3, %v5010_v17  ;;  %v5012_v24 = vld [vmem:[#allocation29_spill] sm:$0xff] }
 0x31f   : > { %v4513_v23 = vpop.f32.mrb[4].mxu1  ;;  %v1610_v11 = vadd.f32 0.2548296, %v1578_v6  ;;  %v1709_v38 = vmul.f32 %v1677_v58, %v1261_v7  ;;  %v1326_v51 = vadd.f32 1.0, %v1294_v10  ;;  %2490 = vmatprep.mubr.bf16.mxu1 %v2013_v53  ;;  %v1988_v48 = vmul.f32 %v4382_v30, %v5011_v18  ;;  %v5013_v10 = vld [vmem:[#allocation30_spill] sm:$0xff] }
 0x320   : > { %5008 = vst [vmem:[#allocation14_spill] sm:$0xff] %v4513_v23  ;;  %v4518_v16 = vpop.f32.mrb[5].mxu1  ;;  %v2784_v27 = vpop.eup %2783  ;;  %v1929_v36 = vadd.f32 1.0, %v1865_v22  ;;  %v1420_v62 = vadd.f32 -1.4531521, %v1388_v60  ;;  %v1989_v32 = vmul.f32 %v4403_v25, %v5012_v24  ;;  %v1990_v53 = vmul.f32 %v4413_v35, %v5013_v10  ;;  %v5014_v25 = vld [vmem:[#allocation31_spill] sm:$0xff] }
 0x321   : > { %v4524_v50 = vpop.f32.mrb[6].mxu1  ;;  %v1618_v23 = vadd.f32 0.2548296, %v1586_v55  ;;  %v1642_v3 = vmul.f32 %v4461_v20, %v1610_v11  ;;  %2791 = vrcp.f32 %v1326_v51  ;;  %v2014_v17 = vpack.c.bf16 %v1988_v48, %v1987_v42 }
 0x322   : > { %5009 = vst [vmem:[#allocation17_spill] sm:$0xff] %v4524_v50  ;;  %v4530_v37 = vpop.f32.mrb[7].mxu1  ;;  %v1579_v50 = vmul.f32 %v4473_v26, %v1547_v2  ;;  %v4538_v6 = vpop.eup %2785  ;;  %v1961_v7 = vmul.f32 %v1929_v36, %v4400_v14  ;;  %v1452_v30 = vmul.f32 %v4520_v40, %v1420_v62  ;;  %v1761_v60 = vmul.f32 1.442695, %v1709_v38 }
 0x323   : > { %v1802_v22 = vmul.f32 %v2784_v27, %v1642_v3  ;;  %v1389_v2 = vmul.f32 1.0614054, %v4538_v6  ;;  %2491 = vmatmul.mubr.bf16.gmra.mrb[24].mxu1 %v2014_v17  ;;  %v1991_v20 = vmul.f32 %v4470_v19, %v5014_v25  ;;  %v2015_v14 = vpack.c.bf16 %v1990_v53, %v1989_v32  ;;  %v5015_v53 = vld [vmem:[#allocation24_spill] sm:$0xff] }
 0x324   : > { %v1611_v58 = vadd.f32 0.2548296, %v1579_v50  ;;  %v1484_v11 = vadd.f32 1.4214138, %v1452_v30  ;;  %v1992_v50 = vmul.f32 %v1960_v8, %v4288_v47  ;;  %v1678_v27 = vsub.f32 0.0, %v4511_v45 }
 0x325   : > { %v2788_v18 = vpop.eup %2787  ;;  %v1834_v35 = vsub.f32 1.0, %v1802_v22  ;;  %v1421_v48 = vadd.f32 -1.4531521, %v1389_v2  ;;  %v1993_v38 = vmul.f32 %v1961_v7, %v4361_v33  ;;  %2494 = vmatprep.mubr.bf16.mxu1 %v2015_v14  ;;  %v4560_v24 = vadd.f32 %v4481_v41, %v3715_v61 }
 0x326   : > { %v1643_v42 = vmul.f32 %v4473_v26, %v1611_v58  ;;  %v1516_v62 = vmul.f32 %v4520_v40, %v1484_v11  ;;  %v2016_v26 = vpack.c.bf16 %v1992_v50, %v1991_v20  ;;  %v1841_v32 = vsub.f32 1.0, %v4506_v39 }
 0x327   : > { %v4547_v55 = vpop.f32.mrb[8].mxu1  ;;  %v2790_v8 = vpop.eup %2789  ;;  %v1866_v3 = vmul.f32 %v1834_v35, %v4450_v0  ;;  %v1453_v33 = vmul.f32 %v4538_v6, %v1421_v48  ;;  %v4569_v17 = vadd.f32 %v4493_v12, %v3715_v61  ;;  %v1650_v7 = vmul.f32 %v4387_v1, %v1618_v23 }
 0x328   : > { %v4551_v51 = vpop.f32.mrb[9].mxu1  ;;  %v1803_v19 = vmul.f32 %v2788_v18, %v1643_v42  ;;  %v1548_v30 = vadd.f32 -0.28449672, %v1516_v62  ;;  %v4573_v41 = vmul.f32 0.70710677, %v4560_v24  ;;  %v4577_v22 = vadd.f32 %v5015_v53, %v3736_v46 }
 0x329   : > { %v4555_v36 = vpop.f32.mrb[10].mxu1  ;;  %v1930_v10 = vadd.f32 1.0, %v1866_v3  ;;  %v1485_v39 = vadd.f32 1.4214138, %v1453_v33  ;;  %2793 = vpow2.f32 %v1761_v60  ;;  %v1710_v12 = vmul.f32 %v1678_v27, %v4511_v45 }
 0x32a   : > { %v4562_v47 = vpop.f32.mrb[11].mxu1  ;;  %v1835_v58 = vsub.f32 1.0, %v1803_v19  ;;  %v1580_v2 = vmul.f32 %v4520_v40, %v1548_v30  ;;  %v4583_v1 = vand.u32 2147483647, %v4573_v41  ;;  %v1873_v25 = vmul.f32 %v1841_v32, %v4347_v21 }
 0x32b   : > { %v4585_v23 = vpop.eup %2791  ;;  %v1962_v20 = vmul.f32 %v1930_v10, %v4430_v56  ;;  %v1517_v42 = vmul.f32 %v4538_v6, %v1485_v39  ;;  %2495 = vmatmul.mubr.bf16.gmra.mrb[28].mxu1 %v2016_v26  ;;  %v4591_v60 = vmul.f32 0.70710677, %v4569_v17  ;;  %v1810_v11 = vmul.f32 %v4466_v54, %v1650_v7 }
 0x32c   : > { %v1867_v0 = vmul.f32 %v1835_v58, %v4456_v15  ;;  %v1612_v14 = vadd.f32 0.2548296, %v1580_v2  ;;  %v1390_v50 = vmul.f32 1.0614054, %v4585_v23  ;;  %vm1196_vm6 = vcmp.lt.f32.partialorder %v4437_v28, 0.0 }
 0x32d   : > { %v1549_v18 = vadd.f32 -0.28449672, %v1517_v42  ;;  %v1994_v21 = vmul.f32 %v1962_v20, %v4419_v5  ;;  %v1295_v56 = vmul.f32 0.3275911, %v4583_v1  ;;  %v1763_v62 = vmul.f32 1.442695, %v1710_v12 }
 0x32e   : > { %v1931_v45 = vadd.f32 1.0, %v1867_v0  ;;  %v1644_v27 = vmul.f32 %v4520_v40, %v1612_v14  ;;  %v1422_v19 = vadd.f32 -1.4531521, %v1390_v50  ;;  %v4608_v33 = vand.u32 2147483647, %v4591_v60 }
 0x32f   : > { %v4593_v15 = vpop.f32.mrb[12].mxu1  ;;  %v1581_v26 = vmul.f32 %v4538_v6, %v1549_v18  ;;  %v2017_v32 = vpack.c.bf16 %v1994_v21, %v1993_v38  ;;  %v1327_v3 = vadd.f32 1.0, %v1295_v56  ;;  %v1842_v7 = vsub.f32 1.0, %v1810_v11 }
 0x330   : > { %v4600_v35 = vpop.f32.mrb[13].mxu1  ;;  %v1963_v48 = vmul.f32 %v1931_v45, %v4453_v44  ;;  %v1804_v58 = vmul.f32 %v2790_v8, %v1644_v27  ;;  %v1454_v30 = vmul.f32 %v4585_v23, %v1422_v19  ;;  %v1937_v40 = vadd.f32 1.0, %v1873_v25 }
 0x331   : > { %v4604_v54 = vpop.f32.mrb[14].mxu1  ;;  %v1613_v10 = vadd.f32 0.2548296, %v1581_v26  ;;  %2498 = vmatprep.mubr.bf16.mxu1 %v2017_v32  ;;  %2795 = vrcp.f32 %v1327_v3  ;;  %v1296_v53 = vmul.f32 0.3275911, %v4608_v33  ;;  %v1228_v38 = vsel %vm1196_vm6, -1.0, %v4973_v31 }
 0x332   : > { %v4610_v5 = vpop.f32.mrb[15].mxu1  ;;  %v1995_v44 = vmul.f32 %v1963_v48, %v4424_v63  ;;  %v1836_v39 = vsub.f32 1.0, %v1804_v58  ;;  %vm1197_vm7 = vcmp.lt.f32.partialorder %v4459_v4, 0.0  ;;  %v1486_v0 = vadd.f32 1.4214138, %v1454_v30 }
 0x333   : > { %v2794_v2 = vpop.eup %2793  ;;  %v1645_v8 = vmul.f32 %v4538_v6, %v1613_v10  ;;  %2797 = vpow2.f32 %v1763_v62  ;;  %v1328_v12 = vadd.f32 1.0, %v1296_v53  ;;  %v4622_v63 = vadd.f32 %v4518_v16, %v3715_v61 }
 0x334   : > { %v1874_v25 = vmul.f32 %v1842_v7, %v4396_v43  ;;  %v1868_v20 = vmul.f32 %v1836_v39, %v1228_v38  ;;  %v1518_v42 = vmul.f32 %v4585_v23, %v1486_v0  ;;  %v4628_v28 = vadd.f32 %v4530_v37, %v3715_v61 }
 0x335   : > { %v1805_v11 = vmul.f32 %v2794_v2, %v1645_v8  ;;  %v1679_v45 = vsub.f32 0.0, %v4583_v1  ;;  %2799 = vrcp.f32 %v1328_v12  ;;  %v4632_v6 = vmul.f32 0.70710677, %v4622_v63 }
 0x336   : > { %v1900_v14 = vmul.f32 0.5, %v4428_v29  ;;  %v1932_v16 = vadd.f32 1.0, %v1868_v20  ;;  %v1550_v50 = vadd.f32 -0.28449672, %v1518_v42  ;;  %v4636_v43 = vmul.f32 0.70710677, %v4628_v28 }
 0x337   : > { %v4639_v18 = vmul.f32 %v1937_v40, %v4325_v52  ;;  %v1837_v21 = vsub.f32 1.0, %v1805_v11  ;;  %v1901_v37 = vmul.f32 0.5, %v4444_v34  ;;  %v1267_v56 = vand.u32 2147483647, %v4632_v6  ;;  %v5016_v29 = vld [vmem:[#allocation27_spill] sm:$0xff] }
 0x338   : > { %v1964_v48 = vmul.f32 %v1932_v16, %v1900_v14  ;;  %v1229_v27 = vsel %vm1197_vm7, -1.0, %v4973_v31  ;;  %v4648_v19 = vadd.f32 %v5016_v29, %v3736_v46  ;;  %v1582_v62 = vmul.f32 %v4585_v23, %v1550_v50 }
 0x339   : > { %v1938_v26 = vadd.f32 1.0, %v1874_v25  ;;  %v1869_v32 = vmul.f32 %v1837_v21, %v1229_v27  ;;  %v1711_v52 = vmul.f32 %v1679_v45, %v4583_v1  ;;  %v1299_v3 = vmul.f32 0.3275911, %v1267_v56 }
 0x33a   : > { %v1614_v7 = vadd.f32 0.2548296, %v1582_v62  ;;  %v1902_v34 = vmul.f32 0.5, %v4489_v9  ;;  %v1996_v58 = vmul.f32 %v1964_v48, %v4500_v49  ;;  %v4655_v30 = vand.u32 2147483647, %v4636_v43 }
 0x33b   : > { %v4657_v4 = vpop.eup %2795  ;;  %v1933_v40 = vadd.f32 1.0, %v1869_v32  ;;  %vm1198_vm8 = vcmp.lt.f32.partialorder %v4503_v59, 0.0  ;;  %v1680_v10 = vsub.f32 0.0, %v4608_v33  ;;  %v1331_v53 = vadd.f32 1.0, %v1299_v3 }
 0x33c   : > { %v1646_v38 = vmul.f32 %v4585_v23, %v1614_v7  ;;  %v2018_v1 = vpack.c.bf16 %v1996_v58, %v1995_v44  ;;  %v1391_v39 = vmul.f32 1.0614054, %v4657_v4  ;;  %v1300_v9 = vmul.f32 0.3275911, %v4655_v30 }
 0x33d   : > { %v2798_v0 = vpop.eup %2797  ;;  %v4665_v49 = vmul.f32 %v1938_v26, %v4376_v13  ;;  %v1965_v2 = vmul.f32 %v1933_v40, %v1901_v37  ;;  %v1765_v8 = vmul.f32 1.442695, %v1711_v52  ;;  %2801 = vrcp.f32 %v1331_v53 }
 0x33e   : > { %v1806_v12 = vmul.f32 %v2798_v0, %v1646_v38  ;;  %2499 = vmatmul.mubr.bf16.gmra.mrb[32].mxu1 %v2018_v1  ;;  %v1423_v25 = vadd.f32 -1.4531521, %v1391_v39  ;;  %v1332_v20 = vadd.f32 1.0, %v1300_v9  ;;  %v4669_v42 = vadd.f32 %v4551_v51, %v3715_v61  ;;  %v5017_v51 = vld [vmem:[#allocation13_spill] sm:$0xff] }
 0x33f   : > { %v4671_v23 = vpop.eup %2799  ;;  %v1230_v44 = vsel %vm1198_vm8, -1.0, %v4973_v31  ;;  %v1997_v13 = vmul.f32 %v1965_v2, %v4577_v22  ;;  %v1712_v11 = vmul.f32 %v1680_v10, %v4608_v33  ;;  %v1683_v45 = vsub.f32 0.0, %v1267_v56 }
 0x340   : > { %v1838_v14 = vsub.f32 1.0, %v1806_v12  ;;  %v1455_v16 = vmul.f32 %v4657_v4, %v1423_v25  ;;  %v1392_v50 = vmul.f32 1.0614054, %v4671_v23  ;;  %2803 = vrcp.f32 %v1332_v20 }
 0x341   : > { %v4682_v21 = vadd.f32 %v5017_v51, %v3736_v46  ;;  %v4686_v37 = vadd.f32 %v4485_v57, %v3736_v46  ;;  %v4689_v59 = vmul.f32 0.70710677, %v4669_v42  ;;  %v4693_v22 = vadd.f32 %v4562_v47, %v3715_v61 }
 0x342   : > { %v1870_v33 = vmul.f32 %v1838_v14, %v1230_v44  ;;  %v1487_v48 = vadd.f32 1.4214138, %v1455_v16  ;;  %2805 = vpow2.f32 %v1765_v8  ;;  %v1424_v27 = vadd.f32 -1.4531521, %v1392_v50 }
 0x343   : > { %v1767_v29 = vmul.f32 1.442695, %v1712_v11  ;;  %v1715_v62 = vmul.f32 %v1683_v45, %v1267_v56  ;;  %v1269_v26 = vand.u32 2147483647, %v4689_v59  ;;  %v4697_v32 = vmul.f32 0.70710677, %v4693_v22 }
 0x344   : > { %v1934_v57 = vadd.f32 1.0, %v1870_v33  ;;  %v1519_v52 = vmul.f32 %v4657_v4, %v1487_v48  ;;  %v4701_v3 = vmul.f32 0.5, %v4560_v24  ;;  %v1456_v47 = vmul.f32 %v4671_v23, %v1424_v27 }
 0x345   : > { %v4705_v7 = vmul.f32 0.5, %v4569_v17  ;;  %v1684_v58 = vsub.f32 0.0, %v4655_v30  ;;  %v1301_v40 = vmul.f32 0.3275911, %v1269_v26  ;;  %v1270_v56 = vand.u32 2147483647, %v4697_v32 }
 0x346   : > { %v1966_v10 = vmul.f32 %v1934_v57, %v1902_v34  ;;  %vm1199_vm9 = vcmp.lt.f32.partialorder %v4573_v41, 0.0  ;;  %v1551_v53 = vadd.f32 -0.28449672, %v1519_v52  ;;  %v1488_v38 = vadd.f32 1.4214138, %v1456_v47 }
 0x347   : > { %v4710_v1 = vpop.eup %2801  ;;  %2807 = vpow2.f32 %v1767_v29  ;;  %v1773_v24 = vmul.f32 1.442695, %v1715_v62  ;;  %v1333_v39 = vadd.f32 1.0, %v1301_v40  ;;  %v1302_v9 = vmul.f32 0.3275911, %v1270_v56 }
 0x348   : > { %v1998_v0 = vmul.f32 %v1966_v10, %v4648_v19  ;;  %v1583_v17 = vmul.f32 %v4657_v4, %v1551_v53  ;;  %v1520_v2 = vmul.f32 %v4671_v23, %v1488_v38  ;;  %v1395_v8 = vmul.f32 1.0614054, %v4710_v1 }
 0x349   : > { %v1231_v34 = vsel %vm1199_vm9, -1.0, %v4973_v31  ;;  %v1716_v41 = vmul.f32 %v1684_v58, %v4655_v30  ;;  %2809 = vrcp.f32 %v1333_v39  ;;  %v1334_v12 = vadd.f32 1.0, %v1302_v9  ;;  %v5018_v58 = vld [vmem:[#allocation12_spill] sm:$0xff] }
 0x34a   : > { %v4718_v25 = vpop.eup %2803  ;;  %v2019_v20 = vpack.c.bf16 %v1998_v0, %v1997_v13  ;;  %v1615_v44 = vadd.f32 0.2548296, %v1583_v17  ;;  %v1552_v11 = vadd.f32 -0.28449672, %v1520_v2  ;;  %v1427_v45 = vadd.f32 -1.4531521, %v1395_v8 }
 0x34b   : > { %vm1200_vm10 = vcmp.lt.f32.partialorder %v4591_v60, 0.0  ;;  %vm1203_vm11 = vcmp.lt.f32.partialorder %v4632_v6, 0.0  ;;  %2811 = vpow2.f32 %v1773_v24  ;;  %v1396_v19 = vmul.f32 1.0614054, %v4718_v25 }
 0x34c   : > { %v2806_v14 = vpop.eup %2805  ;;  %2502 = vmatprep.mubr.bf16.mxu1 %v2019_v20  ;;  %v1647_v16 = vmul.f32 %v4657_v4, %v1615_v44  ;;  %v1584_v30 = vmul.f32 %v4671_v23, %v1552_v11  ;;  %v1459_v50 = vmul.f32 %v4710_v1, %v1427_v45  ;;  %2813 = vrcp.f32 %v1334_v12 }
 0x34d   : > { %v1428_v13 = vadd.f32 -1.4531521, %v1396_v19  ;;  %v1775_v51 = vmul.f32 1.442695, %v1716_v41  ;;  %v1685_v33 = vsub.f32 0.0, %v1269_v26  ;;  %v4728_v48 = vadd.f32 %v4600_v35, %v3715_v61 }
 0x34e   : > { %v1807_v27 = vmul.f32 %v2806_v14, %v1647_v16  ;;  %v1616_v29 = vadd.f32 0.2548296, %v1584_v30  ;;  %v1491_v62 = vadd.f32 1.4214138, %v1459_v50  ;;  %v1686_v57 = vsub.f32 0.0, %v1270_v56 }
 0x34f   : > { %v1460_v52 = vmul.f32 %v4718_v25, %v1428_v13  ;;  %v4732_v4 = vmul.f32 0.70710677, %v4728_v48  ;;  %v4736_v47 = vadd.f32 %v4610_v5, %v3715_v61  ;;  %v4740_v40 = vmul.f32 %v4639_v18, %v5018_v58 }
 0x350   : > { %v1839_v10 = vsub.f32 1.0, %v1807_v27  ;;  %v1232_v35 = vsel %vm1200_vm10, -1.0, %v4973_v31  ;;  %v1648_v53 = vmul.f32 %v4671_v23, %v1616_v29  ;;  %v1523_v38 = vmul.f32 %v4710_v1, %v1491_v62 }
 0x351   : > { %v2808_v24 = vpop.eup %2807  ;;  %v1235_v39 = vsel %vm1203_vm11, -1.0, %v4973_v31  ;;  %v1492_v61 = vadd.f32 1.4214138, %v1460_v52  ;;  %v1717_v5 = vmul.f32 %v1685_v33, %v1269_v26  ;;  %v4751_v9 = vand.u32 2147483647, %v4732_v4 }
 0x352   : > { %v1871_v18 = vmul.f32 %v1839_v10, %v1231_v34  ;;  %v1808_v0 = vmul.f32 %v2808_v24, %v1648_v53  ;;  %v1555_v17 = vadd.f32 -0.28449672, %v1523_v38  ;;  %2815 = vpow2.f32 %v1775_v51  ;;  %v5019_v24 = vld [vmem:[#allocation32_spill] sm:$0xff] }
 0x353   : > { %v4753_v60 = vpop.eup %2809  ;;  %v1524_v23 = vmul.f32 %v4718_v25, %v1492_v61  ;;  %v1718_v2 = vmul.f32 %v1686_v57, %v1270_v56  ;;  %v1303_v8 = vmul.f32 0.3275911, %v4751_v9  ;;  %v4758_v41 = vmul.f32 0.70710677, %v4736_v47 }
 0x354   : > { %v1935_v6 = vadd.f32 1.0, %v1871_v18  ;;  %v1840_v12 = vsub.f32 1.0, %v1808_v0  ;;  %v1587_v26 = vmul.f32 %v4710_v1, %v1555_v17  ;;  %v1397_v20 = vmul.f32 1.0614054, %v4753_v60 }
 0x355   : > { %v2812_v34 = vpop.eup %2811  ;;  %vm1204_vm12 = vcmp.lt.f32.partialorder %v4636_v43, 0.0  ;;  %v1556_v44 = vadd.f32 -0.28449672, %v1524_v23  ;;  %v1777_v11 = vmul.f32 1.442695, %v1717_v5  ;;  %v1335_v45 = vadd.f32 1.0, %v1303_v8 }
 0x356   : > { %v4763_v19 = vpop.eup %2813  ;;  %v1967_v56 = vmul.f32 %v1935_v6, %v4701_v3  ;;  %v1872_v14 = vmul.f32 %v1840_v12, %v1232_v35  ;;  %v1619_v16 = vadd.f32 0.2548296, %v1587_v26  ;;  %v1429_v30 = vadd.f32 -1.4531521, %v1397_v20 }
 0x357   : > { %v1588_v50 = vmul.f32 %v4718_v25, %v1556_v44  ;;  %v1398_v13 = vmul.f32 1.0614054, %v4763_v19  ;;  %v1779_v51 = vmul.f32 1.442695, %v1718_v2  ;;  %2817 = vrcp.f32 %v1335_v45 }
 0x358   : > { %v1936_v33 = vadd.f32 1.0, %v1872_v14  ;;  %v1651_v27 = vmul.f32 %v4710_v1, %v1619_v16  ;;  %v1461_v29 = vmul.f32 %v4753_v60, %v1429_v30  ;;  %v4771_v62 = vand.u32 2147483647, %v4758_v41 }
 0x359   : > { %v1620_v57 = vadd.f32 0.2548296, %v1588_v50  ;;  %2819 = vpow2.f32 %v1777_v11  ;;  %v1430_v3 = vadd.f32 -1.4531521, %v1398_v13  ;;  %v1999_v52 = vmul.f32 %v1967_v56, %v4682_v21  ;;  %v5020_v56 = vld [vmem:[#allocation14_spill] sm:$0xff] }
 0x35a   : > { %v1968_v58 = vmul.f32 %v1936_v33, %v4705_v7  ;;  %v1811_v10 = vmul.f32 %v2812_v34, %v1651_v27  ;;  %v1493_v35 = vadd.f32 1.4214138, %v1461_v29  ;;  %v1304_v53 = vmul.f32 0.3275911, %v4771_v62 }
 0x35b   : > { %v1652_v38 = vmul.f32 %v4718_v25, %v1620_v57  ;;  %v1462_v1 = vmul.f32 %v4763_v19, %v1430_v3  ;;  %2821 = vpow2.f32 %v1779_v51  ;;  %v2002_v61 = vmul.f32 %v4665_v49, %v5019_v24  ;;  %v5021_v3 = vld [vmem:[#allocation17_spill] sm:$0xff] }
 0x35c   : > { %v2816_v5 = vpop.eup %2815  ;;  %v1843_v18 = vsub.f32 1.0, %v1811_v10  ;;  %v1525_v0 = vmul.f32 %v4753_v60, %v1493_v35  ;;  %v1336_v17 = vadd.f32 1.0, %v1304_v53  ;;  %v2000_v21 = vmul.f32 %v1968_v58, %v4686_v37 }
 0x35d   : > { %v1812_v7 = vmul.f32 %v2816_v5, %v1652_v38  ;;  %v1494_v23 = vadd.f32 1.4214138, %v1462_v1  ;;  %v1687_v2 = vsub.f32 0.0, %v4751_v9  ;;  %v2021_v8 = vpack.c.bf16 %v2002_v61, %v4740_v40 }
 0x35e   : > { %v1875_v25 = vmul.f32 %v1843_v18, %v1235_v39  ;;  %v1557_v6 = vadd.f32 -0.28449672, %v1525_v0  ;;  %2823 = vrcp.f32 %v1336_v17  ;;  %v2020_v12 = vpack.c.bf16 %v2000_v21, %v1999_v52 }
 0x35f   : > { %v1844_v26 = vsub.f32 1.0, %v1812_v7  ;;  %v1526_v49 = vmul.f32 %v4763_v19, %v1494_v23  ;;  %v1907_v20 = vmul.f32 0.5, %v4622_v63  ;;  %v1236_v37 = vsel %vm1204_vm12, -1.0, %v4973_v31 }
 0x360   : > { %v1939_v34 = vadd.f32 1.0, %v1875_v25  ;;  %v1589_v44 = vmul.f32 %v4753_v60, %v1557_v6  ;;  %2503 = vmatmul.mubr.bf16.gmra.mrb[36].mxu1 %v2020_v12  ;;  %v1719_v39 = vmul.f32 %v1687_v2, %v4751_v9  ;;  %v1117_v14 = vadd.f32 %v5020_v56, %v3736_v46 }
 0x361   : > { %v2818_v11 = vpop.eup %2817  ;;  %v1876_v45 = vmul.f32 %v1844_v26, %v1236_v37  ;;  %v1558_v40 = vadd.f32 -0.28449672, %v1526_v49  ;;  %2506 = vmatprep.mubr.bf16.mxu1 %v2021_v8  ;;  %v1908_v13 = vmul.f32 0.5, %v4628_v28  ;;  %vm1205_vm13 = vcmp.lt.f32.partialorder %v4689_v59, 0.0 }
 0x362   : > { %v1971_v16 = vmul.f32 %v1939_v34, %v1907_v20  ;;  %v1621_v30 = vadd.f32 0.2548296, %v1589_v44  ;;  %v1399_v63 = vmul.f32 1.0614054, %v2818_v11  ;;  %v1688_v9 = vsub.f32 0.0, %v4771_v62 }
 0x363   : > { %v2820_v50 = vpop.eup %2819  ;;  %v1940_v43 = vadd.f32 1.0, %v1876_v45  ;;  %v1590_v51 = vmul.f32 %v4763_v19, %v1558_v40  ;;  %v1121_v52 = vadd.f32 %v5021_v3, %v3736_v46  ;;  %v1781_v35 = vmul.f32 1.442695, %v1719_v39 }
 0x364   : > { %v1653_v33 = vmul.f32 %v4753_v60, %v1621_v30  ;;  %v1431_v27 = vadd.f32 -1.4531521, %v1399_v63  ;;  %v2003_v29 = vmul.f32 %v1971_v16, %v1117_v14  ;;  %v1237_v38 = vsel %vm1205_vm13, -1.0, %v4973_v31 }
 0x365   : > { %v2822_v57 = vpop.eup %2821  ;;  %v1972_v58 = vmul.f32 %v1940_v43, %v1908_v13  ;;  %v1622_v10 = vadd.f32 0.2548296, %v1590_v51  ;;  %vm1206_vm14 = vcmp.lt.f32.partialorder %v4697_v32, 0.0  ;;  %v1720_v5 = vmul.f32 %v1688_v9, %v4771_v62 }
 0x366   : > { %v1813_v53 = vmul.f32 %v2820_v50, %v1653_v33  ;;  %v1463_v28 = vmul.f32 %v2818_v11, %v1431_v27  ;;  %2825 = vpow2.f32 %v1781_v35  ;;  %v1909_v23 = vmul.f32 0.5, %v4669_v42 }
 0x367   : > { %v1654_v59 = vmul.f32 %v4763_v19, %v1622_v10  ;;  %v2004_v1 = vmul.f32 %v1972_v58, %v1121_v52  ;;  %v1238_v25 = vsel %vm1206_vm14, -1.0, %v4973_v31  ;;  %v1783_v12 = vmul.f32 1.442695, %v1720_v5 }
 0x368   : > { %v2824_v24 = vpop.eup %2823  ;;  %v1845_v60 = vsub.f32 1.0, %v1813_v53  ;;  %v1495_v61 = vadd.f32 1.4214138, %v1463_v28  ;;  %v1127_v62 = vadd.f32 %v4547_v55, %v3736_v46  ;;  %v1910_v34 = vmul.f32 0.5, %v4693_v22 }
 0x369   : > { %v1814_v18 = vmul.f32 %v2822_v57, %v1654_v59  ;;  %v1400_v0 = vmul.f32 1.0614054, %v2824_v24  ;;  %v2022_v17 = vpack.c.bf16 %v2004_v1, %v2003_v29  ;;  %2827 = vpow2.f32 %v1783_v12 }
 0x36a   : > { %v1877_v21 = vmul.f32 %v1845_v60, %v1237_v38  ;;  %v1527_v7 = vmul.f32 %v2818_v11, %v1495_v61  ;;  %v1131_v40 = vadd.f32 %v4555_v36, %v3736_v46  ;;  %vm1207_vm15 = vcmp.lt.f32.partialorder %v4732_v4, 0.0 }
 0x36b   : > { %v1846_v2 = vsub.f32 1.0, %v1814_v18  ;;  %v1432_v8 = vadd.f32 -1.4531521, %v1400_v0  ;;  %2507 = vmatmul.mubr.bf16.gmra.mrb[40].mxu1 %v2022_v17  ;;  %v1239_v43 = vsel %vm1207_vm15, -1.0, %v4973_v31  ;;  %v1911_v36 = vmul.f32 0.5, %v4728_v48 }
 0x36c   : > { %v1941_v19 = vadd.f32 1.0, %v1877_v21  ;;  %v1559_v6 = vadd.f32 -0.28449672, %v1527_v7  ;;  %vm1208_vm0 = vcmp.lt.f32.partialorder %v4758_v41, 0.0  ;;  %v1137_v4 = vadd.f32 %v4593_v15, %v3736_v46  ;;  %v4824_v15 = vld [vmem:[%s4951_s6] ss:$0 sm:$0xff] }
 0x36d   : > { %v1878_v32 = vmul.f32 %v1846_v2, %v1238_v25  ;;  %v1464_v26 = vmul.f32 %v2824_v24, %v1432_v8  ;;  %v1240_v52 = vsel %vm1208_vm0, -1.0, %v4973_v31  ;;  %v1912_v35 = vmul.f32 0.5, %v4736_v47 }
 0x36e   : > { %v1973_v49 = vmul.f32 %v1941_v19, %v1909_v23  ;;  %v1591_v20 = vmul.f32 %v2818_v11, %v1559_v6  ;;  %v1141_v48 = vadd.f32 %v4604_v54, %v3736_v46 }
 0x36f   : > { %v1942_v37 = vadd.f32 1.0, %v1878_v32  ;;  %v1496_v44 = vadd.f32 1.4214138, %v1464_v26 }
 0x370   : > { %v1623_v42 = vadd.f32 0.2548296, %v1591_v20  ;;  %v2005_v45 = vmul.f32 %v1973_v49, %v1127_v62  ;;  %v2826_v16 = vpop.eup %2825 }
 0x371   : > { %v1974_v39 = vmul.f32 %v1942_v37, %v1910_v34  ;;  %v1528_v56 = vmul.f32 %v2824_v24, %v1496_v44 }
 0x372   : > { %v1655_v14 = vmul.f32 %v2818_v11, %v1623_v42 }
 0x373   : > { %v1560_v30 = vadd.f32 -0.28449672, %v1528_v56  ;;  %v2006_v63 = vmul.f32 %v1974_v39, %v1131_v40  ;;  %v2828_v9 = vpop.eup %2827 }
 0x374   : > { %v1815_v55 = vmul.f32 %v2826_v16, %v1655_v14 }
 0x375   : > { %v1592_v50 = vmul.f32 %v2824_v24, %v1560_v30  ;;  %v2023_v13 = vpack.c.bf16 %v2006_v63, %v2005_v45 }
 0x376   : > { %v1847_v22 = vsub.f32 1.0, %v1815_v55 }
 0x377   : > { %v1624_v51 = vadd.f32 0.2548296, %v1592_v50  ;;  %2510 = vmatprep.mubr.bf16.mxu1 %v2023_v13 }
 0x378   : > { %v1879_v33 = vmul.f32 %v1847_v22, %v1239_v43 }
 0x379   : > { %v1656_v27 = vmul.f32 %v2824_v24, %v1624_v51 }
 0x37a   : > { %v1943_v29 = vadd.f32 1.0, %v1879_v33 }
 0x37b   : > { %v1816_v11 = vmul.f32 %v2828_v9, %v1656_v27 }
 0x37c   : > { %v1975_v57 = vmul.f32 %v1943_v29, %v1911_v36 }
 0x37d   : > { %v1848_v3 = vsub.f32 1.0, %v1816_v11 }
 0x37e   : > { %v2007_v58 = vmul.f32 %v1975_v57, %v1137_v4 }
 0x37f   : > { %v1880_v10 = vmul.f32 %v1848_v3, %v1240_v52 }
 0x381   : > { %v1944_v53 = vadd.f32 1.0, %v1880_v10 }
 0x383   : > { %v1976_v28 = vmul.f32 %v1944_v53, %v1912_v35 }
 0x385   : > { %v2008_v38 = vmul.f32 %v1976_v28, %v1141_v48 }
 0x387   : > { %v2024_v41 = vpack.c.bf16 %v2008_v38, %v2007_v58 }
 0x389   : > { %2511 = vmatmul.mubr.bf16.gmra.mrb[44].mxu1 %v2024_v41 }
 0x3b3   : > { %v2484_v59 = vpop.f32.mrb[16].mxu1 }
 0x3b4   : > { %v2139_v31 = vadd.f32 %v2484_v59, %v4824_v15  ;;  %v2130_v1 = vpop.f32.mrb[17].mxu1 }
 0x3b5   : > { %v2131_v24 = vadd.f32 %v4824_v15, %v2130_v1  ;;  %v2485_v47 = vpop.f32.mrb[18].mxu1 }
 0x3b6   : > { %2259 = vst [vmem:[%s4830_s22 + $0x10] sm:$0xff] %v2139_v31  ;;  %v2142_v46 = vadd.f32 %v2485_v47, %v4824_v15  ;;  %v2133_v54 = vpop.f32.mrb[19].mxu1 }
 0x3b7   : > { %2257 = vst [vmem:[%s4830_s22] sm:$0xff] %v2131_v24  ;;  %v2134_v60 = vadd.f32 %v4824_v15, %v2133_v54 }
 0x3b8   : > { %2260 = vst [vmem:[%s4830_s22 + $0x18] sm:$0xff] %v2142_v46 }
 0x3b9   : > { %2258 = vst [vmem:[%s4830_s22 + $0x8] sm:$0xff] %v2134_v60 }
 0x3e8   : > { %v2488_v61 = vpop.f32.mrb[20].mxu1 }
 0x3e9   : > { %v2155_v5 = vadd.f32 %v2488_v61, %v4824_v15  ;;  %v2146_v18 = vpop.f32.mrb[21].mxu1 }
 0x3ea   : > { %v2147_v0 = vadd.f32 %v4824_v15, %v2146_v18  ;;  %v2489_v17 = vpop.f32.mrb[22].mxu1 }
 0x3eb   : > { %2263 = vst [vmem:[%s4830_s22 + $0x30] sm:$0xff] %v2155_v5  ;;  %v2158_v21 = vadd.f32 %v2489_v17, %v4824_v15  ;;  %v2149_v7 = vpop.f32.mrb[23].mxu1 }
 0x3ec   : > { %2261 = vst [vmem:[%s4830_s22 + $0x20] sm:$0xff] %v2147_v0  ;;  %v2150_v23 = vadd.f32 %v4824_v15, %v2149_v7 }
 0x3ed   : > { %2264 = vst [vmem:[%s4830_s22 + $0x38] sm:$0xff] %v2158_v21 }
 0x3ee   : > { %2262 = vst [vmem:[%s4830_s22 + $0x28] sm:$0xff] %v2150_v23 }
 0x3f6   : > { %v2492_v2 = vpop.f32.mrb[24].mxu1 }
 0x3f7   : > { %v2171_v8 = vadd.f32 %v2492_v2, %v4824_v15  ;;  %v2162_v19 = vpop.f32.mrb[25].mxu1 }
 0x3f8   : > { %v2163_v25 = vadd.f32 %v4824_v15, %v2162_v19  ;;  %v2493_v6 = vpop.f32.mrb[26].mxu1 }
 0x3f9   : > { %2267 = vst [vmem:[%s4830_s22 + $0x50] sm:$0xff] %v2171_v8  ;;  %v2174_v12 = vadd.f32 %v2493_v6, %v4824_v15  ;;  %v2165_v32 = vpop.f32.mrb[27].mxu1 }
 0x3fa   : > { %2265 = vst [vmem:[%s4830_s22 + $0x40] sm:$0xff] %v2163_v25  ;;  %v2166_v26 = vadd.f32 %v4824_v15, %v2165_v32 }
 0x3fb   : > { %2268 = vst [vmem:[%s4830_s22 + $0x58] sm:$0xff] %v2174_v12 }
 0x3fc   : > { %2266 = vst [vmem:[%s4830_s22 + $0x48] sm:$0xff] %v2166_v26 }
 0x3fe   : > { %v2496_v62 = vpop.f32.mrb[28].mxu1 }
 0x3ff   : > { %v2187_v49 = vadd.f32 %v2496_v62, %v4824_v15  ;;  %v2178_v20 = vpop.f32.mrb[29].mxu1 }
 0x400   : > { %v2179_v34 = vadd.f32 %v4824_v15, %v2178_v20  ;;  %v2497_v37 = vpop.f32.mrb[30].mxu1 }
 0x401   : > { %2271 = vst [vmem:[%s4830_s22 + $0x70] sm:$0xff] %v2187_v49  ;;  %v2190_v44 = vadd.f32 %v2497_v37, %v4824_v15  ;;  %v2181_v42 = vpop.f32.mrb[31].mxu1 }
 0x402   : > { %2269 = vst [vmem:[%s4830_s22 + $0x60] sm:$0xff] %v2179_v34  ;;  %v2182_v45 = vadd.f32 %v4824_v15, %v2181_v42 }
 0x403   : > { %2272 = vst [vmem:[%s4830_s22 + $0x78] sm:$0xff] %v2190_v44 }
 0x404   : > { %2270 = vst [vmem:[%s4830_s22 + $0x68] sm:$0xff] %v2182_v45 }
 0x411   : > { %v2500_v40 = vpop.f32.mrb[32].mxu1 }
 0x412   : > { %v2203_v39 = vadd.f32 %v2500_v40, %v4824_v15  ;;  %v2194_v56 = vpop.f32.mrb[33].mxu1 }
 0x413   : > { %v2195_v14 = vadd.f32 %v4824_v15, %v2194_v56  ;;  %v2501_v16 = vpop.f32.mrb[34].mxu1 }
 0x414   : > { %2275 = vst [vmem:[%s4830_s22 + $0x90] sm:$0xff] %v2203_v39  ;;  %v2206_v30 = vadd.f32 %v2501_v16, %v4824_v15  ;;  %v2197_v63 = vpop.f32.mrb[35].mxu1 }
 0x415   : > { %2273 = vst [vmem:[%s4830_s22 + $0x80] sm:$0xff] %v2195_v14  ;;  %v2198_v55 = vadd.f32 %v4824_v15, %v2197_v63 }
 0x416   : > { %2276 = vst [vmem:[%s4830_s22 + $0x98] sm:$0xff] %v2206_v30 }
 0x417   : > { %2274 = vst [vmem:[%s4830_s22 + $0x88] sm:$0xff] %v2198_v55 }
 0x433   : > { %v2504_v50 = vpop.f32.mrb[36].mxu1 }
 0x434   : > { %v2219_v13 = vadd.f32 %v2504_v50, %v4824_v15  ;;  %v2210_v22 = vpop.f32.mrb[37].mxu1 }
 0x435   : > { %v2211_v43 = vadd.f32 %v4824_v15, %v2210_v22  ;;  %v2505_v51 = vpop.f32.mrb[38].mxu1 }
 0x436   : > { %2279 = vst [vmem:[%s4830_s22 + $0xb0] sm:$0xff] %v2219_v13  ;;  %v2222_v33 = vadd.f32 %v2505_v51, %v4824_v15  ;;  %v2213_v27 = vpop.f32.mrb[39].mxu1 }
 0x437   : > { %2277 = vst [vmem:[%s4830_s22 + $0xa0] sm:$0xff] %v2211_v43  ;;  %v2214_v9 = vadd.f32 %v4824_v15, %v2213_v27 }
 0x438   : > { %2280 = vst [vmem:[%s4830_s22 + $0xb8] sm:$0xff] %v2222_v33 }
 0x439   : > { %2278 = vst [vmem:[%s4830_s22 + $0xa8] sm:$0xff] %v2214_v9 }
 0x43e   : > { %v2508_v36 = vpop.f32.mrb[40].mxu1 }
 0x43f   : > { %v2235_v29 = vadd.f32 %v2508_v36, %v4824_v15  ;;  %v2226_v11 = vpop.f32.mrb[41].mxu1 }
 0x440   : > { %v2227_v4 = vadd.f32 %v4824_v15, %v2226_v11  ;;  %v2509_v57 = vpop.f32.mrb[42].mxu1 }
 0x441   : > { %2283 = vst [vmem:[%s4830_s22 + $0xd0] sm:$0xff] %v2235_v29  ;;  %v2238_v3 = vadd.f32 %v2509_v57, %v4824_v15  ;;  %v2229_v52 = vpop.f32.mrb[43].mxu1 }
 0x442   : > { %2281 = vst [vmem:[%s4830_s22 + $0xc0] sm:$0xff] %v2227_v4  ;;  %v2230_v58 = vadd.f32 %v4824_v15, %v2229_v52 }
 0x443   : > { %2284 = vst [vmem:[%s4830_s22 + $0xd8] sm:$0xff] %v2238_v3 }
 0x444   : > { %2282 = vst [vmem:[%s4830_s22 + $0xc8] sm:$0xff] %v2230_v58 }
 0x45c   : > { %v2512_v10 = vpop.f32.mrb[44].mxu1 }
 0x45d   : > { %v2251_v35 = vadd.f32 %v2512_v10, %v4824_v15  ;;  %v2242_v53 = vpop.f32.mrb[45].mxu1 }
 0x45e   : > { %v2243_v48 = vadd.f32 %v4824_v15, %v2242_v53  ;;  %v2513_v28 = vpop.f32.mrb[46].mxu1 }
 0x45f   : > { %2287 = vst [vmem:[%s4830_s22 + $0xf0] sm:$0xff] %v2251_v35  ;;  %v2254_v38 = vadd.f32 %v2513_v28, %v4824_v15  ;;  %v2245_v41 = vpop.f32.mrb[47].mxu1 }
 0x460   : > { %2285 = vst [vmem:[%s4830_s22 + $0xe0] sm:$0xff] %v2243_v48  ;;  %v2246_v59 = vadd.f32 %v4824_v15, %v2245_v41 }
 0x461   : > { %2288 = vst [vmem:[%s4830_s22 + $0xf8] sm:$0xff] %v2254_v38 }
 0x462   : > { %2286 = vst [vmem:[%s4830_s22 + $0xe8] sm:$0xff] %v2246_v59 }
 0x463   : > { %2928 = shalt.err (!%p2925_p1)
}
 0x464   : > { %s2929_s18 = scalar_lea.hbm %s4895_s30, 4096  ;;  %s2933_s22 = scalar_lea.hbm %s4952_s7, 8192 }
 0x465   : > { %p2930_p13 = scmp.ne.s32.totalorder %s4895_s30, %s2929_s18  ;;  %p2934_p4 = scmp.lt.u32.totalorder %s4895_s30, %s4952_s7 }
 0x466   : > { %p2935_p7 = scmp.lt.u32.totalorder %s2933_s22, %s2929_s18  ;;  %p2937_p11 = scmp.lt.u32.totalorder %s2929_s18, %s4895_s30 }
 0x467   : > { %p2931_p6 = pnand %p2930_p13, %p5022_p0 }
 0x468   : > { %p2936_p8 = por %p2935_p7, %p2934_p4 }
 0x469   : > { %p2932_p10 = pneg %p2931_p6 }
 0x46a   : > { %p2938_p2 = por %p2937_p11, %p2936_p8 }
 0x46c   : > { %p2939_p3 = pnand %p2938_p2, %p2932_p10 }
 0x46e   : > { %2942 = shalt.err (!%p2939_p3)
}
 0x46f   : > { %s2997_s17 = smov 128   ;;  %s2998_s9 = smov 8  }
 0x470   : > { %2540 = dma.vmem_to_hbm [thread:$0]  (%p5022_p0), %s4897_s13, 4096, %s4895_s30, %s2290_s28, %s2997_s17, %s2997_s17, %s2998_s9  }
 0x471 PF: > { %s2318_s29 = sand.u32 1, %s2973_s24   ;;  %p5023_p5 = scmp.ne.s32.totalorder %s4960_s8, 0 }
 0x472   : > { %p5024_p9 = scmp.ge.s32.totalorder %s2985_s27, 2  ;;  %s2319_s10 = scalar_lea.sflag [#allocation4], %s2318_s29 }
 0x474   : > { %p2554_p12 = pnand %p5024_p9, %p5023_p5 }
 0x476   : > { %2968 = dma.done.wait (!%p2554_p12), %s2319_s10, 4096  }
 0x477   : > { %2970 = vsyncadd (!%p2554_p12), %s2319_s10, 4294963200  ;;  %p21_p1 = scmp.ge.s32.totalorder %s3152_s16, 4   ;;  %s5025_s24 = smov %s2977_s25 }
 0x478   : > { %s5026_s25 = smov %s2981_s26  ;;  %s5027_s26 = smov %s3161_s19 }
 0x479   : > { %s5028_s27 = smov %s3152_s16  ;;  %23 = sbr.rel (!%p21_p1) target bundleno = 6 (0x6), region = 101 }
 0x480   :  { %2324 = vsyncpa [#allocation3], 1 }
 0x481   :  { %2326 = vsyncpa [#allocation3 + $0x1], 1 }
 0x482   :  { %2327 = vsyncpa [#allocation6], 1 }
 0x483   :  { %2328 = vsyncpa [#allocation4], 1 }
 0x484   :  { %2330 = vsyncpa [#allocation4 + $0x1], 1 }

</bundles_post_ra>
